<compile_context>
chip_gen: v7x
topology: tpu7x:2x2x1
jax: 0.10.0
libtpu: 0.0.40
codegen_flags: <defaults>
</compile_context>

<pallas_src>
import functools

import jax
import jax.numpy as jnp
from jax import lax
from jax.experimental import pallas as pl
from jax.experimental.pallas import tpu as pltpu


# ----------------------------------------------------------------------------- helpers
_SQRT2_INV = 0.7071067811865476


@functools.lru_cache(maxsize=1)
def _use_exact_gelu():
    """Lazily probe (once) whether lax.erf lowers through Pallas/Mosaic on this build."""
    def k(x_ref, o_ref):
        o_ref[...] = lax.erf(x_ref[...])
    try:
        jax.block_until_ready(
            pl.pallas_call(k, out_shape=jax.ShapeDtypeStruct((8, 128), jnp.float32))(
                jnp.zeros((8, 128), jnp.float32)))
        return True
    except Exception:
        return False


def _gelu(x):
    if _use_exact_gelu():
        # exact (erf-based) GELU, matching PyTorch nn.GELU()
        return 0.5 * x * (1.0 + lax.erf(x * _SQRT2_INV))
    # TODO(synk): builds without erf lowering fall back to tanh-approx GELU (tiny numeric diff).
    return jax.nn.gelu(x, approximate=True)


def _layernorm(x, g, b, eps=1e-5):
    mu = jnp.mean(x, axis=-1, keepdims=True)
    xc = x - mu
    var = jnp.mean(xc * xc, axis=-1, keepdims=True)
    return xc * lax.rsqrt(var + eps) * g + b


# ----------------------------------------------------------------------------- bi-LSTM kernel
def _lstm_kernel(x_ref, wih_ref, whh_f_ref, whh_b_ref, bias_ref, out_ref,
                 *, seq_len, batch, hidden):
    T, B, H = seq_len, batch, hidden
    G = 4 * H

    # Hoisted input projection for BOTH directions: one (T*B, C) @ (C, 8H) matmul + bias.
    xg = (jnp.dot(x_ref[...], wih_ref[...], preferred_element_type=jnp.float32)
          + bias_ref[...])                                            # (T*B, 8H)
    whh_f = whh_f_ref[...]                                            # (H, 4H)
    whh_b = whh_b_ref[...]                                            # (H, 4H)

    def cell(g4, c_prev):                                             # gate order [i, f, g, o]
        # TODO(synk): at production H, pad so each gate slice lands on a 128-lane boundary.
        i = jax.nn.sigmoid(g4[:, 0:H])
        f = jax.nn.sigmoid(g4[:, H:2 * H])
        g = jnp.tanh(g4[:, 2 * H:3 * H])
        o = jax.nn.sigmoid(g4[:, 3 * H:4 * H])
        c_new = f * c_prev + i * g
        return o * jnp.tanh(c_new), c_new

    zeros = jnp.zeros((B, H), jnp.float32)
    h_f, c_f, h_b, c_b = zeros, zeros, zeros, zeros

    # T is a small static constant: fully unrolled, forward/backward interleaved per step.
    # State is carried in plain values (no per-step concatenates, no scratch round-trips).
    for t in range(T):
        tb = T - 1 - t
        g_f = xg[t * B:(t + 1) * B, 0:G] + jnp.dot(
            h_f, whh_f, preferred_element_type=jnp.float32)
        g_b = xg[tb * B:(tb + 1) * B, G:2 * G] + jnp.dot(
            h_b, whh_b, preferred_element_type=jnp.float32)
        h_f, c_f = cell(g_f, c_f)
        h_b, c_b = cell(g_b, c_b)
        out_ref[t * B:(t + 1) * B, 0:H] = h_f           # fwd output at time t
        out_ref[tb * B:(tb + 1) * B, H:2 * H] = h_b     # bwd output at time T-1-t


def lstm_bidir(x_bct, prep):
    """x_bct: (B, C, T) -> (B, T, 2H) patch embedding (PyTorch bidirectional LSTM)."""
    B, C, T = x_bct.shape
    H = prep["lstm_whh_f"].shape[0]

    # Fuse the 'b c t -> b t c' rearrange with the time-major flattening: one permutation.
    x_tm = jnp.transpose(x_bct, (2, 0, 1)).reshape(T * B, C).astype(jnp.float32)

    flops = 2 * T * B * C * 8 * H + T * 2 * (2 * B * H * 4 * H)
    transcend = T * B * 2 * 5 * H
    bytes_acc = 4 * (T * B * C + C * 8 * H + 2 * H * 4 * H + 8 * H + T * B * 2 * H)

    out_tm = pl.pallas_call(
        functools.partial(_lstm_kernel, seq_len=T, batch=B, hidden=H),
        out_shape=jax.ShapeDtypeStruct((T * B, 2 * H), jnp.float32),
        cost_estimate=pl.CostEstimate(flops=flops, transcendentals=transcend,
                                      bytes_accessed=bytes_acc),
    )(x_tm, prep["lstm_wih"], prep["lstm_whh_f"], prep["lstm_whh_b"], prep["lstm_bias"])

    # TODO(synk): at production sizes fuse this transpose into the LSTM output stores
    # (batch-major writes) to avoid one extra HBM round trip of the activation.
    return jnp.transpose(out_tm.reshape(T, B, 2 * H), (1, 0, 2))      # (B, T, 2H)


# ----------------------------------------------------------------------------- fused mixer blocks + head
def _mixer_head_kernel(x_ref,
                       ln1g_ref, ln1b_ref, tw1_ref, tb1_ref, tw2_ref, tb2_ref,
                       ln2g_ref, ln2b_ref, cw1_ref, cb1_ref, cw2_ref, cb2_ref,
                       lnfg_ref, lnfb_ref, hw1_ref, hb1_ref, hw2_ref, hb2_ref,
                       o_ref, *, depth, b_tile, n_tok):
    N = n_tok
    x = x_ref[...].astype(jnp.float32)                  # (b_tile*N, D), all samples of the tile

    # All mixer blocks unrolled in one kernel body; the (depth, ...) weight stacks are
    # VMEM-resident (fetched once for the whole grid).
    # TODO(synk): chunk the depth stack / use bf16 weights at production sizes (v7x 64 MiB VMEM).
    for d in range(depth):
        # ---- token mixing: canonical [M,K]@[K,N] matmuls (contraction over lhs lane dim) ----
        y = _layernorm(x, ln1g_ref[d], ln1b_ref[d])
        w1, b1 = tw1_ref[d], tb1_ref[d]                 # (TD, N), (TD, 1)
        w2, b2 = tw2_ref[d], tb2_ref[d]                 # (N, TD), (N, 1)
        rows = []
        for b in range(b_tile):
            yb = y[b * N:(b + 1) * N, :]                # (N, D)
            h = _gelu(jnp.dot(w1, yb, preferred_element_type=jnp.float32) + b1)   # (TD, D)
            tok = jnp.dot(w2, h, preferred_element_type=jnp.float32) + b2          # (N, D)
            rows.append(x[b * N:(b + 1) * N, :] + tok)
        x = rows[0] if b_tile == 1 else jnp.concatenate(rows, axis=0)

        # ---- channel mixing: one (b_tile*N, D) @ (D, CD) batched matmul ----
        y2 = _layernorm(x, ln2g_ref[d], ln2b_ref[d])
        h2 = _gelu(jnp.dot(y2, cw1_ref[d], preferred_element_type=jnp.float32) + cb1_ref[d])
        x = x + jnp.dot(h2, cw2_ref[d], preferred_element_type=jnp.float32) + cb2_ref[d]

    # ---- final LayerNorm + per-sample token mean + MLP head (batched over b_tile) ----
    yf = _layernorm(x, lnfg_ref[...], lnfb_ref[...])
    means = [jnp.mean(yf[b * N:(b + 1) * N, :], axis=0, keepdims=True)
             for b in range(b_tile)]
    m = means[0] if b_tile == 1 else jnp.concatenate(means, axis=0)   # (b_tile, D)
    hh = jnp.maximum(
        jnp.dot(m, hw1_ref[...], preferred_element_type=jnp.float32) + hb1_ref[...], 0.0)
    out = jnp.dot(hh, hw2_ref[...], preferred_element_type=jnp.float32) + hb2_ref[...]
    o_ref[...] = out.astype(o_ref.dtype)                # lane-padded (b_tile, NCP) slab store


def _pick_b_tile(batch, n_tok, target_rows=256):
    """Largest divisor of batch whose tile keeps b_tile*n_tok rows near the MXU row budget."""
    bt = 1
    for cand in range(1, batch + 1):
        if batch % cand == 0 and cand * n_tok <= max(target_rows, n_tok):
            bt = cand
    return bt


def mixer_and_head(x_bnd, prep, *, num_classes):
    B, N, D = x_bnd.shape
    depth = prep["ln1_g"].shape[0]
    TD = prep["tok_w1"].shape[1]
    CD = prep["ch_w1"].shape[2]
    HH = prep["head_w1"].shape[1]
    NCP = prep["head_w2"].shape[1]

    b_tile = _pick_b_tile(B, N)
    num_tiles = B // b_tile
    x_flat = x_bnd.reshape(B * N, D)                    # contiguous, free reshape

    weight_args = (
        prep["ln1_g"], prep["ln1_b"],
        prep["tok_w1"], prep["tok_b1"], prep["tok_w2"], prep["tok_b2"],
        prep["ln2_g"], prep["ln2_b"],
        prep["ch_w1"], prep["ch_b1"], prep["ch_w2"], prep["ch_b2"],
        prep["ln_g"], prep["ln_b"],
        prep["head_w1"], prep["head_b1"], prep["head_w2"], prep["head_b2"],
    )

    def const_spec(a):
        # Same block on every grid step -> fetched from HBM once, kept VMEM-resident.
        return pl.BlockSpec(a.shape, lambda i: (0,) * a.ndim)

    in_specs = ([pl.BlockSpec((b_tile * N, D), lambda i: (i, 0))]
                + [const_spec(a) for a in weight_args])

    flops = B * (depth * (4 * TD * N * D + 4 * N * D * CD) + 2 * D * HH + 2 * HH * NCP)
    transcend = B * depth * (TD * D + N * CD)
    bytes_acc = int(4 * (x_flat.size + sum(a.size for a in weight_args) + B * NCP))

    out = pl.pallas_call(
        functools.partial(_mixer_head_kernel, depth=depth, b_tile=b_tile, n_tok=N),
        out_shape=jax.ShapeDtypeStruct((B, NCP), jnp.float32),
        grid=(num_tiles,),
        in_specs=in_specs,
        out_specs=pl.BlockSpec((b_tile, NCP), lambda i: (i, 0)),
        compiler_params=pltpu.CompilerParams(
            dimension_semantics=("parallel",),
            vmem_limit_bytes=32 * 1024 * 1024),
        cost_estimate=pl.CostEstimate(flops=flops, transcendentals=transcend,
                                      bytes_accessed=bytes_acc),
    )(x_flat, *weight_args)

    return out[:, :num_classes]


# ----------------------------------------------------------------------------- full forward
def mlp_mixer_forward(x_bct, prep, *, num_classes):
    emb = lstm_bidir(x_bct, prep)                       # (B, num_patch, dim)
    return mixer_and_head(emb, prep, num_classes=num_classes)   # (B, num_classes)


# ----------------------------------------------------------------------------- params
def init_params(key, c_in, dim, num_patch, depth, token_dim, channel_dim, num_classes):
    h = dim // 2
    keys = list(jax.random.split(key, 8 + 8 * depth + 4))
    it = iter(keys)

    def nrm(shape, scale=0.05):
        return scale * jax.random.normal(next(it), shape, jnp.float32)

    p = {}
    for d in ("f", "b"):                                   # bidirectional LSTM, 1 layer
        p[f"lstm_wih_{d}"] = nrm((4 * h, c_in), 0.2)
        p[f"lstm_whh_{d}"] = nrm((4 * h, h), 0.2)
        p[f"lstm_bih_{d}"] = nrm((4 * h,), 0.2)
        p[f"lstm_bhh_{d}"] = nrm((4 * h,), 0.2)

    blocks = []
    for _ in range(depth):
        blocks.append({
            "ln1_g": jnp.ones((dim,), jnp.float32), "ln1_b": jnp.zeros((dim,), jnp.float32),
            "tok_w1": nrm((token_dim, num_patch)), "tok_b1": nrm((token_dim,)),
            "tok_w2": nrm((num_patch, token_dim)), "tok_b2": nrm((num_patch,)),
            "ln2_g": jnp.ones((dim,), jnp.float32), "ln2_b": jnp.zeros((dim,), jnp.float32),
            "ch_w1": nrm((channel_dim, dim)), "ch_b1": nrm((channel_dim,)),
            "ch_w2": nrm((dim, channel_dim)), "ch_b2": nrm((dim,)),
        })
    p["blocks"] = blocks

    p["ln_g"] = jnp.ones((dim,), jnp.float32)
    p["ln_b"] = jnp.zeros((dim,), jnp.float32)
    p["head_w1"] = nrm((128, dim))
    p["head_b1"] = nrm((128,))
    p["head_w2"] = nrm((num_classes, 128))
    p["head_b2"] = nrm((num_classes,))
    return p


def prepare_params(params):
    """One-time weight re-layout for the kernels (run ONCE, outside the per-forward jit)."""
    _use_exact_gelu()                                   # warm the cached erf probe outside any trace
    H = params["lstm_whh_f"].shape[1]

    prep = {
        # concatenated input weights / biases for both directions: (C, 8H), (1, 8H)
        "lstm_wih": jnp.concatenate([params["lstm_wih_f"].T, params["lstm_wih_b"].T], axis=1),
        "lstm_whh_f": params["lstm_whh_f"].T,           # (H, 4H)
        "lstm_whh_b": params["lstm_whh_b"].T,           # (H, 4H)
        "lstm_bias": jnp.concatenate(
            [params["lstm_bih_f"] + params["lstm_bhh_f"],
             params["lstm_bih_b"] + params["lstm_bhh_b"]], axis=0).reshape(1, 8 * H),
    }

    blocks = params["blocks"]
    row = lambda v: v.reshape(1, -1)
    col = lambda v: v.reshape(-1, 1)
    ident = lambda v: v

    def stack(key, f):
        return jnp.stack([f(blk[key]) for blk in blocks], axis=0)

    prep.update({
        "ln1_g": stack("ln1_g", row), "ln1_b": stack("ln1_b", row),   # (depth, 1, D)
        "tok_w1": stack("tok_w1", ident),                             # (depth, TD, N)  canonical lhs
        "tok_b1": stack("tok_b1", col),                               # (depth, TD, 1)
        "tok_w2": stack("tok_w2", ident),                             # (depth, N, TD)  canonical lhs
        "tok_b2": stack("tok_b2", col),                               # (depth, N, 1)
        "ln2_g": stack("ln2_g", row), "ln2_b": stack("ln2_b", row),
        "ch_w1": stack("ch_w1", lambda v: v.T),                       # (depth, D, CD)
        "ch_b1": stack("ch_b1", row),                                 # (depth, 1, CD)
        "ch_w2": stack("ch_w2", lambda v: v.T),                       # (depth, CD, D)
        "ch_b2": stack("ch_b2", row),                                 # (depth, 1, D)
        "ln_g": row(params["ln_g"]), "ln_b": row(params["ln_b"]),
        "head_w1": params["head_w1"].T,                               # (D, 128)
        "head_b1": row(params["head_b1"]),                            # (1, 128)
    })

    # lane-dense head output: pad num_classes up to a multiple of 128 with zero columns
    nc = params["head_w2"].shape[0]
    ncp = max(128, -(-nc // 128) * 128)
    prep["head_w2"] = jnp.pad(params["head_w2"].T, ((0, 0), (0, ncp - nc)))   # (128, NCP)
    prep["head_b2"] = jnp.pad(row(params["head_b2"]), ((0, 0), (0, ncp - nc)))  # (1, NCP)
    return prep


# ----------------------------------------------------------------------------- main
if __name__ == "__main__":
    # small but structurally faithful config
    B, C_IN, T = 2, 2, 8            # batch, in_channels, sequence length (= num_patch)
    DIM = 32                        # LSTM hidden = DIM//2 per direction
    DEPTH = 2
    TOKEN_DIM = 64
    CHANNEL_DIM = 64
    NUM_CLASSES = 1

    key = jax.random.PRNGKey(0)
    k_x, k_p = jax.random.split(key)
    x = jax.random.normal(k_x, (B, C_IN, T), jnp.float32)     # (b, c, t) like the PyTorch model
    params = init_params(k_p, C_IN, DIM, T, DEPTH, TOKEN_DIM, CHANNEL_DIM, NUM_CLASSES)

    prep = prepare_params(params)                             # one-time weight re-layout
    fwd = jax.jit(functools.partial(mlp_mixer_forward, num_classes=NUM_CLASSES))
    out = jax.block_until_ready(fwd(x, prep))
    assert out.shape == (B, NUM_CLASSES), out.shape
    print("KERNEL_OK")
</pallas_src>

<mosaic_0001>
module attributes {stable_mosaic.version = 11 : i64} {
  func.func @k(%arg0: memref<8x128xf32, #tpu.memory_space<vmem>>, %arg1: memref<8x128xf32, #tpu.memory_space<vmem>>) attributes {dimension_semantics = [], scalar_prefetch = 0 : i64, scratch_operands = 0 : i64, tpu.core_type = #tpu.core_type<tc>} {
    %c0 = arith.constant 0 : index
    %c0_0 = arith.constant 0 : index
    %0 = vector.load %arg0[%c0, %c0_0] : memref<8x128xf32, #tpu.memory_space<vmem>>, vector<8x128xf32>
    %1 = math.erf %0 : vector<8x128xf32>
    %c0_1 = arith.constant 0 : index
    %c0_2 = arith.constant 0 : index
    %2 = vector.load %arg1[%c0_1, %c0_2] : memref<8x128xf32, #tpu.memory_space<vmem>>, vector<8x128xf32>
    tpu.vector_store %arg1[%c0_1, %c0_2], %1 {strides = array<i32>} : memref<8x128xf32, #tpu.memory_space<vmem>>, vector<8x128xf32>,
    return
  }
}

module attributes {stable_mosaic.version = 11 : i64} {
  func.func @_lstm_kernel(%arg0: memref<16x2xf32, #tpu.memory_space<vmem>>, %arg1: memref<2x128xf32, #tpu.memory_space<vmem>>, %arg2: memref<16x64xf32, #tpu.memory_space<vmem>>, %arg3: memref<16x64xf32, #tpu.memory_space<vmem>>, %arg4: memref<1x128xf32, #tpu.memory_space<vmem>>, %arg5: memref<16x32xf32, #tpu.memory_space<vmem>>) attributes {dimension_semantics = [], scalar_prefetch = 0 : i64, scratch_operands = 0 : i64, tpu.core_type = #tpu.core_type<tc>} {
    %c0 = arith.constant 0 : index
    %c0_0 = arith.constant 0 : index
    %0 = vector.load %arg0[%c0, %c0_0] : memref<16x2xf32, #tpu.memory_space<vmem>>, vector<16x2xf32>
    %c0_1 = arith.constant 0 : index
    %c0_2 = arith.constant 0 : index
    %1 = vector.load %arg1[%c0_1, %c0_2] : memref<2x128xf32, #tpu.memory_space<vmem>>, vector<2x128xf32>
    %cst = arith.constant dense<0.000000e+00> : vector<16x128xf32>
    %2 = tpu.matmul %0, %1, %cst {dimension_numbers = #tpu.dot_dimension_numbers<[1], [0], [0], [1], [0, 0, 1, 1], [], []>} : vector<16x2xf32>, vector<2x128xf32>, vector<16x128xf32> -> vector<16x128xf32>
    %c0_3 = arith.constant 0 : index
    %c0_4 = arith.constant 0 : index
    %3 = vector.load %arg4[%c0_3, %c0_4] : memref<1x128xf32, #tpu.memory_space<vmem>>, vector<1x128xf32>
    %4 = vector.broadcast %3 : vector<1x128xf32> to vector<16x128xf32>
    %5 = arith.addf %2, %4 : vector<16x128xf32>
    %c0_5 = arith.constant 0 : index
    %c0_6 = arith.constant 0 : index
    %6 = vector.load %arg2[%c0_5, %c0_6] : memref<16x64xf32, #tpu.memory_space<vmem>>, vector<16x64xf32>
    %c0_7 = arith.constant 0 : index
    %c0_8 = arith.constant 0 : index
    %7 = vector.load %arg3[%c0_7, %c0_8] : memref<16x64xf32, #tpu.memory_space<vmem>>, vector<16x64xf32>
    %cst_9 = arith.constant 0.000000e+00 : f32
    %8 = vector.broadcast %cst_9 : f32 to vector<2x16xf32>
    %9 = vector.extract_strided_slice %5 {offsets = [0, 0], sizes = [2, 64], strides = [1, 1]} : vector<16x128xf32> to vector<2x64xf32>
    %cst_10 = arith.constant dense<0.000000e+00> : vector<2x64xf32>
    %10 = tpu.matmul %8, %6, %cst_10 {dimension_numbers = #tpu.dot_dimension_numbers<[1], [0], [0], [1], [0, 0, 1, 1], [], []>} : vector<2x16xf32>, vector<16x64xf32>, vector<2x64xf32> -> vector<2x64xf32>
    %11 = arith.addf %9, %10 : vector<2x64xf32>
    %12 = vector.extract_strided_slice %5 {offsets = [14, 64], sizes = [2, 64], strides = [1, 1]} : vector<16x128xf32> to vector<2x64xf32>
    %cst_11 = arith.constant dense<0.000000e+00> : vector<2x64xf32>
    %13 = tpu.matmul %8, %7, %cst_11 {dimension_numbers = #tpu.dot_dimension_numbers<[1], [0], [0], [1], [0, 0, 1, 1], [], []>} : vector<2x16xf32>, vector<16x64xf32>, vector<2x64xf32> -> vector<2x64xf32>
    %14 = arith.addf %12, %13 : vector<2x64xf32>
    %15 = vector.extract_strided_slice %11 {offsets = [0, 0], sizes = [2, 16], strides = [1, 1]} : vector<2x64xf32> to vector<2x16xf32>
    %16 = arith.negf %15 : vector<2x16xf32>
    %17 = math.exp %16 : vector<2x16xf32>
    %cst_12 = arith.constant 1.000000e+00 : f32
    %18 = vector.broadcast %cst_12 : f32 to vector<2x16xf32>
    %19 = arith.addf %18, %17 : vector<2x16xf32>
    %20 = arith.divf %18, %19 : vector<2x16xf32>
    %21 = vector.extract_strided_slice %11 {offsets = [0, 16], sizes = [2, 16], strides = [1, 1]} : vector<2x64xf32> to vector<2x16xf32>
    %22 = arith.negf %21 : vector<2x16xf32>
    %23 = math.exp %22 : vector<2x16xf32>
    %cst_13 = arith.constant 1.000000e+00 : f32
    %24 = vector.broadcast %cst_13 : f32 to vector<2x16xf32>
    %25 = arith.addf %24, %23 : vector<2x16xf32>
    %26 = arith.divf %24, %25 : vector<2x16xf32>
    %27 = vector.extract_strided_slice %11 {offsets = [0, 32], sizes = [2, 16], strides = [1, 1]} : vector<2x64xf32> to vector<2x16xf32>
    %28 = math.tanh %27 : vector<2x16xf32>
    %29 = vector.extract_strided_slice %11 {offsets = [0, 48], sizes = [2, 16], strides = [1, 1]} : vector<2x64xf32> to vector<2x16xf32>
    %30 = arith.negf %29 : vector<2x16xf32>
    %31 = math.exp %30 : vector<2x16xf32>
    %cst_14 = arith.constant 1.000000e+00 : f32
    %32 = vector.broadcast %cst_14 : f32 to vector<2x16xf32>
    %33 = arith.addf %32, %31 : vector<2x16xf32>
    %34 = arith.divf %32, %33 : vector<2x16xf32>
    %35 = arith.mulf %26, %8 : vector<2x16xf32>
    %36 = arith.mulf %20, %28 : vector<2x16xf32>
    %37 = arith.addf %35, %36 : vector<2x16xf32>
    %38 = math.tanh %37 : vector<2x16xf32>
    %39 = arith.mulf %34, %38 : vector<2x16xf32>
    %40 = vector.extract_strided_slice %14 {offsets = [0, 0], sizes = [2, 16], strides = [1, 1]} : vector<2x64xf32> to vector<2x16xf32>
    %41 = arith.negf %40 : vector<2x16xf32>
    %42 = math.exp %41 : vector<2x16xf32>
    %cst_15 = arith.constant 1.000000e+00 : f32
    %43 = vector.broadcast %cst_15 : f32 to vector<2x16xf32>
    %44 = arith.addf %43, %42 : vector<2x16xf32>
    %45 = arith.divf %43, %44 : vector<2x16xf32>
    %46 = vector.extract_strided_slice %14 {offsets = [0, 16], sizes = [2, 16], strides = [1, 1]} : vector<2x64xf32> to vector<2x16xf32>
    %47 = arith.negf %46 : vector<2x16xf32>
    %48 = math.exp %47 : vector<2x16xf32>
    %cst_16 = arith.constant 1.000000e+00 : f32
    %49 = vector.broadcast %cst_16 : f32 to vector<2x16xf32>
    %50 = arith.addf %49, %48 : vector<2x16xf32>
    %51 = arith.divf %49, %50 : vector<2x16xf32>
    %52 = vector.extract_strided_slice %14 {offsets = [0, 32], sizes = [2, 16], strides = [1, 1]} : vector<2x64xf32> to vector<2x16xf32>
    %53 = math.tanh %52 : vector<2x16xf32>
    %54 = vector.extract_strided_slice %14 {offsets = [0, 48], sizes = [2, 16], strides = [1, 1]} : vector<2x64xf32> to vector<2x16xf32>
    %55 = arith.negf %54 : vector<2x16xf32>
    %56 = math.exp %55 : vector<2x16xf32>
    %cst_17 = arith.constant 1.000000e+00 : f32
    %57 = vector.broadcast %cst_17 : f32 to vector<2x16xf32>
    %58 = arith.addf %57, %56 : vector<2x16xf32>
    %59 = arith.divf %57, %58 : vector<2x16xf32>
    %60 = arith.mulf %51, %8 : vector<2x16xf32>
    %61 = arith.mulf %45, %53 : vector<2x16xf32>
    %62 = arith.addf %60, %61 : vector<2x16xf32>
    %63 = math.tanh %62 : vector<2x16xf32>
    %64 = arith.mulf %59, %63 : vector<2x16xf32>
    %c0_18 = arith.constant 0 : index
    %c0_19 = arith.constant 0 : index
    %65 = vector.load %arg5[%c0_18, %c0_19] : memref<16x32xf32, #tpu.memory_space<vmem>>, vector<2x16xf32>
    tpu.vector_store %arg5[%c0_18, %c0_19], %39 {strides = array<i32>} : memref<16x32xf32, #tpu.memory_space<vmem>>, vector<2x16xf32>,
    %c14 = arith.constant 14 : index
    %c16 = arith.constant 16 : index
    %66 = vector.load %arg5[%c14, %c16] : memref<16x32xf32, #tpu.memory_space<vmem>>, vector<2x16xf32>
    tpu.vector_store %arg5[%c14, %c16], %64 {strides = array<i32>} : memref<16x32xf32, #tpu.memory_space<vmem>>, vector<2x16xf32>,
    %67 = vector.extract_strided_slice %5 {offsets = [2, 0], sizes = [2, 64], strides = [1, 1]} : vector<16x128xf32> to vector<2x64xf32>
    %cst_20 = arith.constant dense<0.000000e+00> : vector<2x64xf32>
    %68 = tpu.matmul %39, %6, %cst_20 {dimension_numbers = #tpu.dot_dimension_numbers<[1], [0], [0], [1], [0, 0, 1, 1], [], []>} : vector<2x16xf32>, vector<16x64xf32>, vector<2x64xf32> -> vector<2x64xf32>
    %69 = arith.addf %67, %68 : vector<2x64xf32>
    %70 = vector.extract_strided_slice %5 {offsets = [12, 64], sizes = [2, 64], strides = [1, 1]} : vector<16x128xf32> to vector<2x64xf32>
    %cst_21 = arith.constant dense<0.000000e+00> : vector<2x64xf32>
    %71 = tpu.matmul %64, %7, %cst_21 {dimension_numbers = #tpu.dot_dimension_numbers<[1], [0], [0], [1], [0, 0, 1, 1], [], []>} : vector<2x16xf32>, vector<16x64xf32>, vector<2x64xf32> -> vector<2x64xf32>
    %72 = arith.addf %70, %71 : vector<2x64xf32>
    %73 = vector.extract_strided_slice %69 {offsets = [0, 0], sizes = [2, 16], strides = [1, 1]} : vector<2x64xf32> to vector<2x16xf32>
    %74 = arith.negf %73 : vector<2x16xf32>
    %75 = math.exp %74 : vector<2x16xf32>
    %cst_22 = arith.constant 1.000000e+00 : f32
    %76 = vector.broadcast %cst_22 : f32 to vector<2x16xf32>
    %77 = arith.addf %76, %75 : vector<2x16xf32>
    %78 = arith.divf %76, %77 : vector<2x16xf32>
    %79 = vector.extract_strided_slice %69 {offsets = [0, 16], sizes = [2, 16], strides = [1, 1]} : vector<2x64xf32> to vector<2x16xf32>
    %80 = arith.negf %79 : vector<2x16xf32>
    %81 = math.exp %80 : vector<2x16xf32>
    %cst_23 = arith.constant 1.000000e+00 : f32
    %82 = vector.broadcast %cst_23 : f32 to vector<2x16xf32>
    %83 = arith.addf %82, %81 : vector<2x16xf32>
    %84 = arith.divf %82, %83 : vector<2x16xf32>
    %85 = vector.extract_strided_slice %69 {offsets = [0, 32], sizes = [2, 16], strides = [1, 1]} : vector<2x64xf32> to vector<2x16xf32>
    %86 = math.tanh %85 : vector<2x16xf32>
    %87 = vector.extract_strided_slice %69 {offsets = [0, 48], sizes = [2, 16], strides = [1, 1]} : vector<2x64xf32> to vector<2x16xf32>
    %88 = arith.negf %87 : vector<2x16xf32>
    %89 = math.exp %88 : vector<2x16xf32>
    %cst_24 = arith.constant 1.000000e+00 : f32
    %90 = vector.broadcast %cst_24 : f32 to vector<2x16xf32>
    %91 = arith.addf %90, %89 : vector<2x16xf32>
    %92 = arith.divf %90, %91 : vector<2x16xf32>
    %93 = arith.mulf %84, %37 : vector<2x16xf32>
    %94 = arith.mulf %78, %86 : vector<2x16xf32>
    %95 = arith.addf %93, %94 : vector<2x16xf32>
    %96 = math.tanh %95 : vector<2x16xf32>
    %97 = arith.mulf %92, %96 : vector<2x16xf32>
    %98 = vector.extract_strided_slice %72 {offsets = [0, 0], sizes = [2, 16], strides = [1, 1]} : vector<2x64xf32> to vector<2x16xf32>
    %99 = arith.negf %98 : vector<2x16xf32>
    %100 = math.exp %99 : vector<2x16xf32>
    %cst_25 = arith.constant 1.000000e+00 : f32
    %101 = vector.broadcast %cst_25 : f32 to vector<2x16xf32>
    %102 = arith.addf %101, %100 : vector<2x16xf32>
    %103 = arith.divf %101, %102 : vector<2x16xf32>
    %104 = vector.extract_strided_slice %72 {offsets = [0, 16], sizes = [2, 16], strides = [1, 1]} : vector<2x64xf32> to vector<2x16xf32>
    %105 = arith.negf %104 : vector<2x16xf32>
    %106 = math.exp %105 : vector<2x16xf32>
    %cst_26 = arith.constant 1.000000e+00 : f32
    %107 = vector.broadcast %cst_26 : f32 to vector<2x16xf32>
    %108 = arith.addf %107, %106 : vector<2x16xf32>
    %109 = arith.divf %107, %108 : vector<2x16xf32>
    %110 = vector.extract_strided_slice %72 {offsets = [0, 32], sizes = [2, 16], strides = [1, 1]} : vector<2x64xf32> to vector<2x16xf32>
    %111 = math.tanh %110 : vector<2x16xf32>
    %112 = vector.extract_strided_slice %72 {offsets = [0, 48], sizes = [2, 16], strides = [1, 1]} : vector<2x64xf32> to vector<2x16xf32>
    %113 = arith.negf %112 : vector<2x16xf32>
    %114 = math.exp %113 : vector<2x16xf32>
    %cst_27 = arith.constant 1.000000e+00 : f32
    %115 = vector.broadcast %cst_27 : f32 to vector<2x16xf32>
    %116 = arith.addf %115, %114 : vector<2x16xf32>
    %117 = arith.divf %115, %116 : vector<2x16xf32>
    %118 = arith.mulf %109, %62 : vector<2x16xf32>
    %119 = arith.mulf %103, %111 : vector<2x16xf32>
    %120 = arith.addf %118, %119 : vector<2x16xf32>
    %121 = math.tanh %120 : vector<2x16xf32>
    %122 = arith.mulf %117, %121 : vector<2x16xf32>
    %c2 = arith.constant 2 : index
    %c0_28 = arith.constant 0 : index
    %123 = vector.load %arg5[%c2, %c0_28] : memref<16x32xf32, #tpu.memory_space<vmem>>, vector<2x16xf32>
    tpu.vector_store %arg5[%c2, %c0_28], %97 {strides = array<i32>} : memref<16x32xf32, #tpu.memory_space<vmem>>, vector<2x16xf32>,
    %c12 = arith.constant 12 : index
    %c16_29 = arith.constant 16 : index
    %124 = vector.load %arg5[%c12, %c16_29] : memref<16x32xf32, #tpu.memory_space<vmem>>, vector<2x16xf32>
    tpu.vector_store %arg5[%c12, %c16_29], %122 {strides = array<i32>} : memref<16x32xf32, #tpu.memory_space<vmem>>, vector<2x16xf32>,
    %125 = vector.extract_strided_slice %5 {offsets = [4, 0], sizes = [2, 64], strides = [1, 1]} : vector<16x128xf32> to vector<2x64xf32>
    %cst_30 = arith.constant dense<0.000000e+00> : vector<2x64xf32>
    %126 = tpu.matmul %97, %6, %cst_30 {dimension_numbers = #tpu.dot_dimension_numbers<[1], [0], [0], [1], [0, 0, 1, 1], [], []>} : vector<2x16xf32>, vector<16x64xf32>, vector<2x64xf32> -> vector<2x64xf32>
    %127 = arith.addf %125, %126 : vector<2x64xf32>
    %128 = vector.extract_strided_slice %5 {offsets = [10, 64], sizes = [2, 64], strides = [1, 1]} : vector<16x128xf32> to vector<2x64xf32>
    %cst_31 = arith.constant dense<0.000000e+00> : vector<2x64xf32>
    %129 = tpu.matmul %122, %7, %cst_31 {dimension_numbers = #tpu.dot_dimension_numbers<[1], [0], [0], [1], [0, 0, 1, 1], [], []>} : vector<2x16xf32>, vector<16x64xf32>, vector<2x64xf32> -> vector<2x64xf32>
    %130 = arith.addf %128, %129 : vector<2x64xf32>
    %131 = vector.extract_strided_slice %127 {offsets = [0, 0], sizes = [2, 16], strides = [1, 1]} : vector<2x64xf32> to vector<2x16xf32>
    %132 = arith.negf %131 : vector<2x16xf32>
    %133 = math.exp %132 : vector<2x16xf32>
    %cst_32 = arith.constant 1.000000e+00 : f32
    %134 = vector.broadcast %cst_32 : f32 to vector<2x16xf32>
    %135 = arith.addf %134, %133 : vector<2x16xf32>
    %136 = arith.divf %134, %135 : vector<2x16xf32>
    %137 = vector.extract_strided_slice %127 {offsets = [0, 16], sizes = [2, 16], strides = [1, 1]} : vector<2x64xf32> to vector<2x16xf32>
    %138 = arith.negf %137 : vector<2x16xf32>
    %139 = math.exp %138 : vector<2x16xf32>
    %cst_33 = arith.constant 1.000000e+00 : f32
    %140 = vector.broadcast %cst_33 : f32 to vector<2x16xf32>
    %141 = arith.addf %140, %139 : vector<2x16xf32>
    %142 = arith.divf %140, %141 : vector<2x16xf32>
    %143 = vector.extract_strided_slice %127 {offsets = [0, 32], sizes = [2, 16], strides = [1, 1]} : vector<2x64xf32> to vector<2x16xf32>
    %144 = math.tanh %143 : vector<2x16xf32>
    %145 = vector.extract_strided_slice %127 {offsets = [0, 48], sizes = [2, 16], strides = [1, 1]} : vector<2x64xf32> to vector<2x16xf32>
    %146 = arith.negf %145 : vector<2x16xf32>
    %147 = math.exp %146 : vector<2x16xf32>
    %cst_34 = arith.constant 1.000000e+00 : f32
    %148 = vector.broadcast %cst_34 : f32 to vector<2x16xf32>
    %149 = arith.addf %148, %147 : vector<2x16xf32>
    %150 = arith.divf %148, %149 : vector<2x16xf32>
    %151 = arith.mulf %142, %95 : vector<2x16xf32>
    %152 = arith.mulf %136, %144 : vector<2x16xf32>
    %153 = arith.addf %151, %152 : vector<2x16xf32>
    %154 = math.tanh %153 : vector<2x16xf32>
    %155 = arith.mulf %150, %154 : vector<2x16xf32>
    %156 = vector.extract_strided_slice %130 {offsets = [0, 0], sizes = [2, 16], strides = [1, 1]} : vector<2x64xf32> to vector<2x16xf32>
    %157 = arith.negf %156 : vector<2x16xf32>
    %158 = math.exp %157 : vector<2x16xf32>
    %cst_35 = arith.constant 1.000000e+00 : f32
    %159 = vector.broadcast %cst_35 : f32 to vector<2x16xf32>
    %160 = arith.addf %159, %158 : vector<2x16xf32>
    %161 = arith.divf %159, %160 : vector<2x16xf32>
    %162 = vector.extract_strided_slice %130 {offsets = [0, 16], sizes = [2, 16], strides = [1, 1]} : vector<2x64xf32> to vector<2x16xf32>
    %163 = arith.negf %162 : vector<2x16xf32>
    %164 = math.exp %163 : vector<2x16xf32>
    %cst_36 = arith.constant 1.000000e+00 : f32
    %165 = vector.broadcast %cst_36 : f32 to vector<2x16xf32>
    %166 = arith.addf %165, %164 : vector<2x16xf32>
    %167 = arith.divf %165, %166 : vector<2x16xf32>
    %168 = vector.extract_strided_slice %130 {offsets = [0, 32], sizes = [2, 16], strides = [1, 1]} : vector<2x64xf32> to vector<2x16xf32>
    %169 = math.tanh %168 : vector<2x16xf32>
    %170 = vector.extract_strided_slice %130 {offsets = [0, 48], sizes = [2, 16], strides = [1, 1]} : vector<2x64xf32> to vector<2x16xf32>
    %171 = arith.negf %170 : vector<2x16xf32>
    %172 = math.exp %171 : vector<2x16xf32>
    %cst_37 = arith.constant 1.000000e+00 : f32
    %173 = vector.broadcast %cst_37 : f32 to vector<2x16xf32>
    %174 = arith.addf %173, %172 : vector<2x16xf32>
    %175 = arith.divf %173, %174 : vector<2x16xf32>
    %176 = arith.mulf %167, %120 : vector<2x16xf32>
    %177 = arith.mulf %161, %169 : vector<2x16xf32>
    %178 = arith.addf %176, %177 : vector<2x16xf32>
    %179 = math.tanh %178 : vector<2x16xf32>
    %180 = arith.mulf %175, %179 : vector<2x16xf32>
    %c4 = arith.constant 4 : index
    %c0_38 = arith.constant 0 : index
    %181 = vector.load %arg5[%c4, %c0_38] : memref<16x32xf32, #tpu.memory_space<vmem>>, vector<2x16xf32>
    tpu.vector_store %arg5[%c4, %c0_38], %155 {strides = array<i32>} : memref<16x32xf32, #tpu.memory_space<vmem>>, vector<2x16xf32>,
    %c10 = arith.constant 10 : index
    %c16_39 = arith.constant 16 : index
    %182 = vector.load %arg5[%c10, %c16_39] : memref<16x32xf32, #tpu.memory_space<vmem>>, vector<2x16xf32>
    tpu.vector_store %arg5[%c10, %c16_39], %180 {strides = array<i32>} : memref<16x32xf32, #tpu.memory_space<vmem>>, vector<2x16xf32>,
    %183 = vector.extract_strided_slice %5 {offsets = [6, 0], sizes = [2, 64], strides = [1, 1]} : vector<16x128xf32> to vector<2x64xf32>
    %cst_40 = arith.constant dense<0.000000e+00> : vector<2x64xf32>
    %184 = tpu.matmul %155, %6, %cst_40 {dimension_numbers = #tpu.dot_dimension_numbers<[1], [0], [0], [1], [0, 0, 1, 1], [], []>} : vector<2x16xf32>, vector<16x64xf32>, vector<2x64xf32> -> vector<2x64xf32>
    %185 = arith.addf %183, %184 : vector<2x64xf32>
    %186 = vector.extract_strided_slice %5 {offsets = [8, 64], sizes = [2, 64], strides = [1, 1]} : vector<16x128xf32> to vector<2x64xf32>
    %cst_41 = arith.constant dense<0.000000e+00> : vector<2x64xf32>
    %187 = tpu.matmul %180, %7, %cst_41 {dimension_numbers = #tpu.dot_dimension_numbers<[1], [0], [0], [1], [0, 0, 1, 1], [], []>} : vector<2x16xf32>, vector<16x64xf32>, vector<2x64xf32> -> vector<2x64xf32>
    %188 = arith.addf %186, %187 : vector<2x64xf32>
    %189 = vector.extract_strided_slice %185 {offsets = [0, 0], sizes = [2, 16], strides = [1, 1]} : vector<2x64xf32> to vector<2x16xf32>
    %190 = arith.negf %189 : vector<2x16xf32>
    %191 = math.exp %190 : vector<2x16xf32>
    %cst_42 = arith.constant 1.000000e+00 : f32
    %192 = vector.broadcast %cst_42 : f32 to vector<2x16xf32>
    %193 = arith.addf %192, %191 : vector<2x16xf32>
    %194 = arith.divf %192, %193 : vector<2x16xf32>
    %195 = vector.extract_strided_slice %185 {offsets = [0, 16], sizes = [2, 16], strides = [1, 1]} : vector<2x64xf32> to vector<2x16xf32>
    %196 = arith.negf %195 : vector<2x16xf32>
    %197 = math.exp %196 : vector<2x16xf32>
    %cst_43 = arith.constant 1.000000e+00 : f32
    %198 = vector.broadcast %cst_43 : f32 to vector<2x16xf32>
    %199 = arith.addf %198, %197 : vector<2x16xf32>
    %200 = arith.divf %198, %199 : vector<2x16xf32>
    %201 = vector.extract_strided_slice %185 {offsets = [0, 32], sizes = [2, 16], strides = [1, 1]} : vector<2x64xf32> to vector<2x16xf32>
    %202 = math.tanh %201 : vector<2x16xf32>
    %203 = vector.extract_strided_slice %185 {offsets = [0, 48], sizes = [2, 16], strides = [1, 1]} : vector<2x64xf32> to vector<2x16xf32>
    %204 = arith.negf %203 : vector<2x16xf32>
    %205 = math.exp %204 : vector<2x16xf32>
    %cst_44 = arith.constant 1.000000e+00 : f32
    %206 = vector.broadcast %cst_44 : f32 to vector<2x16xf32>
    %207 = arith.addf %206, %205 : vector<2x16xf32>
    %208 = arith.divf %206, %207 : vector<2x16xf32>
    %209 = arith.mulf %200, %153 : vector<2x16xf32>
    %210 = arith.mulf %194, %202 : vector<2x16xf32>
    %211 = arith.addf %209, %210 : vector<2x16xf32>
    %212 = math.tanh %211 : vector<2x16xf32>
    %213 = arith.mulf %208, %212 : vector<2x16xf32>
    %214 = vector.extract_strided_slice %188 {offsets = [0, 0], sizes = [2, 16], strides = [1, 1]} : vector<2x64xf32> to vector<2x16xf32>
    %215 = arith.negf %214 : vector<2x16xf32>
    %216 = math.exp %215 : vector<2x16xf32>
    %cst_45 = arith.constant 1.000000e+00 : f32
    %217 = vector.broadcast %cst_45 : f32 to vector<2x16xf32>
    %218 = arith.addf %217, %216 : vector<2x16xf32>
    %219 = arith.divf %217, %218 : vector<2x16xf32>
    %220 = vector.extract_strided_slice %188 {offsets = [0, 16], sizes = [2, 16], strides = [1, 1]} : vector<2x64xf32> to vector<2x16xf32>
    %221 = arith.negf %220 : vector<2x16xf32>
    %222 = math.exp %221 : vector<2x16xf32>
    %cst_46 = arith.constant 1.000000e+00 : f32
    %223 = vector.broadcast %cst_46 : f32 to vector<2x16xf32>
    %224 = arith.addf %223, %222 : vector<2x16xf32>
    %225 = arith.divf %223, %224 : vector<2x16xf32>
    %226 = vector.extract_strided_slice %188 {offsets = [0, 32], sizes = [2, 16], strides = [1, 1]} : vector<2x64xf32> to vector<2x16xf32>
    %227 = math.tanh %226 : vector<2x16xf32>
    %228 = vector.extract_strided_slice %188 {offsets = [0, 48], sizes = [2, 16], strides = [1, 1]} : vector<2x64xf32> to vector<2x16xf32>
    %229 = arith.negf %228 : vector<2x16xf32>
    %230 = math.exp %229 : vector<2x16xf32>
    %cst_47 = arith.constant 1.000000e+00 : f32
    %231 = vector.broadcast %cst_47 : f32 to vector<2x16xf32>
    %232 = arith.addf %231, %230 : vector<2x16xf32>
    %233 = arith.divf %231, %232 : vector<2x16xf32>
    %234 = arith.mulf %225, %178 : vector<2x16xf32>
    %235 = arith.mulf %219, %227 : vector<2x16xf32>
    %236 = arith.addf %234, %235 : vector<2x16xf32>
    %237 = math.tanh %236 : vector<2x16xf32>
    %238 = arith.mulf %233, %237 : vector<2x16xf32>
    %c6 = arith.constant 6 : index
    %c0_48 = arith.constant 0 : index
    %239 = vector.load %arg5[%c6, %c0_48] : memref<16x32xf32, #tpu.memory_space<vmem>>, vector<2x16xf32>
    tpu.vector_store %arg5[%c6, %c0_48], %213 {strides = array<i32>} : memref<16x32xf32, #tpu.memory_space<vmem>>, vector<2x16xf32>,
    %c8 = arith.constant 8 : index
    %c16_49 = arith.constant 16 : index
    %240 = vector.load %arg5[%c8, %c16_49] : memref<16x32xf32, #tpu.memory_space<vmem>>, vector<2x16xf32>
    tpu.vector_store %arg5[%c8, %c16_49], %238 {strides = array<i32>} : memref<16x32xf32, #tpu.memory_space<vmem>>, vector<2x16xf32>,
    %241 = vector.extract_strided_slice %5 {offsets = [8, 0], sizes = [2, 64], strides = [1, 1]} : vector<16x128xf32> to vector<2x64xf32>
    %cst_50 = arith.constant dense<0.000000e+00> : vector<2x64xf32>
    %242 = tpu.matmul %213, %6, %cst_50 {dimension_numbers = #tpu.dot_dimension_numbers<[1], [0], [0], [1], [0, 0, 1, 1], [], []>} : vector<2x16xf32>, vector<16x64xf32>, vector<2x64xf32> -> vector<2x64xf32>
    %243 = arith.addf %241, %242 : vector<2x64xf32>
    %244 = vector.extract_strided_slice %5 {offsets = [6, 64], sizes = [2, 64], strides = [1, 1]} : vector<16x128xf32> to vector<2x64xf32>
    %cst_51 = arith.constant dense<0.000000e+00> : vector<2x64xf32>
    %245 = tpu.matmul %238, %7, %cst_51 {dimension_numbers = #tpu.dot_dimension_numbers<[1], [0], [0], [1], [0, 0, 1, 1], [], []>} : vector<2x16xf32>, vector<16x64xf32>, vector<2x64xf32> -> vector<2x64xf32>
    %246 = arith.addf %244, %245 : vector<2x64xf32>
    %247 = vector.extract_strided_slice %243 {offsets = [0, 0], sizes = [2, 16], strides = [1, 1]} : vector<2x64xf32> to vector<2x16xf32>
    %248 = arith.negf %247 : vector<2x16xf32>
    %249 = math.exp %248 : vector<2x16xf32>
    %cst_52 = arith.constant 1.000000e+00 : f32
    %250 = vector.broadcast %cst_52 : f32 to vector<2x16xf32>
    %251 = arith.addf %250, %249 : vector<2x16xf32>
    %252 = arith.divf %250, %251 : vector<2x16xf32>
    %253 = vector.extract_strided_slice %243 {offsets = [0, 16], sizes = [2, 16], strides = [1, 1]} : vector<2x64xf32> to vector<2x16xf32>
    %254 = arith.negf %253 : vector<2x16xf32>
    %255 = math.exp %254 : vector<2x16xf32>
    %cst_53 = arith.constant 1.000000e+00 : f32
    %256 = vector.broadcast %cst_53 : f32 to vector<2x16xf32>
    %257 = arith.addf %256, %255 : vector<2x16xf32>
    %258 = arith.divf %256, %257 : vector<2x16xf32>
    %259 = vector.extract_strided_slice %243 {offsets = [0, 32], sizes = [2, 16], strides = [1, 1]} : vector<2x64xf32> to vector<2x16xf32>
    %260 = math.tanh %259 : vector<2x16xf32>
    %261 = vector.extract_strided_slice %243 {offsets = [0, 48], sizes = [2, 16], strides = [1, 1]} : vector<2x64xf32> to vector<2x16xf32>
    %262 = arith.negf %261 : vector<2x16xf32>
    %263 = math.exp %262 : vector<2x16xf32>
    %cst_54 = arith.constant 1.000000e+00 : f32
    %264 = vector.broadcast %cst_54 : f32 to vector<2x16xf32>
    %265 = arith.addf %264, %263 : vector<2x16xf32>
    %266 = arith.divf %264, %265 : vector<2x16xf32>
    %267 = arith.mulf %258, %211 : vector<2x16xf32>
    %268 = arith.mulf %252, %260 : vector<2x16xf32>
    %269 = arith.addf %267, %268 : vector<2x16xf32>
    %270 = math.tanh %269 : vector<2x16xf32>
    %271 = arith.mulf %266, %270 : vector<2x16xf32>
    %272 = vector.extract_strided_slice %246 {offsets = [0, 0], sizes = [2, 16], strides = [1, 1]} : vector<2x64xf32> to vector<2x16xf32>
    %273 = arith.negf %272 : vector<2x16xf32>
    %274 = math.exp %273 : vector<2x16xf32>
    %cst_55 = arith.constant 1.000000e+00 : f32
    %275 = vector.broadcast %cst_55 : f32 to vector<2x16xf32>
    %276 = arith.addf %275, %274 : vector<2x16xf32>
    %277 = arith.divf %275, %276 : vector<2x16xf32>
    %278 = vector.extract_strided_slice %246 {offsets = [0, 16], sizes = [2, 16], strides = [1, 1]} : vector<2x64xf32> to vector<2x16xf32>
    %279 = arith.negf %278 : vector<2x16xf32>
    %280 = math.exp %279 : vector<2x16xf32>
    %cst_56 = arith.constant 1.000000e+00 : f32
    %281 = vector.broadcast %cst_56 : f32 to vector<2x16xf32>
    %282 = arith.addf %281, %280 : vector<2x16xf32>
    %283 = arith.divf %281, %282 : vector<2x16xf32>
    %284 = vector.extract_strided_slice %246 {offsets = [0, 32], sizes = [2, 16], strides = [1, 1]} : vector<2x64xf32> to vector<2x16xf32>
    %285 = math.tanh %284 : vector<2x16xf32>
    %286 = vector.extract_strided_slice %246 {offsets = [0, 48], sizes = [2, 16], strides = [1, 1]} : vector<2x64xf32> to vector<2x16xf32>
    %287 = arith.negf %286 : vector<2x16xf32>
    %288 = math.exp %287 : vector<2x16xf32>
    %cst_57 = arith.constant 1.000000e+00 : f32
    %289 = vector.broadcast %cst_57 : f32 to vector<2x16xf32>
    %290 = arith.addf %289, %288 : vector<2x16xf32>
    %291 = arith.divf %289, %290 : vector<2x16xf32>
    %292 = arith.mulf %283, %236 : vector<2x16xf32>
    %293 = arith.mulf %277, %285 : vector<2x16xf32>
    %294 = arith.addf %292, %293 : vector<2x16xf32>
    %295 = math.tanh %294 : vector<2x16xf32>
    %296 = arith.mulf %291, %295 : vector<2x16xf32>
    %c8_58 = arith.constant 8 : index
    %c0_59 = arith.constant 0 : index
    %297 = vector.load %arg5[%c8_58, %c0_59] : memref<16x32xf32, #tpu.memory_space<vmem>>, vector<2x16xf32>
    tpu.vector_store %arg5[%c8_58, %c0_59], %271 {strides = array<i32>} : memref<16x32xf32, #tpu.memory_space<vmem>>, vector<2x16xf32>,
    %c6_60 = arith.constant 6 : index
    %c16_61 = arith.constant 16 : index
    %298 = vector.load %arg5[%c6_60, %c16_61] : memref<16x32xf32, #tpu.memory_space<vmem>>, vector<2x16xf32>
    tpu.vector_store %arg5[%c6_60, %c16_61], %296 {strides = array<i32>} : memref<16x32xf32, #tpu.memory_space<vmem>>, vector<2x16xf32>,
    %299 = vector.extract_strided_slice %5 {offsets = [10, 0], sizes = [2, 64], strides = [1, 1]} : vector<16x128xf32> to vector<2x64xf32>
    %cst_62 = arith.constant dense<0.000000e+00> : vector<2x64xf32>
    %300 = tpu.matmul %271, %6, %cst_62 {dimension_numbers = #tpu.dot_dimension_numbers<[1], [0], [0], [1], [0, 0, 1, 1], [], []>} : vector<2x16xf32>, vector<16x64xf32>, vector<2x64xf32> -> vector<2x64xf32>
    %301 = arith.addf %299, %300 : vector<2x64xf32>
    %302 = vector.extract_strided_slice %5 {offsets = [4, 64], sizes = [2, 64], strides = [1, 1]} : vector<16x128xf32> to vector<2x64xf32>
    %cst_63 = arith.constant dense<0.000000e+00> : vector<2x64xf32>
    %303 = tpu.matmul %296, %7, %cst_63 {dimension_numbers = #tpu.dot_dimension_numbers<[1], [0], [0], [1], [0, 0, 1, 1], [], []>} : vector<2x16xf32>, vector<16x64xf32>, vector<2x64xf32> -> vector<2x64xf32>
    %304 = arith.addf %302, %303 : vector<2x64xf32>
    %305 = vector.extract_strided_slice %301 {offsets = [0, 0], sizes = [2, 16], strides = [1, 1]} : vector<2x64xf32> to vector<2x16xf32>
    %306 = arith.negf %305 : vector<2x16xf32>
    %307 = math.exp %306 : vector<2x16xf32>
    %cst_64 = arith.constant 1.000000e+00 : f32
    %308 = vector.broadcast %cst_64 : f32 to vector<2x16xf32>
    %309 = arith.addf %308, %307 : vector<2x16xf32>
    %310 = arith.divf %308, %309 : vector<2x16xf32>
    %311 = vector.extract_strided_slice %301 {offsets = [0, 16], sizes = [2, 16], strides = [1, 1]} : vector<2x64xf32> to vector<2x16xf32>
    %312 = arith.negf %311 : vector<2x16xf32>
    %313 = math.exp %312 : vector<2x16xf32>
    %cst_65 = arith.constant 1.000000e+00 : f32
    %314 = vector.broadcast %cst_65 : f32 to vector<2x16xf32>
    %315 = arith.addf %314, %313 : vector<2x16xf32>
    %316 = arith.divf %314, %315 : vector<2x16xf32>
    %317 = vector.extract_strided_slice %301 {offsets = [0, 32], sizes = [2, 16], strides = [1, 1]} : vector<2x64xf32> to vector<2x16xf32>
    %318 = math.tanh %317 : vector<2x16xf32>
    %319 = vector.extract_strided_slice %301 {offsets = [0, 48], sizes = [2, 16], strides = [1, 1]} : vector<2x64xf32> to vector<2x16xf32>
    %320 = arith.negf %319 : vector<2x16xf32>
    %321 = math.exp %320 : vector<2x16xf32>
    %cst_66 = arith.constant 1.000000e+00 : f32
    %322 = vector.broadcast %cst_66 : f32 to vector<2x16xf32>
    %323 = arith.addf %322, %321 : vector<2x16xf32>
    %324 = arith.divf %322, %323 : vector<2x16xf32>
    %325 = arith.mulf %316, %269 : vector<2x16xf32>
    %326 = arith.mulf %310, %318 : vector<2x16xf32>
    %327 = arith.addf %325, %326 : vector<2x16xf32>
    %328 = math.tanh %327 : vector<2x16xf32>
    %329 = arith.mulf %324, %328 : vector<2x16xf32>
    %330 = vector.extract_strided_slice %304 {offsets = [0, 0], sizes = [2, 16], strides = [1, 1]} : vector<2x64xf32> to vector<2x16xf32>
    %331 = arith.negf %330 : vector<2x16xf32>
    %332 = math.exp %331 : vector<2x16xf32>
    %cst_67 = arith.constant 1.000000e+00 : f32
    %333 = vector.broadcast %cst_67 : f32 to vector<2x16xf32>
    %334 = arith.addf %333, %332 : vector<2x16xf32>
    %335 = arith.divf %333, %334 : vector<2x16xf32>
    %336 = vector.extract_strided_slice %304 {offsets = [0, 16], sizes = [2, 16], strides = [1, 1]} : vector<2x64xf32> to vector<2x16xf32>
    %337 = arith.negf %336 : vector<2x16xf32>
    %338 = math.exp %337 : vector<2x16xf32>
    %cst_68 = arith.constant 1.000000e+00 : f32
    %339 = vector.broadcast %cst_68 : f32 to vector<2x16xf32>
    %340 = arith.addf %339, %338 : vector<2x16xf32>
    %341 = arith.divf %339, %340 : vector<2x16xf32>
    %342 = vector.extract_strided_slice %304 {offsets = [0, 32], sizes = [2, 16], strides = [1, 1]} : vector<2x64xf32> to vector<2x16xf32>
    %343 = math.tanh %342 : vector<2x16xf32>
    %344 = vector.extract_strided_slice %304 {offsets = [0, 48], sizes = [2, 16], strides = [1, 1]} : vector<2x64xf32> to vector<2x16xf32>
    %345 = arith.negf %344 : vector<2x16xf32>
    %346 = math.exp %345 : vector<2x16xf32>
    %cst_69 = arith.constant 1.000000e+00 : f32
    %347 = vector.broadcast %cst_69 : f32 to vector<2x16xf32>
    %348 = arith.addf %347, %346 : vector<2x16xf32>
    %349 = arith.divf %347, %348 : vector<2x16xf32>
    %350 = arith.mulf %341, %294 : vector<2x16xf32>
    %351 = arith.mulf %335, %343 : vector<2x16xf32>
    %352 = arith.addf %350, %351 : vector<2x16xf32>
    %353 = math.tanh %352 : vector<2x16xf32>
    %354 = arith.mulf %349, %353 : vector<2x16xf32>
    %c10_70 = arith.constant 10 : index
    %c0_71 = arith.constant 0 : index
    %355 = vector.load %arg5[%c10_70, %c0_71] : memref<16x32xf32, #tpu.memory_space<vmem>>, vector<2x16xf32>
    tpu.vector_store %arg5[%c10_70, %c0_71], %329 {strides = array<i32>} : memref<16x32xf32, #tpu.memory_space<vmem>>, vector<2x16xf32>,
    %c4_72 = arith.constant 4 : index
    %c16_73 = arith.constant 16 : index
    %356 = vector.load %arg5[%c4_72, %c16_73] : memref<16x32xf32, #tpu.memory_space<vmem>>, vector<2x16xf32>
    tpu.vector_store %arg5[%c4_72, %c16_73], %354 {strides = array<i32>} : memref<16x32xf32, #tpu.memory_space<vmem>>, vector<2x16xf32>,
    %357 = vector.extract_strided_slice %5 {offsets = [12, 0], sizes = [2, 64], strides = [1, 1]} : vector<16x128xf32> to vector<2x64xf32>
    %cst_74 = arith.constant dense<0.000000e+00> : vector<2x64xf32>
    %358 = tpu.matmul %329, %6, %cst_74 {dimension_numbers = #tpu.dot_dimension_numbers<[1], [0], [0], [1], [0, 0, 1, 1], [], []>} : vector<2x16xf32>, vector<16x64xf32>, vector<2x64xf32> -> vector<2x64xf32>
    %359 = arith.addf %357, %358 : vector<2x64xf32>
    %360 = vector.extract_strided_slice %5 {offsets = [2, 64], sizes = [2, 64], strides = [1, 1]} : vector<16x128xf32> to vector<2x64xf32>
    %cst_75 = arith.constant dense<0.000000e+00> : vector<2x64xf32>
    %361 = tpu.matmul %354, %7, %cst_75 {dimension_numbers = #tpu.dot_dimension_numbers<[1], [0], [0], [1], [0, 0, 1, 1], [], []>} : vector<2x16xf32>, vector<16x64xf32>, vector<2x64xf32> -> vector<2x64xf32>
    %362 = arith.addf %360, %361 : vector<2x64xf32>
    %363 = vector.extract_strided_slice %359 {offsets = [0, 0], sizes = [2, 16], strides = [1, 1]} : vector<2x64xf32> to vector<2x16xf32>
    %364 = arith.negf %363 : vector<2x16xf32>
    %365 = math.exp %364 : vector<2x16xf32>
    %cst_76 = arith.constant 1.000000e+00 : f32
    %366 = vector.broadcast %cst_76 : f32 to vector<2x16xf32>
    %367 = arith.addf %366, %365 : vector<2x16xf32>
    %368 = arith.divf %366, %367 : vector<2x16xf32>
    %369 = vector.extract_strided_slice %359 {offsets = [0, 16], sizes = [2, 16], strides = [1, 1]} : vector<2x64xf32> to vector<2x16xf32>
    %370 = arith.negf %369 : vector<2x16xf32>
    %371 = math.exp %370 : vector<2x16xf32>
    %cst_77 = arith.constant 1.000000e+00 : f32
    %372 = vector.broadcast %cst_77 : f32 to vector<2x16xf32>
    %373 = arith.addf %372, %371 : vector<2x16xf32>
    %374 = arith.divf %372, %373 : vector<2x16xf32>
    %375 = vector.extract_strided_slice %359 {offsets = [0, 32], sizes = [2, 16], strides = [1, 1]} : vector<2x64xf32> to vector<2x16xf32>
    %376 = math.tanh %375 : vector<2x16xf32>
    %377 = vector.extract_strided_slice %359 {offsets = [0, 48], sizes = [2, 16], strides = [1, 1]} : vector<2x64xf32> to vector<2x16xf32>
    %378 = arith.negf %377 : vector<2x16xf32>
    %379 = math.exp %378 : vector<2x16xf32>
    %cst_78 = arith.constant 1.000000e+00 : f32
    %380 = vector.broadcast %cst_78 : f32 to vector<2x16xf32>
    %381 = arith.addf %380, %379 : vector<2x16xf32>
    %382 = arith.divf %380, %381 : vector<2x16xf32>
    %383 = arith.mulf %374, %327 : vector<2x16xf32>
    %384 = arith.mulf %368, %376 : vector<2x16xf32>
    %385 = arith.addf %383, %384 : vector<2x16xf32>
    %386 = math.tanh %385 : vector<2x16xf32>
    %387 = arith.mulf %382, %386 : vector<2x16xf32>
    %388 = vector.extract_strided_slice %362 {offsets = [0, 0], sizes = [2, 16], strides = [1, 1]} : vector<2x64xf32> to vector<2x16xf32>
    %389 = arith.negf %388 : vector<2x16xf32>
    %390 = math.exp %389 : vector<2x16xf32>
    %cst_79 = arith.constant 1.000000e+00 : f32
    %391 = vector.broadcast %cst_79 : f32 to vector<2x16xf32>
    %392 = arith.addf %391, %390 : vector<2x16xf32>
    %393 = arith.divf %391, %392 : vector<2x16xf32>
    %394 = vector.extract_strided_slice %362 {offsets = [0, 16], sizes = [2, 16], strides = [1, 1]} : vector<2x64xf32> to vector<2x16xf32>
    %395 = arith.negf %394 : vector<2x16xf32>
    %396 = math.exp %395 : vector<2x16xf32>
    %cst_80 = arith.constant 1.000000e+00 : f32
    %397 = vector.broadcast %cst_80 : f32 to vector<2x16xf32>
    %398 = arith.addf %397, %396 : vector<2x16xf32>
    %399 = arith.divf %397, %398 : vector<2x16xf32>
    %400 = vector.extract_strided_slice %362 {offsets = [0, 32], sizes = [2, 16], strides = [1, 1]} : vector<2x64xf32> to vector<2x16xf32>
    %401 = math.tanh %400 : vector<2x16xf32>
    %402 = vector.extract_strided_slice %362 {offsets = [0, 48], sizes = [2, 16], strides = [1, 1]} : vector<2x64xf32> to vector<2x16xf32>
    %403 = arith.negf %402 : vector<2x16xf32>
    %404 = math.exp %403 : vector<2x16xf32>
    %cst_81 = arith.constant 1.000000e+00 : f32
    %405 = vector.broadcast %cst_81 : f32 to vector<2x16xf32>
    %406 = arith.addf %405, %404 : vector<2x16xf32>
    %407 = arith.divf %405, %406 : vector<2x16xf32>
    %408 = arith.mulf %399, %352 : vector<2x16xf32>
    %409 = arith.mulf %393, %401 : vector<2x16xf32>
    %410 = arith.addf %408, %409 : vector<2x16xf32>
    %411 = math.tanh %410 : vector<2x16xf32>
    %412 = arith.mulf %407, %411 : vector<2x16xf32>
    %c12_82 = arith.constant 12 : index
    %c0_83 = arith.constant 0 : index
    %413 = vector.load %arg5[%c12_82, %c0_83] : memref<16x32xf32, #tpu.memory_space<vmem>>, vector<2x16xf32>
    tpu.vector_store %arg5[%c12_82, %c0_83], %387 {strides = array<i32>} : memref<16x32xf32, #tpu.memory_space<vmem>>, vector<2x16xf32>,
    %c2_84 = arith.constant 2 : index
    %c16_85 = arith.constant 16 : index
    %414 = vector.load %arg5[%c2_84, %c16_85] : memref<16x32xf32, #tpu.memory_space<vmem>>, vector<2x16xf32>
    tpu.vector_store %arg5[%c2_84, %c16_85], %412 {strides = array<i32>} : memref<16x32xf32, #tpu.memory_space<vmem>>, vector<2x16xf32>,
    %415 = vector.extract_strided_slice %5 {offsets = [14, 0], sizes = [2, 64], strides = [1, 1]} : vector<16x128xf32> to vector<2x64xf32>
    %cst_86 = arith.constant dense<0.000000e+00> : vector<2x64xf32>
    %416 = tpu.matmul %387, %6, %cst_86 {dimension_numbers = #tpu.dot_dimension_numbers<[1], [0], [0], [1], [0, 0, 1, 1], [], []>} : vector<2x16xf32>, vector<16x64xf32>, vector<2x64xf32> -> vector<2x64xf32>
    %417 = arith.addf %415, %416 : vector<2x64xf32>
    %418 = vector.extract_strided_slice %5 {offsets = [0, 64], sizes = [2, 64], strides = [1, 1]} : vector<16x128xf32> to vector<2x64xf32>
    %cst_87 = arith.constant dense<0.000000e+00> : vector<2x64xf32>
    %419 = tpu.matmul %412, %7, %cst_87 {dimension_numbers = #tpu.dot_dimension_numbers<[1], [0], [0], [1], [0, 0, 1, 1], [], []>} : vector<2x16xf32>, vector<16x64xf32>, vector<2x64xf32> -> vector<2x64xf32>
    %420 = arith.addf %418, %419 : vector<2x64xf32>
    %421 = vector.extract_strided_slice %417 {offsets = [0, 0], sizes = [2, 16], strides = [1, 1]} : vector<2x64xf32> to vector<2x16xf32>
    %422 = arith.negf %421 : vector<2x16xf32>
    %423 = math.exp %422 : vector<2x16xf32>
    %cst_88 = arith.constant 1.000000e+00 : f32
    %424 = vector.broadcast %cst_88 : f32 to vector<2x16xf32>
    %425 = arith.addf %424, %423 : vector<2x16xf32>
    %426 = arith.divf %424, %425 : vector<2x16xf32>
    %427 = vector.extract_strided_slice %417 {offsets = [0, 16], sizes = [2, 16], strides = [1, 1]} : vector<2x64xf32> to vector<2x16xf32>
    %428 = arith.negf %427 : vector<2x16xf32>
    %429 = math.exp %428 : vector<2x16xf32>
    %cst_89 = arith.constant 1.000000e+00 : f32
    %430 = vector.broadcast %cst_89 : f32 to vector<2x16xf32>
    %431 = arith.addf %430, %429 : vector<2x16xf32>
    %432 = arith.divf %430, %431 : vector<2x16xf32>
    %433 = vector.extract_strided_slice %417 {offsets = [0, 32], sizes = [2, 16], strides = [1, 1]} : vector<2x64xf32> to vector<2x16xf32>
    %434 = math.tanh %433 : vector<2x16xf32>
    %435 = vector.extract_strided_slice %417 {offsets = [0, 48], sizes = [2, 16], strides = [1, 1]} : vector<2x64xf32> to vector<2x16xf32>
    %436 = arith.negf %435 : vector<2x16xf32>
    %437 = math.exp %436 : vector<2x16xf32>
    %cst_90 = arith.constant 1.000000e+00 : f32
    %438 = vector.broadcast %cst_90 : f32 to vector<2x16xf32>
    %439 = arith.addf %438, %437 : vector<2x16xf32>
    %440 = arith.divf %438, %439 : vector<2x16xf32>
    %441 = arith.mulf %432, %385 : vector<2x16xf32>
    %442 = arith.mulf %426, %434 : vector<2x16xf32>
    %443 = arith.addf %441, %442 : vector<2x16xf32>
    %444 = math.tanh %443 : vector<2x16xf32>
    %445 = arith.mulf %440, %444 : vector<2x16xf32>
    %446 = vector.extract_strided_slice %420 {offsets = [0, 0], sizes = [2, 16], strides = [1, 1]} : vector<2x64xf32> to vector<2x16xf32>
    %447 = arith.negf %446 : vector<2x16xf32>
    %448 = math.exp %447 : vector<2x16xf32>
    %cst_91 = arith.constant 1.000000e+00 : f32
    %449 = vector.broadcast %cst_91 : f32 to vector<2x16xf32>
    %450 = arith.addf %449, %448 : vector<2x16xf32>
    %451 = arith.divf %449, %450 : vector<2x16xf32>
    %452 = vector.extract_strided_slice %420 {offsets = [0, 16], sizes = [2, 16], strides = [1, 1]} : vector<2x64xf32> to vector<2x16xf32>
    %453 = arith.negf %452 : vector<2x16xf32>
    %454 = math.exp %453 : vector<2x16xf32>
    %cst_92 = arith.constant 1.000000e+00 : f32
    %455 = vector.broadcast %cst_92 : f32 to vector<2x16xf32>
    %456 = arith.addf %455, %454 : vector<2x16xf32>
    %457 = arith.divf %455, %456 : vector<2x16xf32>
    %458 = vector.extract_strided_slice %420 {offsets = [0, 32], sizes = [2, 16], strides = [1, 1]} : vector<2x64xf32> to vector<2x16xf32>
    %459 = math.tanh %458 : vector<2x16xf32>
    %460 = vector.extract_strided_slice %420 {offsets = [0, 48], sizes = [2, 16], strides = [1, 1]} : vector<2x64xf32> to vector<2x16xf32>
    %461 = arith.negf %460 : vector<2x16xf32>
    %462 = math.exp %461 : vector<2x16xf32>
    %cst_93 = arith.constant 1.000000e+00 : f32
    %463 = vector.broadcast %cst_93 : f32 to vector<2x16xf32>
    %464 = arith.addf %463, %462 : vector<2x16xf32>
    %465 = arith.divf %463, %464 : vector<2x16xf32>
    %466 = arith.mulf %457, %410 : vector<2x16xf32>
    %467 = arith.mulf %451, %459 : vector<2x16xf32>
    %468 = arith.addf %466, %467 : vector<2x16xf32>
    %469 = math.tanh %468 : vector<2x16xf32>
    %470 = arith.mulf %465, %469 : vector<2x16xf32>
    %c14_94 = arith.constant 14 : index
    %c0_95 = arith.constant 0 : index
    %471 = vector.load %arg5[%c14_94, %c0_95] : memref<16x32xf32, #tpu.memory_space<vmem>>, vector<2x16xf32>
    tpu.vector_store %arg5[%c14_94, %c0_95], %445 {strides = array<i32>} : memref<16x32xf32, #tpu.memory_space<vmem>>, vector<2x16xf32>,
    %c0_96 = arith.constant 0 : index
    %c16_97 = arith.constant 16 : index
    %472 = vector.load %arg5[%c0_96, %c16_97] : memref<16x32xf32, #tpu.memory_space<vmem>>, vector<2x16xf32>
    tpu.vector_store %arg5[%c0_96, %c16_97], %470 {strides = array<i32>} : memref<16x32xf32, #tpu.memory_space<vmem>>, vector<2x16xf32>,
    return
  }
}

module attributes {stable_mosaic.version = 11 : i64} {
  func.func @_mixer_head_kernel(%arg0: i32, %arg1: memref<16x32xf32, #tpu.memory_space<vmem>>, %arg2: memref<2x1x32xf32, #tpu.memory_space<vmem>>, %arg3: memref<2x1x32xf32, #tpu.memory_space<vmem>>, %arg4: memref<2x64x8xf32, #tpu.memory_space<vmem>>, %arg5: memref<2x64x1xf32, #tpu.memory_space<vmem>>, %arg6: memref<2x8x64xf32, #tpu.memory_space<vmem>>, %arg7: memref<2x8x1xf32, #tpu.memory_space<vmem>>, %arg8: memref<2x1x32xf32, #tpu.memory_space<vmem>>, %arg9: memref<2x1x32xf32, #tpu.memory_space<vmem>>, %arg10: memref<2x32x64xf32, #tpu.memory_space<vmem>>, %arg11: memref<2x1x64xf32, #tpu.memory_space<vmem>>, %arg12: memref<2x64x32xf32, #tpu.memory_space<vmem>>, %arg13: memref<2x1x32xf32, #tpu.memory_space<vmem>>, %arg14: memref<1x32xf32, #tpu.memory_space<vmem>>, %arg15: memref<1x32xf32, #tpu.memory_space<vmem>>, %arg16: memref<32x128xf32, #tpu.memory_space<vmem>>, %arg17: memref<1x128xf32, #tpu.memory_space<vmem>>, %arg18: memref<128x128xf32, #tpu.memory_space<vmem>>, %arg19: memref<1x128xf32, #tpu.memory_space<vmem>>, %arg20: memref<2x128xf32, #tpu.memory_space<vmem>>) attributes {dimension_semantics = [#tpu.dimension_semantics<parallel>], iteration_bounds = array<i64: 1>, scalar_prefetch = 0 : i64, scratch_operands = 0 : i64, tpu.core_type = #tpu.core_type<tc>, window_params = [{transform_indices = @transform_0, window_bounds = array<i64: 16, 32>}, {pipeline_mode = #tpu.pipeline_mode<synchronous>, transform_indices = @transform_1, window_bounds = array<i64: 2, 1, 32>}, {pipeline_mode = #tpu.pipeline_mode<synchronous>, transform_indices = @transform_2, window_bounds = array<i64: 2, 1, 32>}, {pipeline_mode = #tpu.pipeline_mode<synchronous>, transform_indices = @transform_3, window_bounds = array<i64: 2, 64, 8>}, {pipeline_mode = #tpu.pipeline_mode<synchronous>, transform_indices = @transform_4, window_bounds = array<i64: 2, 64, 1>}, {pipeline_mode = #tpu.pipeline_mode<synchronous>, transform_indices = @transform_5, window_bounds = array<i64: 2, 8, 64>}, {pipeline_mode = #tpu.pipeline_mode<synchronous>, transform_indices = @transform_6, window_bounds = array<i64: 2, 8, 1>}, {pipeline_mode = #tpu.pipeline_mode<synchronous>, transform_indices = @transform_7, window_bounds = array<i64: 2, 1, 32>}, {pipeline_mode = #tpu.pipeline_mode<synchronous>, transform_indices = @transform_8, window_bounds = array<i64: 2, 1, 32>}, {pipeline_mode = #tpu.pipeline_mode<synchronous>, transform_indices = @transform_9, window_bounds = array<i64: 2, 32, 64>}, {pipeline_mode = #tpu.pipeline_mode<synchronous>, transform_indices = @transform_10, window_bounds = array<i64: 2, 1, 64>}, {pipeline_mode = #tpu.pipeline_mode<synchronous>, transform_indices = @transform_11, window_bounds = array<i64: 2, 64, 32>}, {pipeline_mode = #tpu.pipeline_mode<synchronous>, transform_indices = @transform_12, window_bounds = array<i64: 2, 1, 32>}, {pipeline_mode = #tpu.pipeline_mode<synchronous>, transform_indices = @transform_13, window_bounds = array<i64: 1, 32>}, {pipeline_mode = #tpu.pipeline_mode<synchronous>, transform_indices = @transform_14, window_bounds = array<i64: 1, 32>}, {pipeline_mode = #tpu.pipeline_mode<synchronous>, transform_indices = @transform_15, window_bounds = array<i64: 32, 128>}, {pipeline_mode = #tpu.pipeline_mode<synchronous>, transform_indices = @transform_16, window_bounds = array<i64: 1, 128>}, {pipeline_mode = #tpu.pipeline_mode<synchronous>, transform_indices = @transform_17, window_bounds = array<i64: 128, 128>}, {pipeline_mode = #tpu.pipeline_mode<synchronous>, transform_indices = @transform_18, window_bounds = array<i64: 1, 128>}, {transform_indices = @transform_19, window_bounds = array<i64: 2, 128>}]} {
    %c0 = arith.constant 0 : index
    %c0_0 = arith.constant 0 : index
    %0 = vector.load %arg1[%c0, %c0_0] : memref<16x32xf32, #tpu.memory_space<vmem>>, vector<16x32xf32>
    %c0_1 = arith.constant 0 : index
    %c0_2 = arith.constant 0 : index
    %c0_3 = arith.constant 0 : index
    %1 = vector.load %arg2[%c0_1, %c0_2, %c0_3] : memref<2x1x32xf32, #tpu.memory_space<vmem>>, vector<1x1x32xf32>
    %2 = vector.shape_cast %1 : vector<1x1x32xf32> to vector<1x32xf32>
    %c0_4 = arith.constant 0 : index
    %c0_5 = arith.constant 0 : index
    %c0_6 = arith.constant 0 : index
    %3 = vector.load %arg3[%c0_4, %c0_5, %c0_6] : memref<2x1x32xf32, #tpu.memory_space<vmem>>, vector<1x1x32xf32>
    %4 = vector.shape_cast %3 : vector<1x1x32xf32> to vector<1x32xf32>
    %cst = arith.constant dense<0.000000e+00> : vector<16xf32>
    %5 = vector.multi_reduction <add>, %0, %cst [1] : vector<16x32xf32> to vector<16xf32>
    %6 = vector.shape_cast %5 : vector<16xf32> to vector<16x1xf32>
    %cst_7 = arith.constant 3.200000e+01 : f32
    %7 = vector.broadcast %cst_7 : f32 to vector<16x1xf32>
    %8 = arith.divf %6, %7 : vector<16x1xf32>
    %9 = vector.broadcast %8 : vector<16x1xf32> to vector<16x32xf32>
    %10 = arith.subf %0, %9 : vector<16x32xf32>
    %11 = arith.mulf %10, %10 : vector<16x32xf32>
    %cst_8 = arith.constant dense<0.000000e+00> : vector<16xf32>
    %12 = vector.multi_reduction <add>, %11, %cst_8 [1] : vector<16x32xf32> to vector<16xf32>
    %13 = vector.shape_cast %12 : vector<16xf32> to vector<16x1xf32>
    %cst_9 = arith.constant 3.200000e+01 : f32
    %14 = vector.broadcast %cst_9 : f32 to vector<16x1xf32>
    %15 = arith.divf %13, %14 : vector<16x1xf32>
    %cst_10 = arith.constant 9.99999974E-6 : f32
    %16 = vector.broadcast %cst_10 : f32 to vector<16x1xf32>
    %17 = arith.addf %15, %16 : vector<16x1xf32>
    %18 = math.rsqrt %17 : vector<16x1xf32>
    %19 = vector.broadcast %18 : vector<16x1xf32> to vector<16x32xf32>
    %20 = arith.mulf %10, %19 : vector<16x32xf32>
    %21 = vector.broadcast %2 : vector<1x32xf32> to vector<16x32xf32>
    %22 = arith.mulf %20, %21 : vector<16x32xf32>
    %23 = vector.broadcast %4 : vector<1x32xf32> to vector<16x32xf32>
    %24 = arith.addf %22, %23 : vector<16x32xf32>
    %c0_11 = arith.constant 0 : index
    %c0_12 = arith.constant 0 : index
    %c0_13 = arith.constant 0 : index
    %25 = vector.load %arg4[%c0_11, %c0_12, %c0_13] : memref<2x64x8xf32, #tpu.memory_space<vmem>>, vector<1x64x8xf32>
    %26 = vector.shape_cast %25 : vector<1x64x8xf32> to vector<64x8xf32>
    %c0_14 = arith.constant 0 : index
    %c0_15 = arith.constant 0 : index
    %c0_16 = arith.constant 0 : index
    %27 = vector.load %arg5[%c0_14, %c0_15, %c0_16] : memref<2x64x1xf32, #tpu.memory_space<vmem>>, vector<1x64x1xf32>
    %28 = vector.shape_cast %27 : vector<1x64x1xf32> to vector<64x1xf32>
    %c0_17 = arith.constant 0 : index
    %c0_18 = arith.constant 0 : index
    %c0_19 = arith.constant 0 : index
    %29 = vector.load %arg6[%c0_17, %c0_18, %c0_19] : memref<2x8x64xf32, #tpu.memory_space<vmem>>, vector<1x8x64xf32>
    %30 = vector.shape_cast %29 : vector<1x8x64xf32> to vector<8x64xf32>
    %c0_20 = arith.constant 0 : index
    %c0_21 = arith.constant 0 : index
    %c0_22 = arith.constant 0 : index
    %31 = vector.load %arg7[%c0_20, %c0_21, %c0_22] : memref<2x8x1xf32, #tpu.memory_space<vmem>>, vector<1x8x1xf32>
    %32 = vector.shape_cast %31 : vector<1x8x1xf32> to vector<8x1xf32>
    %33 = vector.extract_strided_slice %24 {offsets = [0, 0], sizes = [8, 32], strides = [1, 1]} : vector<16x32xf32> to vector<8x32xf32>
    %cst_23 = arith.constant dense<0.000000e+00> : vector<64x32xf32>
    %34 = tpu.matmul %26, %33, %cst_23 {dimension_numbers = #tpu.dot_dimension_numbers<[1], [0], [0], [1], [0, 0, 1, 1], [], []>} : vector<64x8xf32>, vector<8x32xf32>, vector<64x32xf32> -> vector<64x32xf32>
    %35 = vector.broadcast %28 : vector<64x1xf32> to vector<64x32xf32>
    %36 = arith.addf %34, %35 : vector<64x32xf32>
    %37 = arith.mulf %36, %36 : vector<64x32xf32>
    %38 = arith.mulf %36, %37 : vector<64x32xf32>
    %cst_24 = arith.constant 4.471500e-02 : f32
    %39 = vector.broadcast %cst_24 : f32 to vector<64x32xf32>
    %40 = arith.mulf %39, %38 : vector<64x32xf32>
    %41 = arith.addf %36, %40 : vector<64x32xf32>
    %cst_25 = arith.constant 0.797884583 : f32
    %42 = vector.broadcast %cst_25 : f32 to vector<64x32xf32>
    %43 = arith.mulf %42, %41 : vector<64x32xf32>
    %44 = math.tanh %43 : vector<64x32xf32>
    %cst_26 = arith.constant 1.000000e+00 : f32
    %45 = vector.broadcast %cst_26 : f32 to vector<64x32xf32>
    %46 = arith.addf %45, %44 : vector<64x32xf32>
    %cst_27 = arith.constant 5.000000e-01 : f32
    %47 = vector.broadcast %cst_27 : f32 to vector<64x32xf32>
    %48 = arith.mulf %47, %46 : vector<64x32xf32>
    %49 = arith.mulf %36, %48 : vector<64x32xf32>
    %cst_28 = arith.constant dense<0.000000e+00> : vector<8x32xf32>
    %50 = tpu.matmul %30, %49, %cst_28 {dimension_numbers = #tpu.dot_dimension_numbers<[1], [0], [0], [1], [0, 0, 1, 1], [], []>} : vector<8x64xf32>, vector<64x32xf32>, vector<8x32xf32> -> vector<8x32xf32>
    %51 = vector.broadcast %32 : vector<8x1xf32> to vector<8x32xf32>
    %52 = arith.addf %50, %51 : vector<8x32xf32>
    %53 = vector.extract_strided_slice %0 {offsets = [0, 0], sizes = [8, 32], strides = [1, 1]} : vector<16x32xf32> to vector<8x32xf32>
    %54 = arith.addf %53, %52 : vector<8x32xf32>
    %55 = vector.extract_strided_slice %24 {offsets = [8, 0], sizes = [8, 32], strides = [1, 1]} : vector<16x32xf32> to vector<8x32xf32>
    %cst_29 = arith.constant dense<0.000000e+00> : vector<64x32xf32>
    %56 = tpu.matmul %26, %55, %cst_29 {dimension_numbers = #tpu.dot_dimension_numbers<[1], [0], [0], [1], [0, 0, 1, 1], [], []>} : vector<64x8xf32>, vector<8x32xf32>, vector<64x32xf32> -> vector<64x32xf32>
    %57 = vector.broadcast %28 : vector<64x1xf32> to vector<64x32xf32>
    %58 = arith.addf %56, %57 : vector<64x32xf32>
    %59 = arith.mulf %58, %58 : vector<64x32xf32>
    %60 = arith.mulf %58, %59 : vector<64x32xf32>
    %cst_30 = arith.constant 4.471500e-02 : f32
    %61 = vector.broadcast %cst_30 : f32 to vector<64x32xf32>
    %62 = arith.mulf %61, %60 : vector<64x32xf32>
    %63 = arith.addf %58, %62 : vector<64x32xf32>
    %cst_31 = arith.constant 0.797884583 : f32
    %64 = vector.broadcast %cst_31 : f32 to vector<64x32xf32>
    %65 = arith.mulf %64, %63 : vector<64x32xf32>
    %66 = math.tanh %65 : vector<64x32xf32>
    %cst_32 = arith.constant 1.000000e+00 : f32
    %67 = vector.broadcast %cst_32 : f32 to vector<64x32xf32>
    %68 = arith.addf %67, %66 : vector<64x32xf32>
    %cst_33 = arith.constant 5.000000e-01 : f32
    %69 = vector.broadcast %cst_33 : f32 to vector<64x32xf32>
    %70 = arith.mulf %69, %68 : vector<64x32xf32>
    %71 = arith.mulf %58, %70 : vector<64x32xf32>
    %cst_34 = arith.constant dense<0.000000e+00> : vector<8x32xf32>
    %72 = tpu.matmul %30, %71, %cst_34 {dimension_numbers = #tpu.dot_dimension_numbers<[1], [0], [0], [1], [0, 0, 1, 1], [], []>} : vector<8x64xf32>, vector<64x32xf32>, vector<8x32xf32> -> vector<8x32xf32>
    %73 = vector.broadcast %32 : vector<8x1xf32> to vector<8x32xf32>
    %74 = arith.addf %72, %73 : vector<8x32xf32>
    %75 = vector.extract_strided_slice %0 {offsets = [8, 0], sizes = [8, 32], strides = [1, 1]} : vector<16x32xf32> to vector<8x32xf32>
    %76 = arith.addf %75, %74 : vector<8x32xf32>
    %77 = tpu.concatenate %54, %76 in 0 : vector<8x32xf32>, vector<8x32xf32> -> vector<16x32xf32>
    %c0_35 = arith.constant 0 : index
    %c0_36 = arith.constant 0 : index
    %c0_37 = arith.constant 0 : index
    %78 = vector.load %arg8[%c0_35, %c0_36, %c0_37] : memref<2x1x32xf32, #tpu.memory_space<vmem>>, vector<1x1x32xf32>
    %79 = vector.shape_cast %78 : vector<1x1x32xf32> to vector<1x32xf32>
    %c0_38 = arith.constant 0 : index
    %c0_39 = arith.constant 0 : index
    %c0_40 = arith.constant 0 : index
    %80 = vector.load %arg9[%c0_38, %c0_39, %c0_40] : memref<2x1x32xf32, #tpu.memory_space<vmem>>, vector<1x1x32xf32>
    %81 = vector.shape_cast %80 : vector<1x1x32xf32> to vector<1x32xf32>
    %cst_41 = arith.constant dense<0.000000e+00> : vector<16xf32>
    %82 = vector.multi_reduction <add>, %77, %cst_41 [1] : vector<16x32xf32> to vector<16xf32>
    %83 = vector.shape_cast %82 : vector<16xf32> to vector<16x1xf32>
    %cst_42 = arith.constant 3.200000e+01 : f32
    %84 = vector.broadcast %cst_42 : f32 to vector<16x1xf32>
    %85 = arith.divf %83, %84 : vector<16x1xf32>
    %86 = vector.broadcast %85 : vector<16x1xf32> to vector<16x32xf32>
    %87 = arith.subf %77, %86 : vector<16x32xf32>
    %88 = arith.mulf %87, %87 : vector<16x32xf32>
    %cst_43 = arith.constant dense<0.000000e+00> : vector<16xf32>
    %89 = vector.multi_reduction <add>, %88, %cst_43 [1] : vector<16x32xf32> to vector<16xf32>
    %90 = vector.shape_cast %89 : vector<16xf32> to vector<16x1xf32>
    %cst_44 = arith.constant 3.200000e+01 : f32
    %91 = vector.broadcast %cst_44 : f32 to vector<16x1xf32>
    %92 = arith.divf %90, %91 : vector<16x1xf32>
    %cst_45 = arith.constant 9.99999974E-6 : f32
    %93 = vector.broadcast %cst_45 : f32 to vector<16x1xf32>
    %94 = arith.addf %92, %93 : vector<16x1xf32>
    %95 = math.rsqrt %94 : vector<16x1xf32>
    %96 = vector.broadcast %95 : vector<16x1xf32> to vector<16x32xf32>
    %97 = arith.mulf %87, %96 : vector<16x32xf32>
    %98 = vector.broadcast %79 : vector<1x32xf32> to vector<16x32xf32>
    %99 = arith.mulf %97, %98 : vector<16x32xf32>
    %100 = vector.broadcast %81 : vector<1x32xf32> to vector<16x32xf32>
    %101 = arith.addf %99, %100 : vector<16x32xf32>
    %c0_46 = arith.constant 0 : index
    %c0_47 = arith.constant 0 : index
    %c0_48 = arith.constant 0 : index
    %102 = vector.load %arg10[%c0_46, %c0_47, %c0_48] : memref<2x32x64xf32, #tpu.memory_space<vmem>>, vector<1x32x64xf32>
    %103 = vector.shape_cast %102 : vector<1x32x64xf32> to vector<32x64xf32>
    %cst_49 = arith.constant dense<0.000000e+00> : vector<16x64xf32>
    %104 = tpu.matmul %101, %103, %cst_49 {dimension_numbers = #tpu.dot_dimension_numbers<[1], [0], [0], [1], [0, 0, 1, 1], [], []>} : vector<16x32xf32>, vector<32x64xf32>, vector<16x64xf32> -> vector<16x64xf32>
    %c0_50 = arith.constant 0 : index
    %c0_51 = arith.constant 0 : index
    %c0_52 = arith.constant 0 : index
    %105 = vector.load %arg11[%c0_50, %c0_51, %c0_52] : memref<2x1x64xf32, #tpu.memory_space<vmem>>, vector<1x1x64xf32>
    %106 = vector.shape_cast %105 : vector<1x1x64xf32> to vector<1x64xf32>
    %107 = vector.broadcast %106 : vector<1x64xf32> to vector<16x64xf32>
    %108 = arith.addf %104, %107 : vector<16x64xf32>
    %109 = arith.mulf %108, %108 : vector<16x64xf32>
    %110 = arith.mulf %108, %109 : vector<16x64xf32>
    %cst_53 = arith.constant 4.471500e-02 : f32
    %111 = vector.broadcast %cst_53 : f32 to vector<16x64xf32>
    %112 = arith.mulf %111, %110 : vector<16x64xf32>
    %113 = arith.addf %108, %112 : vector<16x64xf32>
    %cst_54 = arith.constant 0.797884583 : f32
    %114 = vector.broadcast %cst_54 : f32 to vector<16x64xf32>
    %115 = arith.mulf %114, %113 : vector<16x64xf32>
    %116 = math.tanh %115 : vector<16x64xf32>
    %cst_55 = arith.constant 1.000000e+00 : f32
    %117 = vector.broadcast %cst_55 : f32 to vector<16x64xf32>
    %118 = arith.addf %117, %116 : vector<16x64xf32>
    %cst_56 = arith.constant 5.000000e-01 : f32
    %119 = vector.broadcast %cst_56 : f32 to vector<16x64xf32>
    %120 = arith.mulf %119, %118 : vector<16x64xf32>
    %121 = arith.mulf %108, %120 : vector<16x64xf32>
    %c0_57 = arith.constant 0 : index
    %c0_58 = arith.constant 0 : index
    %c0_59 = arith.constant 0 : index
    %122 = vector.load %arg12[%c0_57, %c0_58, %c0_59] : memref<2x64x32xf32, #tpu.memory_space<vmem>>, vector<1x64x32xf32>
    %123 = vector.shape_cast %122 : vector<1x64x32xf32> to vector<64x32xf32>
    %cst_60 = arith.constant dense<0.000000e+00> : vector<16x32xf32>
    %124 = tpu.matmul %121, %123, %cst_60 {dimension_numbers = #tpu.dot_dimension_numbers<[1], [0], [0], [1], [0, 0, 1, 1], [], []>} : vector<16x64xf32>, vector<64x32xf32>, vector<16x32xf32> -> vector<16x32xf32>
    %125 = arith.addf %77, %124 : vector<16x32xf32>
    %c0_61 = arith.constant 0 : index
    %c0_62 = arith.constant 0 : index
    %c0_63 = arith.constant 0 : index
    %126 = vector.load %arg13[%c0_61, %c0_62, %c0_63] : memref<2x1x32xf32, #tpu.memory_space<vmem>>, vector<1x1x32xf32>
    %127 = vector.shape_cast %126 : vector<1x1x32xf32> to vector<1x32xf32>
    %128 = vector.broadcast %127 : vector<1x32xf32> to vector<16x32xf32>
    %129 = arith.addf %125, %128 : vector<16x32xf32>
    %c1 = arith.constant 1 : index
    %c0_64 = arith.constant 0 : index
    %c0_65 = arith.constant 0 : index
    %130 = vector.load %arg2[%c1, %c0_64, %c0_65] : memref<2x1x32xf32, #tpu.memory_space<vmem>>, vector<1x1x32xf32>
    %131 = vector.shape_cast %130 : vector<1x1x32xf32> to vector<1x32xf32>
    %c1_66 = arith.constant 1 : index
    %c0_67 = arith.constant 0 : index
    %c0_68 = arith.constant 0 : index
    %132 = vector.load %arg3[%c1_66, %c0_67, %c0_68] : memref<2x1x32xf32, #tpu.memory_space<vmem>>, vector<1x1x32xf32>
    %133 = vector.shape_cast %132 : vector<1x1x32xf32> to vector<1x32xf32>
    %cst_69 = arith.constant dense<0.000000e+00> : vector<16xf32>
    %134 = vector.multi_reduction <add>, %129, %cst_69 [1] : vector<16x32xf32> to vector<16xf32>
    %135 = vector.shape_cast %134 : vector<16xf32> to vector<16x1xf32>
    %cst_70 = arith.constant 3.200000e+01 : f32
    %136 = vector.broadcast %cst_70 : f32 to vector<16x1xf32>
    %137 = arith.divf %135, %136 : vector<16x1xf32>
    %138 = vector.broadcast %137 : vector<16x1xf32> to vector<16x32xf32>
    %139 = arith.subf %129, %138 : vector<16x32xf32>
    %140 = arith.mulf %139, %139 : vector<16x32xf32>
    %cst_71 = arith.constant dense<0.000000e+00> : vector<16xf32>
    %141 = vector.multi_reduction <add>, %140, %cst_71 [1] : vector<16x32xf32> to vector<16xf32>
    %142 = vector.shape_cast %141 : vector<16xf32> to vector<16x1xf32>
    %cst_72 = arith.constant 3.200000e+01 : f32
    %143 = vector.broadcast %cst_72 : f32 to vector<16x1xf32>
    %144 = arith.divf %142, %143 : vector<16x1xf32>
    %cst_73 = arith.constant 9.99999974E-6 : f32
    %145 = vector.broadcast %cst_73 : f32 to vector<16x1xf32>
    %146 = arith.addf %144, %145 : vector<16x1xf32>
    %147 = math.rsqrt %146 : vector<16x1xf32>
    %148 = vector.broadcast %147 : vector<16x1xf32> to vector<16x32xf32>
    %149 = arith.mulf %139, %148 : vector<16x32xf32>
    %150 = vector.broadcast %131 : vector<1x32xf32> to vector<16x32xf32>
    %151 = arith.mulf %149, %150 : vector<16x32xf32>
    %152 = vector.broadcast %133 : vector<1x32xf32> to vector<16x32xf32>
    %153 = arith.addf %151, %152 : vector<16x32xf32>
    %c1_74 = arith.constant 1 : index
    %c0_75 = arith.constant 0 : index
    %c0_76 = arith.constant 0 : index
    %154 = vector.load %arg4[%c1_74, %c0_75, %c0_76] : memref<2x64x8xf32, #tpu.memory_space<vmem>>, vector<1x64x8xf32>
    %155 = vector.shape_cast %154 : vector<1x64x8xf32> to vector<64x8xf32>
    %c1_77 = arith.constant 1 : index
    %c0_78 = arith.constant 0 : index
    %c0_79 = arith.constant 0 : index
    %156 = vector.load %arg5[%c1_77, %c0_78, %c0_79] : memref<2x64x1xf32, #tpu.memory_space<vmem>>, vector<1x64x1xf32>
    %157 = vector.shape_cast %156 : vector<1x64x1xf32> to vector<64x1xf32>
    %c1_80 = arith.constant 1 : index
    %c0_81 = arith.constant 0 : index
    %c0_82 = arith.constant 0 : index
    %158 = vector.load %arg6[%c1_80, %c0_81, %c0_82] : memref<2x8x64xf32, #tpu.memory_space<vmem>>, vector<1x8x64xf32>
    %159 = vector.shape_cast %158 : vector<1x8x64xf32> to vector<8x64xf32>
    %c1_83 = arith.constant 1 : index
    %c0_84 = arith.constant 0 : index
    %c0_85 = arith.constant 0 : index
    %160 = vector.load %arg7[%c1_83, %c0_84, %c0_85] : memref<2x8x1xf32, #tpu.memory_space<vmem>>, vector<1x8x1xf32>
    %161 = vector.shape_cast %160 : vector<1x8x1xf32> to vector<8x1xf32>
    %162 = vector.extract_strided_slice %153 {offsets = [0, 0], sizes = [8, 32], strides = [1, 1]} : vector<16x32xf32> to vector<8x32xf32>
    %cst_86 = arith.constant dense<0.000000e+00> : vector<64x32xf32>
    %163 = tpu.matmul %155, %162, %cst_86 {dimension_numbers = #tpu.dot_dimension_numbers<[1], [0], [0], [1], [0, 0, 1, 1], [], []>} : vector<64x8xf32>, vector<8x32xf32>, vector<64x32xf32> -> vector<64x32xf32>
    %164 = vector.broadcast %157 : vector<64x1xf32> to vector<64x32xf32>
    %165 = arith.addf %163, %164 : vector<64x32xf32>
    %166 = arith.mulf %165, %165 : vector<64x32xf32>
    %167 = arith.mulf %165, %166 : vector<64x32xf32>
    %cst_87 = arith.constant 4.471500e-02 : f32
    %168 = vector.broadcast %cst_87 : f32 to vector<64x32xf32>
    %169 = arith.mulf %168, %167 : vector<64x32xf32>
    %170 = arith.addf %165, %169 : vector<64x32xf32>
    %cst_88 = arith.constant 0.797884583 : f32
    %171 = vector.broadcast %cst_88 : f32 to vector<64x32xf32>
    %172 = arith.mulf %171, %170 : vector<64x32xf32>
    %173 = math.tanh %172 : vector<64x32xf32>
    %cst_89 = arith.constant 1.000000e+00 : f32
    %174 = vector.broadcast %cst_89 : f32 to vector<64x32xf32>
    %175 = arith.addf %174, %173 : vector<64x32xf32>
    %cst_90 = arith.constant 5.000000e-01 : f32
    %176 = vector.broadcast %cst_90 : f32 to vector<64x32xf32>
    %177 = arith.mulf %176, %175 : vector<64x32xf32>
    %178 = arith.mulf %165, %177 : vector<64x32xf32>
    %cst_91 = arith.constant dense<0.000000e+00> : vector<8x32xf32>
    %179 = tpu.matmul %159, %178, %cst_91 {dimension_numbers = #tpu.dot_dimension_numbers<[1], [0], [0], [1], [0, 0, 1, 1], [], []>} : vector<8x64xf32>, vector<64x32xf32>, vector<8x32xf32> -> vector<8x32xf32>
    %180 = vector.broadcast %161 : vector<8x1xf32> to vector<8x32xf32>
    %181 = arith.addf %179, %180 : vector<8x32xf32>
    %182 = vector.extract_strided_slice %129 {offsets = [0, 0], sizes = [8, 32], strides = [1, 1]} : vector<16x32xf32> to vector<8x32xf32>
    %183 = arith.addf %182, %181 : vector<8x32xf32>
    %184 = vector.extract_strided_slice %153 {offsets = [8, 0], sizes = [8, 32], strides = [1, 1]} : vector<16x32xf32> to vector<8x32xf32>
    %cst_92 = arith.constant dense<0.000000e+00> : vector<64x32xf32>
    %185 = tpu.matmul %155, %184, %cst_92 {dimension_numbers = #tpu.dot_dimension_numbers<[1], [0], [0], [1], [0, 0, 1, 1], [], []>} : vector<64x8xf32>, vector<8x32xf32>, vector<64x32xf32> -> vector<64x32xf32>
    %186 = vector.broadcast %157 : vector<64x1xf32> to vector<64x32xf32>
    %187 = arith.addf %185, %186 : vector<64x32xf32>
    %188 = arith.mulf %187, %187 : vector<64x32xf32>
    %189 = arith.mulf %187, %188 : vector<64x32xf32>
    %cst_93 = arith.constant 4.471500e-02 : f32
    %190 = vector.broadcast %cst_93 : f32 to vector<64x32xf32>
    %191 = arith.mulf %190, %189 : vector<64x32xf32>
    %192 = arith.addf %187, %191 : vector<64x32xf32>
    %cst_94 = arith.constant 0.797884583 : f32
    %193 = vector.broadcast %cst_94 : f32 to vector<64x32xf32>
    %194 = arith.mulf %193, %192 : vector<64x32xf32>
    %195 = math.tanh %194 : vector<64x32xf32>
    %cst_95 = arith.constant 1.000000e+00 : f32
    %196 = vector.broadcast %cst_95 : f32 to vector<64x32xf32>
    %197 = arith.addf %196, %195 : vector<64x32xf32>
    %cst_96 = arith.constant 5.000000e-01 : f32
    %198 = vector.broadcast %cst_96 : f32 to vector<64x32xf32>
    %199 = arith.mulf %198, %197 : vector<64x32xf32>
    %200 = arith.mulf %187, %199 : vector<64x32xf32>
    %cst_97 = arith.constant dense<0.000000e+00> : vector<8x32xf32>
    %201 = tpu.matmul %159, %200, %cst_97 {dimension_numbers = #tpu.dot_dimension_numbers<[1], [0], [0], [1], [0, 0, 1, 1], [], []>} : vector<8x64xf32>, vector<64x32xf32>, vector<8x32xf32> -> vector<8x32xf32>
    %202 = vector.broadcast %161 : vector<8x1xf32> to vector<8x32xf32>
    %203 = arith.addf %201, %202 : vector<8x32xf32>
    %204 = vector.extract_strided_slice %129 {offsets = [8, 0], sizes = [8, 32], strides = [1, 1]} : vector<16x32xf32> to vector<8x32xf32>
    %205 = arith.addf %204, %203 : vector<8x32xf32>
    %206 = tpu.concatenate %183, %205 in 0 : vector<8x32xf32>, vector<8x32xf32> -> vector<16x32xf32>
    %c1_98 = arith.constant 1 : index
    %c0_99 = arith.constant 0 : index
    %c0_100 = arith.constant 0 : index
    %207 = vector.load %arg8[%c1_98, %c0_99, %c0_100] : memref<2x1x32xf32, #tpu.memory_space<vmem>>, vector<1x1x32xf32>
    %208 = vector.shape_cast %207 : vector<1x1x32xf32> to vector<1x32xf32>
    %c1_101 = arith.constant 1 : index
    %c0_102 = arith.constant 0 : index
    %c0_103 = arith.constant 0 : index
    %209 = vector.load %arg9[%c1_101, %c0_102, %c0_103] : memref<2x1x32xf32, #tpu.memory_space<vmem>>, vector<1x1x32xf32>
    %210 = vector.shape_cast %209 : vector<1x1x32xf32> to vector<1x32xf32>
    %cst_104 = arith.constant dense<0.000000e+00> : vector<16xf32>
    %211 = vector.multi_reduction <add>, %206, %cst_104 [1] : vector<16x32xf32> to vector<16xf32>
    %212 = vector.shape_cast %211 : vector<16xf32> to vector<16x1xf32>
    %cst_105 = arith.constant 3.200000e+01 : f32
    %213 = vector.broadcast %cst_105 : f32 to vector<16x1xf32>
    %214 = arith.divf %212, %213 : vector<16x1xf32>
    %215 = vector.broadcast %214 : vector<16x1xf32> to vector<16x32xf32>
    %216 = arith.subf %206, %215 : vector<16x32xf32>
    %217 = arith.mulf %216, %216 : vector<16x32xf32>
    %cst_106 = arith.constant dense<0.000000e+00> : vector<16xf32>
    %218 = vector.multi_reduction <add>, %217, %cst_106 [1] : vector<16x32xf32> to vector<16xf32>
    %219 = vector.shape_cast %218 : vector<16xf32> to vector<16x1xf32>
    %cst_107 = arith.constant 3.200000e+01 : f32
    %220 = vector.broadcast %cst_107 : f32 to vector<16x1xf32>
    %221 = arith.divf %219, %220 : vector<16x1xf32>
    %cst_108 = arith.constant 9.99999974E-6 : f32
    %222 = vector.broadcast %cst_108 : f32 to vector<16x1xf32>
    %223 = arith.addf %221, %222 : vector<16x1xf32>
    %224 = math.rsqrt %223 : vector<16x1xf32>
    %225 = vector.broadcast %224 : vector<16x1xf32> to vector<16x32xf32>
    %226 = arith.mulf %216, %225 : vector<16x32xf32>
    %227 = vector.broadcast %208 : vector<1x32xf32> to vector<16x32xf32>
    %228 = arith.mulf %226, %227 : vector<16x32xf32>
    %229 = vector.broadcast %210 : vector<1x32xf32> to vector<16x32xf32>
    %230 = arith.addf %228, %229 : vector<16x32xf32>
    %c1_109 = arith.constant 1 : index
    %c0_110 = arith.constant 0 : index
    %c0_111 = arith.constant 0 : index
    %231 = vector.load %arg10[%c1_109, %c0_110, %c0_111] : memref<2x32x64xf32, #tpu.memory_space<vmem>>, vector<1x32x64xf32>
    %232 = vector.shape_cast %231 : vector<1x32x64xf32> to vector<32x64xf32>
    %cst_112 = arith.constant dense<0.000000e+00> : vector<16x64xf32>
    %233 = tpu.matmul %230, %232, %cst_112 {dimension_numbers = #tpu.dot_dimension_numbers<[1], [0], [0], [1], [0, 0, 1, 1], [], []>} : vector<16x32xf32>, vector<32x64xf32>, vector<16x64xf32> -> vector<16x64xf32>
    %c1_113 = arith.constant 1 : index
    %c0_114 = arith.constant 0 : index
    %c0_115 = arith.constant 0 : index
    %234 = vector.load %arg11[%c1_113, %c0_114, %c0_115] : memref<2x1x64xf32, #tpu.memory_space<vmem>>, vector<1x1x64xf32>
    %235 = vector.shape_cast %234 : vector<1x1x64xf32> to vector<1x64xf32>
    %236 = vector.broadcast %235 : vector<1x64xf32> to vector<16x64xf32>
    %237 = arith.addf %233, %236 : vector<16x64xf32>
    %238 = arith.mulf %237, %237 : vector<16x64xf32>
    %239 = arith.mulf %237, %238 : vector<16x64xf32>
    %cst_116 = arith.constant 4.471500e-02 : f32
    %240 = vector.broadcast %cst_116 : f32 to vector<16x64xf32>
    %241 = arith.mulf %240, %239 : vector<16x64xf32>
    %242 = arith.addf %237, %241 : vector<16x64xf32>
    %cst_117 = arith.constant 0.797884583 : f32
    %243 = vector.broadcast %cst_117 : f32 to vector<16x64xf32>
    %244 = arith.mulf %243, %242 : vector<16x64xf32>
    %245 = math.tanh %244 : vector<16x64xf32>
    %cst_118 = arith.constant 1.000000e+00 : f32
    %246 = vector.broadcast %cst_118 : f32 to vector<16x64xf32>
    %247 = arith.addf %246, %245 : vector<16x64xf32>
    %cst_119 = arith.constant 5.000000e-01 : f32
    %248 = vector.broadcast %cst_119 : f32 to vector<16x64xf32>
    %249 = arith.mulf %248, %247 : vector<16x64xf32>
    %250 = arith.mulf %237, %249 : vector<16x64xf32>
    %c1_120 = arith.constant 1 : index
    %c0_121 = arith.constant 0 : index
    %c0_122 = arith.constant 0 : index
    %251 = vector.load %arg12[%c1_120, %c0_121, %c0_122] : memref<2x64x32xf32, #tpu.memory_space<vmem>>, vector<1x64x32xf32>
    %252 = vector.shape_cast %251 : vector<1x64x32xf32> to vector<64x32xf32>
    %cst_123 = arith.constant dense<0.000000e+00> : vector<16x32xf32>
    %253 = tpu.matmul %250, %252, %cst_123 {dimension_numbers = #tpu.dot_dimension_numbers<[1], [0], [0], [1], [0, 0, 1, 1], [], []>} : vector<16x64xf32>, vector<64x32xf32>, vector<16x32xf32> -> vector<16x32xf32>
    %254 = arith.addf %206, %253 : vector<16x32xf32>
    %c1_124 = arith.constant 1 : index
    %c0_125 = arith.constant 0 : index
    %c0_126 = arith.constant 0 : index
    %255 = vector.load %arg13[%c1_124, %c0_125, %c0_126] : memref<2x1x32xf32, #tpu.memory_space<vmem>>, vector<1x1x32xf32>
    %256 = vector.shape_cast %255 : vector<1x1x32xf32> to vector<1x32xf32>
    %257 = vector.broadcast %256 : vector<1x32xf32> to vector<16x32xf32>
    %258 = arith.addf %254, %257 : vector<16x32xf32>
    %c0_127 = arith.constant 0 : index
    %c0_128 = arith.constant 0 : index
    %259 = vector.load %arg14[%c0_127, %c0_128] : memref<1x32xf32, #tpu.memory_space<vmem>>, vector<1x32xf32>
    %c0_129 = arith.constant 0 : index
    %c0_130 = arith.constant 0 : index
    %260 = vector.load %arg15[%c0_129, %c0_130] : memref<1x32xf32, #tpu.memory_space<vmem>>, vector<1x32xf32>
    %cst_131 = arith.constant dense<0.000000e+00> : vector<16xf32>
    %261 = vector.multi_reduction <add>, %258, %cst_131 [1] : vector<16x32xf32> to vector<16xf32>
    %262 = vector.shape_cast %261 : vector<16xf32> to vector<16x1xf32>
    %cst_132 = arith.constant 3.200000e+01 : f32
    %263 = vector.broadcast %cst_132 : f32 to vector<16x1xf32>
    %264 = arith.divf %262, %263 : vector<16x1xf32>
    %265 = vector.broadcast %264 : vector<16x1xf32> to vector<16x32xf32>
    %266 = arith.subf %258, %265 : vector<16x32xf32>
    %267 = arith.mulf %266, %266 : vector<16x32xf32>
    %cst_133 = arith.constant dense<0.000000e+00> : vector<16xf32>
    %268 = vector.multi_reduction <add>, %267, %cst_133 [1] : vector<16x32xf32> to vector<16xf32>
    %269 = vector.shape_cast %268 : vector<16xf32> to vector<16x1xf32>
    %cst_134 = arith.constant 3.200000e+01 : f32
    %270 = vector.broadcast %cst_134 : f32 to vector<16x1xf32>
    %271 = arith.divf %269, %270 : vector<16x1xf32>
    %cst_135 = arith.constant 9.99999974E-6 : f32
    %272 = vector.broadcast %cst_135 : f32 to vector<16x1xf32>
    %273 = arith.addf %271, %272 : vector<16x1xf32>
    %274 = math.rsqrt %273 : vector<16x1xf32>
    %275 = vector.broadcast %274 : vector<16x1xf32> to vector<16x32xf32>
    %276 = arith.mulf %266, %275 : vector<16x32xf32>
    %277 = vector.broadcast %259 : vector<1x32xf32> to vector<16x32xf32>
    %278 = arith.mulf %276, %277 : vector<16x32xf32>
    %279 = vector.broadcast %260 : vector<1x32xf32> to vector<16x32xf32>
    %280 = arith.addf %278, %279 : vector<16x32xf32>
    %281 = vector.extract_strided_slice %280 {offsets = [0, 0], sizes = [8, 32], strides = [1, 1]} : vector<16x32xf32> to vector<8x32xf32>
    %cst_136 = arith.constant dense<0.000000e+00> : vector<32xf32>
    %282 = vector.multi_reduction <add>, %281, %cst_136 [0] : vector<8x32xf32> to vector<32xf32>
    %283 = vector.shape_cast %282 : vector<32xf32> to vector<1x32xf32>
    %cst_137 = arith.constant 8.000000e+00 : f32
    %284 = vector.broadcast %cst_137 : f32 to vector<1x32xf32>
    %285 = arith.divf %283, %284 : vector<1x32xf32>
    %286 = vector.extract_strided_slice %280 {offsets = [8, 0], sizes = [8, 32], strides = [1, 1]} : vector<16x32xf32> to vector<8x32xf32>
    %cst_138 = arith.constant dense<0.000000e+00> : vector<32xf32>
    %287 = vector.multi_reduction <add>, %286, %cst_138 [0] : vector<8x32xf32> to vector<32xf32>
    %288 = vector.shape_cast %287 : vector<32xf32> to vector<1x32xf32>
    %cst_139 = arith.constant 8.000000e+00 : f32
    %289 = vector.broadcast %cst_139 : f32 to vector<1x32xf32>
    %290 = arith.divf %288, %289 : vector<1x32xf32>
    %291 = tpu.concatenate %285, %290 in 0 : vector<1x32xf32>, vector<1x32xf32> -> vector<2x32xf32>
    %c0_140 = arith.constant 0 : index
    %c0_141 = arith.constant 0 : index
    %292 = vector.load %arg16[%c0_140, %c0_141] : memref<32x128xf32, #tpu.memory_space<vmem>>, vector<32x128xf32>
    %cst_142 = arith.constant dense<0.000000e+00> : vector<2x128xf32>
    %293 = tpu.matmul %291, %292, %cst_142 {dimension_numbers = #tpu.dot_dimension_numbers<[1], [0], [0], [1], [0, 0, 1, 1], [], []>} : vector<2x32xf32>, vector<32x128xf32>, vector<2x128xf32> -> vector<2x128xf32>
    %c0_143 = arith.constant 0 : index
    %c0_144 = arith.constant 0 : index
    %294 = vector.load %arg17[%c0_143, %c0_144] : memref<1x128xf32, #tpu.memory_space<vmem>>, vector<1x128xf32>
    %295 = vector.broadcast %294 : vector<1x128xf32> to vector<2x128xf32>
    %296 = arith.addf %293, %295 : vector<2x128xf32>
    %cst_145 = arith.constant 0.000000e+00 : f32
    %297 = vector.broadcast %cst_145 : f32 to vector<2x128xf32>
    %298 = arith.maximumf %296, %297 : vector<2x128xf32>
    %c0_146 = arith.constant 0 : index
    %c0_147 = arith.constant 0 : index
    %299 = vector.load %arg18[%c0_146, %c0_147] : memref<128x128xf32, #tpu.memory_space<vmem>>, vector<128x128xf32>
    %cst_148 = arith.constant dense<0.000000e+00> : vector<2x128xf32>
    %300 = tpu.matmul %298, %299, %cst_148 {dimension_numbers = #tpu.dot_dimension_numbers<[1], [0], [0], [1], [0, 0, 1, 1], [], []>} : vector<2x128xf32>, vector<128x128xf32>, vector<2x128xf32> -> vector<2x128xf32>
    %c0_149 = arith.constant 0 : index
    %c0_150 = arith.constant 0 : index
    %301 = vector.load %arg19[%c0_149, %c0_150] : memref<1x128xf32, #tpu.memory_space<vmem>>, vector<1x128xf32>
    %302 = vector.broadcast %301 : vector<1x128xf32> to vector<2x128xf32>
    %303 = arith.addf %300, %302 : vector<2x128xf32>
    %c0_151 = arith.constant 0 : index
    %c0_152 = arith.constant 0 : index
    %304 = vector.load %arg20[%c0_151, %c0_152] : memref<2x128xf32, #tpu.memory_space<vmem>>, vector<2x128xf32>
    tpu.vector_store %arg20[%c0_151, %c0_152], %303 {strides = array<i32>} : memref<2x128xf32, #tpu.memory_space<vmem>>, vector<2x128xf32>,
    return
  }
  func.func @transform_0(%arg0: i32) -> (i32, i32) {
    %c0_i32 = arith.constant 0 : i32
    %c0_i32_0 = arith.constant 0 : i32
    return %arg0, %c0_i32 : i32, i32
  }
  func.func @transform_1(%arg0: i32) -> (i32, i32, i32) {
    %c0_i32 = arith.constant 0 : i32
    %c0_i32_0 = arith.constant 0 : i32
    %c0_i32_1 = arith.constant 0 : i32
    %c0_i32_2 = arith.constant 0 : i32
    return %c0_i32, %c0_i32_0, %c0_i32_1 : i32, i32, i32
  }
  func.func @transform_2(%arg0: i32) -> (i32, i32, i32) {
    %c0_i32 = arith.constant 0 : i32
    %c0_i32_0 = arith.constant 0 : i32
    %c0_i32_1 = arith.constant 0 : i32
    %c0_i32_2 = arith.constant 0 : i32
    return %c0_i32, %c0_i32_0, %c0_i32_1 : i32, i32, i32
  }
  func.func @transform_3(%arg0: i32) -> (i32, i32, i32) {
    %c0_i32 = arith.constant 0 : i32
    %c0_i32_0 = arith.constant 0 : i32
    %c0_i32_1 = arith.constant 0 : i32
    %c0_i32_2 = arith.constant 0 : i32
    return %c0_i32, %c0_i32_0, %c0_i32_1 : i32, i32, i32
  }
  func.func @transform_4(%arg0: i32) -> (i32, i32, i32) {
    %c0_i32 = arith.constant 0 : i32
    %c0_i32_0 = arith.constant 0 : i32
    %c0_i32_1 = arith.constant 0 : i32
    %c0_i32_2 = arith.constant 0 : i32
    return %c0_i32, %c0_i32_0, %c0_i32_1 : i32, i32, i32
  }
  func.func @transform_5(%arg0: i32) -> (i32, i32, i32) {
    %c0_i32 = arith.constant 0 : i32
    %c0_i32_0 = arith.constant 0 : i32
    %c0_i32_1 = arith.constant 0 : i32
    %c0_i32_2 = arith.constant 0 : i32
    return %c0_i32, %c0_i32_0, %c0_i32_1 : i32, i32, i32
  }
  func.func @transform_6(%arg0: i32) -> (i32, i32, i32) {
    %c0_i32 = arith.constant 0 : i32
    %c0_i32_0 = arith.constant 0 : i32
    %c0_i32_1 = arith.constant 0 : i32
    %c0_i32_2 = arith.constant 0 : i32
    return %c0_i32, %c0_i32_0, %c0_i32_1 : i32, i32, i32
  }
  func.func @transform_7(%arg0: i32) -> (i32, i32, i32) {
    %c0_i32 = arith.constant 0 : i32
    %c0_i32_0 = arith.constant 0 : i32
    %c0_i32_1 = arith.constant 0 : i32
    %c0_i32_2 = arith.constant 0 : i32
    return %c0_i32, %c0_i32_0, %c0_i32_1 : i32, i32, i32
  }
  func.func @transform_8(%arg0: i32) -> (i32, i32, i32) {
    %c0_i32 = arith.constant 0 : i32
    %c0_i32_0 = arith.constant 0 : i32
    %c0_i32_1 = arith.constant 0 : i32
    %c0_i32_2 = arith.constant 0 : i32
    return %c0_i32, %c0_i32_0, %c0_i32_1 : i32, i32, i32
  }
  func.func @transform_9(%arg0: i32) -> (i32, i32, i32) {
    %c0_i32 = arith.constant 0 : i32
    %c0_i32_0 = arith.constant 0 : i32
    %c0_i32_1 = arith.constant 0 : i32
    %c0_i32_2 = arith.constant 0 : i32
    return %c0_i32, %c0_i32_0, %c0_i32_1 : i32, i32, i32
  }
  func.func @transform_10(%arg0: i32) -> (i32, i32, i32) {
    %c0_i32 = arith.constant 0 : i32
    %c0_i32_0 = arith.constant 0 : i32
    %c0_i32_1 = arith.constant 0 : i32
    %c0_i32_2 = arith.constant 0 : i32
    return %c0_i32, %c0_i32_0, %c0_i32_1 : i32, i32, i32
  }
  func.func @transform_11(%arg0: i32) -> (i32, i32, i32) {
    %c0_i32 = arith.constant 0 : i32
    %c0_i32_0 = arith.constant 0 : i32
    %c0_i32_1 = arith.constant 0 : i32
    %c0_i32_2 = arith.constant 0 : i32
    return %c0_i32, %c0_i32_0, %c0_i32_1 : i32, i32, i32
  }
  func.func @transform_12(%arg0: i32) -> (i32, i32, i32) {
    %c0_i32 = arith.constant 0 : i32
    %c0_i32_0 = arith.constant 0 : i32
    %c0_i32_1 = arith.constant 0 : i32
    %c0_i32_2 = arith.constant 0 : i32
    return %c0_i32, %c0_i32_0, %c0_i32_1 : i32, i32, i32
  }
  func.func @transform_13(%arg0: i32) -> (i32, i32) {
    %c0_i32 = arith.constant 0 : i32
    %c0_i32_0 = arith.constant 0 : i32
    %c0_i32_1 = arith.constant 0 : i32
    return %c0_i32, %c0_i32_0 : i32, i32
  }
  func.func @transform_14(%arg0: i32) -> (i32, i32) {
    %c0_i32 = arith.constant 0 : i32
    %c0_i32_0 = arith.constant 0 : i32
    %c0_i32_1 = arith.constant 0 : i32
    return %c0_i32, %c0_i32_0 : i32, i32
  }
  func.func @transform_15(%arg0: i32) -> (i32, i32) {
    %c0_i32 = arith.constant 0 : i32
    %c0_i32_0 = arith.constant 0 : i32
    %c0_i32_1 = arith.constant 0 : i32
    return %c0_i32, %c0_i32_0 : i32, i32
  }
  func.func @transform_16(%arg0: i32) -> (i32, i32) {
    %c0_i32 = arith.constant 0 : i32
    %c0_i32_0 = arith.constant 0 : i32
    %c0_i32_1 = arith.constant 0 : i32
    return %c0_i32, %c0_i32_0 : i32, i32
  }
  func.func @transform_17(%arg0: i32) -> (i32, i32) {
    %c0_i32 = arith.constant 0 : i32
    %c0_i32_0 = arith.constant 0 : i32
    %c0_i32_1 = arith.constant 0 : i32
    return %c0_i32, %c0_i32_0 : i32, i32
  }
  func.func @transform_18(%arg0: i32) -> (i32, i32) {
    %c0_i32 = arith.constant 0 : i32
    %c0_i32_0 = arith.constant 0 : i32
    %c0_i32_1 = arith.constant 0 : i32
    return %c0_i32, %c0_i32_0 : i32, i32
  }
  func.func @transform_19(%arg0: i32) -> (i32, i32) {
    %c0_i32 = arith.constant 0 : i32
    %c0_i32_0 = arith.constant 0 : i32
    return %arg0, %c0_i32 : i32, i32
  }
}

</mosaic_0001>

<bundles_post_ra>
// kernel: tpu_custom_call.1
= control target key start
LH: loop header
LB: loop body
LE: loop exit
PB: predicated region body
PF: predicated region fallthrough
CT: control target
= control target key end

     0   :  { %6 = vsyncpa [#allocation3], 0  ;;  %s127_s0 = inlined_call_operand.hbm [shape: f32[8,128], index: 0, kind: input, shape index: {}]   ;;  %s128_s1 = inlined_call_operand.hbm [shape: f32[8,128], index: 1, kind: output, shape index: {}]  }
   0x1   :  { %7 = vsyncpa [#allocation4], 0  ;;  %s91_s6 = smov [#allocation2]   ;;  %s43_s10 = scalar_lea.hbm %s127_s0, 128 }
   0x2   :  { %s14_s7 = sshll.u32 %s91_s6, 4  ;;  %p44_p0 = scmp.ne.s32.totalorder %s127_s0, %s43_s10  ;;  %s15_s7 = int_to_ptr.vmem [resolvable:$true] %s14_s7 }
   0x3   :  { %p47_p1 = scmp.lt.u32.totalorder %s43_s10, %s127_s0 }
   0x5   :  { %p49_p2 = pnand %p47_p1, %p44_p0 }
   0x7   :  { %52 = shalt.err (!%p49_p2)
}
   0x8   :  { %s53_s15 = scalar_lea.vmem %s15_s7, 128  ;;  %p58_p4 = scmp.lt.s32.totalorder %s15_s7, %s15_s7 }
   0x9   :  { %p54_p3 = scmp.ne.s32.totalorder %s15_s7, %s53_s15  ;;  %p59_p5 = scmp.lt.s32.totalorder %s53_s15, %s53_s15 }
   0xb   :  { %p60_p6 = por %p59_p5, %p58_p4 }
   0xd   :  { %p61_p7 = pnand %p60_p6, %p54_p3 }
   0xf   :  { %64 = shalt.err (!%p61_p7)
}
  0x10   :  { %17 = dma.hbm_to_vmem [thread:$0]  %s127_s0, 128, %s15_s7, [#allocation3]  }
  0x11   :  { %87 = dma.done.wait [#allocation3], 128  }
  0x12   :  { %88 = vsyncadd [#allocation3], 4294967168  ;;  %v21_v0 = vld [vmem:[#allocation2] sm:$0xff]  ;;  %s92_s18 = smov [#allocation5]  }
  0x13   :  { %41 = verf.f32 %v21_v0  ;;  %s30_s19 = sshll.u32 %s92_s18, 4  ;;  %s31_s19 = int_to_ptr.vmem [resolvable:$true] %s30_s19 }
  0x14   :  { %s65_s20 = scalar_lea.vmem %s31_s19, 128  ;;  %p70_p9 = scmp.lt.s32.totalorder %s31_s19, %s31_s19 }
  0x15   :  { %p66_p8 = scmp.ne.s32.totalorder %s31_s19, %s65_s20  ;;  %p71_p10 = scmp.lt.s32.totalorder %s65_s20, %s65_s20 }
  0x17   :  { %p72_p11 = por %p71_p10, %p70_p9 }
  0x19   :  { %p73_p12 = pnand %p72_p11, %p66_p8 }
  0x1d   :  { %v42_v1 = vpop.eup %41 }
  0x1e   :  { %23 = vst [vmem:[#allocation5] sm:$0xff] %v42_v1 }
  0x1f   :  { %76 = shalt.err (!%p73_p12)
}
  0x20   :  { %s77_s0 = scalar_lea.hbm %s128_s1, 128 }
  0x21   :  { %p78_p13 = scmp.ne.s32.totalorder %s128_s1, %s77_s0  ;;  %p81_p0 = scmp.lt.u32.totalorder %s77_s0, %s128_s1 }
  0x23   :  { %p83_p1 = pnand %p81_p0, %p78_p13 }
  0x25   :  { %86 = shalt.err (!%p83_p1)
}
  0x26   :  { %33 = dma.vmem_to_hbm [thread:$0]  %s31_s19, 128, %s128_s1, [#allocation4]  }
  0x27   :  { %89 = dma.done.wait [#allocation4], 128  }
  0x28   :  { %90 = vsyncadd [#allocation4], 4294967168 }
  0x29   :  { %37 = vsyncpa [#allocation3], 1 }
  0x2a   :  { %38 = vsyncpa [#allocation4], 1 }

// kernel: mlp_mixer_forward.2
= control target key start
LH: loop header
LB: loop body
LE: loop exit
PB: predicated region body
PF: predicated region fallthrough
CT: control target
= control target key end

     0   :  { %vm37_vm0 = vcmask 1041408   ;;  %vm30_vm1 = vcmask 15360   ;;  %v2283_v3 = vmov 0.0|0.0   ;;  %vm2284_vm2 = vmmov 0   ;;  %s2286_s30 = smov 64   ;;  %s2288_s6 = smov 16   ;;  %s2681_s1 = inlined_call_operand.vmem [shape: f32[2,128], index: 1, kind: input, shape index: {}]   ;;  %s2682_s0 = inlined_call_operand.vmem [shape: f32[16,2], index: 0, kind: input, shape index: {}]   ;;  %s2683_s2 = inlined_call_operand.vmem [shape: f32[16,64], index: 2, kind: input, shape index: {}]   ;;  %s2684_s3 = inlined_call_operand.vmem [shape: f32[16,64], index: 3, kind: input, shape index: {}]   ;;  %s2685_s4 = inlined_call_operand.vmem [shape: f32[1,128], index: 4, kind: input, shape index: {}]   ;;  %s2686_s5 = inlined_call_operand.vmem [shape: f32[16,32], index: 5, kind: output, shape index: {}]  }
   0x1   :  { %v22_v0 = vld [vmem:[%s2681_s1] sm:$0x3]  ;;  %v21_v2 = vld [vmem:[%s2682_s0 + $0x8] sm:$0xff]  ;;  %2099 = vmatprep.subr.bf16.mxu1 %v2283_v3  ;;  %v2285_v9 = vmov 0.0   ;;  %s2289_s7 = smov 32   ;;  %vm120_vm3 = vcmask 130048  }
   0x2   :  { %v20_v1 = vld [vmem:[%s2682_s0] sm:$0xff]  ;;  %1982 = vmatprep.subr.msk.mxu0 %vm37_vm0, %v22_v0  ;;  %v117_v5 = vld [vmem:[%s2683_s2 + $0x8] sm:$0xff]  ;;  %1991 = vmatprep.mubr.msk.f32.mxu1 %vm2284_vm2, %v2285_v9  ;;  %s2290_s8 = smov 80   ;;  %vm323_vm4 = vcmask 123904   ;;  %vm329_vm5 = vcmask 261254   ;;  %vm552_vm6 = vcmask 259204  }
   0x3   :  { %1984 = vmatprep.mubr.msk.f32.mxu0 %vm30_vm1, %v20_v1  ;;  %v116_v4 = vld [vmem:[%s2683_s2] sm:$0xff]  ;;  %1983 = vmatpush3.msk.msra.mxu0 %vm37_vm0, %v22_v0  ;;  %v119_v8 = vld [vmem:[%s2684_s3 + $0x8] sm:$0xff]  ;;  %vm778_vm7 = vcmask 257154   ;;  %vm1003_vm8 = vcmask 255104   ;;  %vm546_vm9 = vcmask 125954   ;;  %vm772_vm10 = vcmask 128004  }
   0x4   :  { %v118_v6 = vld [vmem:[%s2684_s3] sm:$0xff]  ;;  %v2341_v7 = vpack.c.bf16 %v117_v5, %v116_v4  ;;  %1985 = vmatmul.mubr.msk.f32.vlgmr.msra.gmra.mrb[0].mxu0 %vm30_vm1, %v21_v2  ;;  %2102 = vmatprep.subr.bf16.mxu0 %v2283_v3  ;;  %vm997_vm11 = vcmask 130054  }
   0x5   :  { %v2350_v10 = vpack.c.bf16 %v119_v8, %v118_v6  ;;  %1998 = vmatprep.mubr.msk.f32.mxu0 %vm2284_vm2, %v2285_v9  ;;  %v1897_v11 = vld [vmem:[%s2685_s4] ss:$0 sm:$0xff]  ;;  %s2287_s4 = smov 96  }
   0x6   :  { %2101 = vmatpush3.bf16.msra.mxu1 %v2341_v7 }
   0x7   :  { %2104 = vmatpush3.bf16.msra.mxu0 %v2350_v10  ;;  %2105 = vmatprep.subr.bf16.mxu1 %v2283_v3 }
   0x8   :  { %2108 = vmatprep.subr.bf16.mxu0 %v2283_v3 }
   0x9   :  { %1992 = vmatmul.mubr.f32.vlgmr.msra.gmra.mrb[0].mxu1 %v2285_v9 }
   0xa   :  { %1999 = vmatmul.mubr.f32.vlgmr.msra.gmra.mrb[2].mxu0 %v2285_v9  ;;  %2107 = vmatpush3.bf16.msra.mxu1 %v2341_v7 }
   0xb   :  { %2110 = vmatpush3.bf16.msra.mxu0 %v2350_v10  ;;  %2012 = vmatprep.mubr.msk.f32.mxu0 %vm2284_vm2, %v2285_v9 }
   0xc   :  { %2005 = vmatprep.mubr.msk.f32.mxu1 %vm2284_vm2, %v2285_v9  ;;  %2114 = vmatprep.subr.bf16.mxu0 %v2283_v3 }
   0xd   :  { %2111 = vmatprep.subr.bf16.mxu1 %v2283_v3 }
  0xd7   :  { %v1986_v12 = vpop.f32.mrb[0].mxu0 }
  0xd8   :  { %v107_v13 = vpop.f32.mrb[1].mxu0  ;;  %v2374_v20 = vadd.f32 %v1986_v12, %v1897_v11 }
  0xd9   :  { %v2371_v14 = vadd.f32 %v1897_v11, %v107_v13 }
  0xdc   :  { %v190_v15 = vpop.f32.mrb[0].mxu1 }
  0xdd   :  { %v261_v16 = vpop.f32.mrb[2].mxu0  ;;  %v1993_v17 = vpop.f32.mrb[1].mxu1  ;;  %v194_v33 = vadd.f32 %v190_v15, %v2371_v14 }
  0xde   :  { %v266_v18 = vrot.slane %v261_v16, 2  ;;  %v2000_v19 = vpop.f32.mrb[3].mxu0 }
  0xdf   :  { %v1901_v36 = vmul.f32 -1.442695, %v194_v33 }
  0xe0   :  { %267 = vrot.lane.b32.xlu0 %v266_v18, %s2286_s30 }
 0x152   :  { %v268_v21 = vpop.permute.xlu0 %267 }
 0x153   :  { %v270_v22 = vadd.f32 %v268_v21, %v2374_v20 }
 0x155   :  { %2155 = vtanh.f32 %v270_v22  ;;  %v1902_v24 = vmul.f32 -1.442695, %v270_v22 }
 0x157   :  { %2157 = vpow2.f32 %v1902_v24 }
 0x15f   :  { %v2156_v23 = vpop.eup %2155 }
 0x160   :  { %304 = vrot.lane.b32.xlu0 %v2156_v23, %s2287_s4 }
 0x161   :  { %v2158_v25 = vpop.eup %2157 }
 0x162   :  { %v298_v26 = vadd.f32 1.0, %v2158_v25 }
 0x164   :  { %2159 = vrcp.f32 %v298_v26 }
 0x16e   :  { %v2160_v27 = vpop.eup %2159 }
 0x16f   :  { %v302_v30 = vmul.f32 0.0, %v2160_v27 }
 0x1d2   :  { %v305_v28 = vpop.permute.xlu0 %304 }
 0x1d3   :  { %v307_v29 = vmul.f32 %v2160_v27, %v305_v28 }
 0x1d5   :  { %309 = vrot.lane.b32.xlu1 %v307_v29, %s2288_s6 }
 0x247   :  { %v310_v31 = vpop.permute.xlu1 %309 }
 0x248   :  { %v2379_v32 = vadd.f32 %v310_v31, %v302_v30 }
 0x24a   :  { %2161 = vtanh.f32 %v2379_v32  ;;  %v523_v4 = vrot.slane %v2379_v32, 2 }
 0x24b   :  { %2163 = vtanh.f32 %v194_v33 }
 0x24c   :  { %2165 = vpow2.f32 %v1901_v36 }
 0x254   :  { %v2162_v34 = vpop.eup %2161 }
 0x255   :  { %315 = vrot.lane.b32.xlu1 %v2162_v34, %s2289_s7  ;;  %v2164_v35 = vpop.eup %2163 }
 0x256   :  { %v2166_v37 = vpop.eup %2165 }
 0x257   :  { %v274_v38 = vadd.f32 1.0, %v2166_v37 }
 0x259   :  { %280 = vrot.lane.b32.xlu1 %v2164_v35, %s2287_s4  ;;  %2167 = vrcp.f32 %v274_v38 }
 0x263   :  { %v2168_v42 = vpop.eup %2167 }
 0x264   :  { %v278_v46 = vmul.f32 0.0, %v2168_v42 }
 0x2c7   :  { %v316_v39 = vpop.permute.xlu1 %315 }
 0x2c8   :  { %v2385_v40 = vmul.f32 %v2160_v27, %v316_v39 }
 0x2ca   :  { %v407_v41 = vrot.slane %v2385_v40, 6 }
 0x2cb   :  { %v281_v43 = vpop.permute.xlu1 %280 }
 0x2cc   :  { %v283_v44 = vmul.f32 %v2168_v42, %v281_v43  ;;  %408 = vrot.lane.b32.xlu0 %v407_v41, %s2288_s6 }
 0x2ce   :  { %285 = vrot.lane.b32.xlu1 %v283_v44, %s2288_s6 }
 0x33e   :  { %v409_v45 = vpop.permute.xlu0 %408 }
 0x33f   :  { %2013 = vmatmul.mubr.msk.f32.vlgmr.msra.gmra.mrb[4].mxu0 %vm120_vm3, %v409_v45 }
 0x340   :  { %v286_v47 = vpop.permute.xlu1 %285  ;;  %2116 = vmatpush3.bf16.msra.mxu0 %v2350_v10  ;;  %2026 = vmatprep.mubr.msk.f32.mxu0 %vm2284_vm2, %v2285_v9 }
 0x341   :  { %v2394_v48 = vadd.f32 %v286_v47, %v278_v46  ;;  %2120 = vmatprep.subr.bf16.mxu0 %v2283_v3 }
 0x343   :  { %2169 = vtanh.f32 %v2394_v48  ;;  %v496_v27 = vrot.slane %v2394_v48, 6 }
 0x34d   :  { %v2170_v49 = vpop.eup %2169 }
 0x34e   :  { %291 = vrot.lane.b32.xlu1 %v2170_v49, %s2289_s7 }
 0x3c0   :  { %v292_v50 = vpop.permute.xlu1 %291 }
 0x3c1   :  { %v294_v51 = vmul.f32 %v2168_v42, %v292_v50 }
 0x3c3   :  { %320 = vrot.lane.b32.xlu1 %v294_v51, %s2290_s8 }
 0x412   :  { %v478_v52 = vpop.f32.mrb[4].mxu0 }
 0x413   :  { %v483_v53 = vrot.slane %v478_v52, 4  ;;  %v2014_v54 = vpop.f32.mrb[5].mxu0 }
 0x415   :  { %484 = vrot.lane.b32.xlu0 %v483_v53, %s2286_s30 }
 0x435   :  { %v321_v55 = vpop.permute.xlu1 %320 }
 0x436   :  { %324 = vst.msk [vmem:[%s2686_s5] sm:$0x3] %vm323_vm4, %v321_v55  ;;  %2006 = vmatmul.mubr.msk.f32.vlgmr.msra.gmra.mrb[2].mxu1 %vm120_vm3, %v321_v55 }
 0x437   :  { %2113 = vmatpush3.bf16.msra.mxu1 %v2341_v7  ;;  %2019 = vmatprep.mubr.msk.f32.mxu1 %vm2284_vm2, %v2285_v9 }
 0x438   :  { %2117 = vmatprep.subr.bf16.mxu1 %v2283_v3 }
 0x487   :  { %v485_v56 = vpop.permute.xlu0 %484 }
 0x488   :  { %v487_v57 = vadd.f32 %v485_v56, %v2374_v20 }
 0x48a   :  { %2171 = vtanh.f32 %v487_v57  ;;  %v1906_v59 = vmul.f32 -1.442695, %v487_v57 }
 0x48c   :  { %2173 = vpow2.f32 %v1906_v59 }
 0x494   :  { %v2172_v58 = vpop.eup %2171 }
 0x495   :  { %527 = vrot.lane.b32.xlu0 %v2172_v58, %s2287_s4 }
 0x496   :  { %v2174_v60 = vpop.eup %2173 }
 0x497   :  { %v518_v61 = vadd.f32 1.0, %v2174_v60 }
 0x499   :  { %2175 = vrcp.f32 %v518_v61 }
 0x4a3   :  { %v2176_v62 = vpop.eup %2175 }
 0x4a4   :  { %v525_v6 = vmul.f32 %v2176_v62, %v523_v4 }
 0x507   :  { %v528_v63 = vpop.permute.xlu0 %527 }
 0x508   :  { %v530_v0 = vmul.f32 %v2176_v62, %v528_v63 }
 0x509   :  { %v399_v1 = vpop.f32.mrb[2].mxu1 }
 0x50a   :  { %532 = vrot.lane.b32.xlu0 %v530_v0, %s2288_s6  ;;  %v2007_v2 = vpop.f32.mrb[3].mxu1  ;;  %v404_v5 = vrot.slane %v399_v1, 6 }
 0x50c   :  { %v406_v12 = vadd.f32 %v404_v5, %v2371_v14 }
 0x50e   :  { %v1905_v16 = vmul.f32 -1.442695, %v406_v12 }
 0x57c   :  { %v533_v8 = vpop.permute.xlu0 %532 }
 0x57d   :  { %v2414_v11 = vadd.f32 %v533_v8, %v525_v6 }
 0x57f   :  { %2177 = vtanh.f32 %v2414_v11  ;;  %v749_v51 = vrot.slane %v2414_v11, 2 }
 0x580   :  { %2179 = vtanh.f32 %v406_v12 }
 0x581   :  { %2181 = vpow2.f32 %v1905_v16 }
 0x589   :  { %v2178_v13 = vpop.eup %2177 }
 0x58a   :  { %538 = vrot.lane.b32.xlu0 %v2178_v13, %s2289_s7  ;;  %v2180_v15 = vpop.eup %2179 }
 0x58b   :  { %v2182_v17 = vpop.eup %2181 }
 0x58c   :  { %v491_v18 = vadd.f32 1.0, %v2182_v17 }
 0x58e   :  { %500 = vrot.lane.b32.xlu0 %v2180_v15, %s2287_s4  ;;  %2183 = vrcp.f32 %v491_v18 }
 0x598   :  { %v2184_v24 = vpop.eup %2183 }
 0x599   :  { %v498_v28 = vmul.f32 %v2184_v24, %v496_v27 }
 0x5fc   :  { %v539_v19 = vpop.permute.xlu0 %538 }
 0x5fd   :  { %v2420_v21 = vmul.f32 %v2176_v62, %v539_v19 }
 0x5ff   :  { %v633_v22 = vrot.slane %v2420_v21, 4 }
 0x600   :  { %v501_v23 = vpop.permute.xlu0 %500 }
 0x601   :  { %634 = vrot.lane.b32.xlu1 %v633_v22, %s2288_s6  ;;  %v503_v25 = vmul.f32 %v2184_v24, %v501_v23 }
 0x605   :  { %505 = vrot.lane.b32.xlu1 %v503_v25, %s2288_s6 }
 0x673   :  { %v635_v26 = vpop.permute.xlu1 %634 }
 0x674   :  { %2027 = vmatmul.mubr.msk.f32.vlgmr.msra.gmra.mrb[6].mxu0 %vm120_vm3, %v635_v26 }
 0x675   :  { %2122 = vmatpush3.bf16.msra.mxu0 %v2350_v10  ;;  %2040 = vmatprep.mubr.msk.f32.mxu0 %vm2284_vm2, %v2285_v9 }
 0x676   :  { %2126 = vmatprep.subr.bf16.mxu0 %v2283_v3 }
 0x677   :  { %v506_v29 = vpop.permute.xlu1 %505 }
 0x678   :  { %v2431_v30 = vadd.f32 %v506_v29, %v498_v28 }
 0x67a   :  { %2185 = vtanh.f32 %v2431_v30  ;;  %v722_v6 = vrot.slane %v2431_v30, 6 }
 0x684   :  { %v2186_v31 = vpop.eup %2185 }
 0x685   :  { %511 = vrot.lane.b32.xlu1 %v2186_v31, %s2289_s7 }
 0x6f7   :  { %v512_v32 = vpop.permute.xlu1 %511 }
 0x6f8   :  { %v2435_v33 = vmul.f32 %v2184_v24, %v512_v32 }
 0x6fa   :  { %v554_v34 = vrot.slane %v2435_v33, 2 }
 0x6fc   :  { %555 = vrot.lane.b32.xlu1 %v554_v34, %s2290_s8 }
 0x747   :  { %v704_v35 = vpop.f32.mrb[6].mxu0 }
 0x748   :  { %v709_v36 = vrot.slane %v704_v35, 6  ;;  %v2028_v37 = vpop.f32.mrb[7].mxu0 }
 0x74a   :  { %710 = vrot.lane.b32.xlu0 %v709_v36, %s2286_s30 }
 0x76e   :  { %v556_v38 = vpop.permute.xlu1 %555 }
 0x76f   :  { %2020 = vmatmul.mubr.msk.f32.vlgmr.msra.gmra.mrb[4].mxu1 %vm120_vm3, %v556_v38 }
 0x770   :  { %2119 = vmatpush3.bf16.msra.mxu1 %v2341_v7  ;;  %2033 = vmatprep.mubr.msk.f32.mxu1 %vm2284_vm2, %v2285_v9 }
 0x771   :  { %2123 = vmatprep.subr.bf16.mxu1 %v2283_v3 }
 0x7bc   :  { %v711_v39 = vpop.permute.xlu0 %710 }
 0x7bd   :  { %v713_v41 = vadd.f32 %v711_v39, %v2374_v20 }
 0x7bf   :  { %2187 = vtanh.f32 %v713_v41  ;;  %v1910_v43 = vmul.f32 -1.442695, %v713_v41 }
 0x7c1   :  { %2189 = vpow2.f32 %v1910_v43 }
 0x7c9   :  { %v2188_v42 = vpop.eup %2187 }
 0x7ca   :  { %753 = vrot.lane.b32.xlu0 %v2188_v42, %s2287_s4 }
 0x7cb   :  { %v2190_v44 = vpop.eup %2189 }
 0x7cc   :  { %v744_v45 = vadd.f32 1.0, %v2190_v44 }
 0x7ce   :  { %2191 = vrcp.f32 %v744_v45 }
 0x7d8   :  { %v2192_v46 = vpop.eup %2191 }
 0x7d9   :  { %v751_v53 = vmul.f32 %v2192_v46, %v749_v51 }
 0x83c   :  { %v754_v47 = vpop.permute.xlu0 %753 }
 0x83d   :  { %v756_v48 = vmul.f32 %v2192_v46, %v754_v47 }
 0x83f   :  { %758 = vrot.lane.b32.xlu0 %v756_v48, %s2288_s6 }
 0x842   :  { %v625_v49 = vpop.f32.mrb[4].mxu1 }
 0x843   :  { %v2021_v50 = vpop.f32.mrb[5].mxu1  ;;  %v630_v52 = vrot.slane %v625_v49, 4 }
 0x845   :  { %v632_v56 = vadd.f32 %v630_v52, %v2371_v14 }
 0x847   :  { %v1909_v59 = vmul.f32 -1.442695, %v632_v56 }
 0x8b1   :  { %v759_v54 = vpop.permute.xlu0 %758 }
 0x8b2   :  { %v2449_v55 = vadd.f32 %v759_v54, %v751_v53 }
 0x8b4   :  { %2193 = vtanh.f32 %v2449_v55  ;;  %v974_v35 = vrot.slane %v2449_v55, 2 }
 0x8b5   :  { %2195 = vtanh.f32 %v632_v56 }
 0x8b6   :  { %2197 = vpow2.f32 %v1909_v59 }
 0x8be   :  { %v2194_v57 = vpop.eup %2193 }
 0x8bf   :  { %764 = vrot.lane.b32.xlu1 %v2194_v57, %s2289_s7  ;;  %v2196_v58 = vpop.eup %2195 }
 0x8c0   :  { %v2198_v60 = vpop.eup %2197 }
 0x8c1   :  { %v717_v61 = vadd.f32 1.0, %v2198_v60 }
 0x8c3   :  { %726 = vrot.lane.b32.xlu1 %v2196_v58, %s2287_s4  ;;  %2199 = vrcp.f32 %v717_v61 }
 0x8cd   :  { %v2200_v2 = vpop.eup %2199 }
 0x8ce   :  { %v724_v8 = vmul.f32 %v2200_v2, %v722_v6 }
 0x931   :  { %v765_v62 = vpop.permute.xlu1 %764 }
 0x932   :  { %v2455_v63 = vmul.f32 %v2192_v46, %v765_v62 }
 0x934   :  { %v859_v0 = vrot.slane %v2455_v63, 2 }
 0x935   :  { %v727_v1 = vpop.permute.xlu1 %726 }
 0x936   :  { %860 = vrot.lane.b32.xlu0 %v859_v0, %s2288_s6  ;;  %v729_v4 = vmul.f32 %v2200_v2, %v727_v1 }
 0x93a   :  { %731 = vrot.lane.b32.xlu0 %v729_v4, %s2288_s6 }
 0x9a8   :  { %v861_v5 = vpop.permute.xlu0 %860 }
 0x9a9   :  { %2041 = vmatmul.mubr.msk.f32.vlgmr.msra.gmra.mrb[8].mxu0 %vm120_vm3, %v861_v5 }
 0x9aa   :  { %2128 = vmatpush3.bf16.msra.mxu0 %v2350_v10  ;;  %2054 = vmatprep.mubr.msk.f32.mxu0 %vm2284_vm2, %v2285_v9 }
 0x9ab   :  { %2132 = vmatprep.subr.bf16.mxu0 %v2283_v3 }
 0x9ac   :  { %v732_v11 = vpop.permute.xlu0 %731 }
 0x9ad   :  { %v734_v12 = vadd.f32 %v732_v11, %v724_v8 }
 0x9af   :  { %2201 = vtanh.f32 %v734_v12  ;;  %v947_v53 = vrot.slane %v734_v12, 6 }
 0x9b9   :  { %v2202_v13 = vpop.eup %2201 }
 0x9ba   :  { %737 = vrot.lane.b32.xlu1 %v2202_v13, %s2289_s7 }
 0xa2c   :  { %v738_v15 = vpop.permute.xlu1 %737 }
 0xa2d   :  { %v2467_v16 = vmul.f32 %v2200_v2, %v738_v15 }
 0xa2f   :  { %v780_v17 = vrot.slane %v2467_v16, 4 }
 0xa31   :  { %781 = vrot.lane.b32.xlu1 %v780_v17, %s2290_s8 }
 0xa7c   :  { %v930_v18 = vpop.f32.mrb[8].mxu0 }
 0xa7d   :  { %v2042_v19 = vpop.f32.mrb[9].mxu0  ;;  %935 = vrot.lane.b32.xlu0 %v930_v18, %s2286_s30 }
 0xaa3   :  { %v782_v22 = vpop.permute.xlu1 %781 }
 0xaa4   :  { %2034 = vmatmul.mubr.msk.f32.vlgmr.msra.gmra.mrb[6].mxu1 %vm120_vm3, %v782_v22 }
 0xaa5   :  { %2125 = vmatpush3.bf16.msra.mxu1 %v2341_v7  ;;  %2047 = vmatprep.mubr.msk.f32.mxu1 %vm2284_vm2, %v2285_v9 }
 0xaa6   :  { %2129 = vmatprep.subr.bf16.mxu1 %v2283_v3 }
 0xaef   :  { %v936_v23 = vpop.permute.xlu0 %935 }
 0xaf0   :  { %v938_v24 = vadd.f32 %v936_v23, %v2374_v20 }
 0xaf2   :  { %2203 = vtanh.f32 %v938_v24  ;;  %v1914_v26 = vmul.f32 -1.442695, %v938_v24 }
 0xaf4   :  { %2205 = vpow2.f32 %v1914_v26 }
 0xafc   :  { %v2204_v25 = vpop.eup %2203 }
 0xafd   :  { %978 = vrot.lane.b32.xlu0 %v2204_v25, %s2287_s4 }
 0xafe   :  { %v2206_v27 = vpop.eup %2205 }
 0xaff   :  { %v969_v28 = vadd.f32 1.0, %v2206_v27 }
 0xb01   :  { %2207 = vrcp.f32 %v969_v28 }
 0xb0b   :  { %v2208_v29 = vpop.eup %2207 }
 0xb0c   :  { %v976_v37 = vmul.f32 %v2208_v29, %v974_v35 }
 0xb6f   :  { %v979_v30 = vpop.permute.xlu0 %978 }
 0xb70   :  { %v981_v31 = vmul.f32 %v2208_v29, %v979_v30 }
 0xb72   :  { %983 = vrot.lane.b32.xlu1 %v981_v31, %s2288_s6 }
 0xb77   :  { %v851_v32 = vpop.f32.mrb[6].mxu1 }
 0xb78   :  { %v2035_v34 = vpop.f32.mrb[7].mxu1  ;;  %v856_v36 = vrot.slane %v851_v32, 2 }
 0xb7a   :  { %v858_v41 = vadd.f32 %v856_v36, %v2371_v14 }
 0xb7c   :  { %v1913_v44 = vmul.f32 -1.442695, %v858_v41 }
 0xbe4   :  { %v984_v38 = vpop.permute.xlu1 %983 }
 0xbe5   :  { %v2481_v39 = vadd.f32 %v984_v38, %v976_v37 }
 0xbe7   :  { %2209 = vtanh.f32 %v2481_v39  ;;  %v1196_v24 = vrot.slane %v2481_v39, 2 }
 0xbe8   :  { %2211 = vtanh.f32 %v858_v41 }
 0xbe9   :  { %2213 = vpow2.f32 %v1913_v44 }
 0xbf1   :  { %v2210_v42 = vpop.eup %2209 }
 0xbf2   :  { %989 = vrot.lane.b32.xlu0 %v2210_v42, %s2289_s7  ;;  %v2212_v43 = vpop.eup %2211 }
 0xbf3   :  { %v2214_v45 = vpop.eup %2213 }
 0xbf4   :  { %v942_v46 = vadd.f32 1.0, %v2214_v45 }
 0xbf6   :  { %951 = vrot.lane.b32.xlu0 %v2212_v43, %s2287_s4  ;;  %2215 = vrcp.f32 %v942_v46 }
 0xc00   :  { %v2216_v49 = vpop.eup %2215 }
 0xc01   :  { %v949_v54 = vmul.f32 %v2216_v49, %v947_v53 }
 0xc64   :  { %v990_v47 = vpop.permute.xlu0 %989 }
 0xc65   :  { %v2487_v48 = vmul.f32 %v2208_v29, %v990_v47 }
 0xc67   :  { %1081 = vrot.lane.b32.xlu1 %v2487_v48, %s2288_s6 }
 0xc68   :  { %v952_v50 = vpop.permute.xlu0 %951 }
 0xc69   :  { %v954_v51 = vmul.f32 %v2216_v49, %v952_v50 }
 0xc6b   :  { %956 = vrot.lane.b32.xlu1 %v954_v51, %s2288_s6 }
 0xcd9   :  { %v1082_v52 = vpop.permute.xlu1 %1081 }
 0xcda   :  { %2055 = vmatmul.mubr.msk.f32.vlgmr.msra.gmra.mrb[10].mxu0 %vm120_vm3, %v1082_v52 }
 0xcdb   :  { %2134 = vmatpush3.bf16.msra.mxu0 %v2350_v10  ;;  %2068 = vmatprep.mubr.msk.f32.mxu0 %vm2284_vm2, %v2285_v9 }
 0xcdc   :  { %2138 = vmatprep.subr.bf16.mxu0 %v2283_v3 }
 0xcdd   :  { %v957_v55 = vpop.permute.xlu1 %956 }
 0xcde   :  { %v959_v56 = vadd.f32 %v957_v55, %v949_v54 }
 0xce0   :  { %2217 = vtanh.f32 %v959_v56  ;;  %v1169_v37 = vrot.slane %v959_v56, 6 }
 0xcea   :  { %v2218_v57 = vpop.eup %2217 }
 0xceb   :  { %962 = vrot.lane.b32.xlu0 %v2218_v57, %s2289_s7 }
 0xd5d   :  { %v963_v58 = vpop.permute.xlu0 %962 }
 0xd5e   :  { %v2498_v59 = vmul.f32 %v2216_v49, %v963_v58 }
 0xd60   :  { %v1005_v60 = vrot.slane %v2498_v59, 6 }
 0xd62   :  { %1006 = vrot.lane.b32.xlu1 %v1005_v60, %s2290_s8 }
 0xdad   :  { %v1151_v61 = vpop.f32.mrb[10].mxu0 }
 0xdae   :  { %v1156_v62 = vrot.slane %v1151_v61, 2  ;;  %v2056_v0 = vpop.f32.mrb[11].mxu0 }
 0xdb0   :  { %1157 = vrot.lane.b32.xlu0 %v1156_v62, %s2286_s30 }
 0xdd4   :  { %v1007_v1 = vpop.permute.xlu1 %1006 }
 0xdd5   :  { %2048 = vmatmul.mubr.msk.f32.vlgmr.msra.gmra.mrb[8].mxu1 %vm120_vm3, %v1007_v1 }
 0xdd6   :  { %2131 = vmatpush3.bf16.msra.mxu1 %v2341_v7  ;;  %2061 = vmatprep.mubr.msk.f32.mxu1 %vm2284_vm2, %v2285_v9 }
 0xdd7   :  { %2135 = vmatprep.subr.bf16.mxu1 %v2283_v3 }
 0xe22   :  { %v1158_v2 = vpop.permute.xlu0 %1157 }
 0xe23   :  { %v1160_v4 = vadd.f32 %v1158_v2, %v2371_v14 }
 0xe25   :  { %2219 = vtanh.f32 %v1160_v4  ;;  %v1918_v6 = vmul.f32 -1.442695, %v1160_v4 }
 0xe27   :  { %2221 = vpow2.f32 %v1918_v6 }
 0xe2f   :  { %v2220_v5 = vpop.eup %2219 }
 0xe30   :  { %1200 = vrot.lane.b32.xlu1 %v2220_v5, %s2287_s4 }
 0xe31   :  { %v2222_v8 = vpop.eup %2221 }
 0xe32   :  { %v1191_v11 = vadd.f32 1.0, %v2222_v8 }
 0xe34   :  { %2223 = vrcp.f32 %v1191_v11 }
 0xe3e   :  { %v2224_v12 = vpop.eup %2223 }
 0xe3f   :  { %v1198_v25 = vmul.f32 %v2224_v12, %v1196_v24 }
 0xea2   :  { %v1201_v13 = vpop.permute.xlu1 %1200 }
 0xea3   :  { %v1203_v15 = vmul.f32 %v2224_v12, %v1201_v13 }
 0xea5   :  { %1205 = vrot.lane.b32.xlu0 %v1203_v15, %s2288_s6 }
 0xea8   :  { %v1076_v17 = vpop.f32.mrb[8].mxu1 }
 0xea9   :  { %v1080_v18 = vadd.f32 %v1076_v17, %v2374_v20  ;;  %v2049_v19 = vpop.f32.mrb[9].mxu1 }
 0xeab   :  { %2225 = vtanh.f32 %v1080_v18  ;;  %v1917_v23 = vmul.f32 -1.442695, %v1080_v18 }
 0xead   :  { %2227 = vpow2.f32 %v1917_v23 }
 0xeb5   :  { %v2226_v22 = vpop.eup %2225 }
 0xeb6   :  { %1173 = vrot.lane.b32.xlu0 %v2226_v22, %s2287_s4 }
 0xeb7   :  { %v2228_v26 = vpop.eup %2227 }
 0xeb8   :  { %v1164_v29 = vadd.f32 1.0, %v2228_v26 }
 0xf17   :  { %v1206_v27 = vpop.permute.xlu0 %1205 }
 0xf18   :  { %v2514_v28 = vadd.f32 %v1206_v27, %v1198_v25 }
 0xf1a   :  { %2229 = vtanh.f32 %v2514_v28  ;;  %v1417_v13 = vrot.slane %v2514_v28, 2 }
 0xf1b   :  { %2231 = vrcp.f32 %v1164_v29 }
 0xf24   :  { %v2230_v30 = vpop.eup %2229 }
 0xf25   :  { %1211 = vrot.lane.b32.xlu1 %v2230_v30, %s2289_s7  ;;  %v2232_v31 = vpop.eup %2231 }
 0xf26   :  { %v1171_v39 = vmul.f32 %v2232_v31, %v1169_v37 }
 0xf28   :  { %v1174_v32 = vpop.permute.xlu0 %1173 }
 0xf29   :  { %v1176_v34 = vmul.f32 %v2232_v31, %v1174_v32 }
 0xf2b   :  { %1178 = vrot.lane.b32.xlu0 %v1176_v34, %s2288_s6 }
 0xf97   :  { %v1212_v35 = vpop.permute.xlu1 %1211 }
 0xf98   :  { %v2519_v36 = vmul.f32 %v2224_v12, %v1212_v35 }
 0xf9a   :  { %v1301_v38 = vrot.slane %v2519_v36, 6 }
 0xf9c   :  { %1302 = vrot.lane.b32.xlu1 %v1301_v38, %s2288_s6 }
 0xf9d   :  { %v1179_v41 = vpop.permute.xlu0 %1178 }
 0xf9e   :  { %v1181_v42 = vadd.f32 %v1179_v41, %v1171_v39 }
 0xfa0   :  { %2233 = vtanh.f32 %v1181_v42  ;;  %v1390_v22 = vrot.slane %v1181_v42, 6 }
 0xfaa   :  { %v2234_v43 = vpop.eup %2233 }
 0xfab   :  { %1184 = vrot.lane.b32.xlu1 %v2234_v43, %s2289_s7 }
0x100e   :  { %v1303_v44 = vpop.permute.xlu1 %1302 }
0x100f   :  { %2069 = vmatmul.mubr.msk.f32.vlgmr.msra.gmra.mrb[12].mxu0 %vm120_vm3, %v1303_v44 }
0x1010   :  { %2140 = vmatpush3.bf16.msra.mxu0 %v2350_v10  ;;  %2082 = vmatprep.mubr.msk.f32.mxu0 %vm2284_vm2, %v2285_v9 }
0x1011   :  { %2144 = vmatprep.subr.bf16.mxu0 %v2283_v3 }
0x101d   :  { %v1185_v45 = vpop.permute.xlu1 %1184 }
0x101e   :  { %v1187_v46 = vmul.f32 %v2232_v31, %v1185_v45 }
0x1020   :  { %1216 = vrot.lane.b32.xlu0 %v1187_v46, %s2290_s8 }
0x1092   :  { %v2530_v47 = vpop.permute.xlu0 %1216 }
0x1093   :  { %2062 = vmatmul.mubr.msk.f32.vlgmr.msra.gmra.mrb[10].mxu1 %vm120_vm3, %v2530_v47 }
0x1094   :  { %2137 = vmatpush3.bf16.msra.mxu1 %v2341_v7  ;;  %2075 = vmatprep.mubr.msk.f32.mxu1 %vm2284_vm2, %v2285_v9 }
0x1095   :  { %2141 = vmatprep.subr.bf16.mxu1 %v2283_v3 }
0x10e2   :  { %v1372_v49 = vpop.f32.mrb[12].mxu0 }
0x10e3   :  { %v1377_v50 = vrot.slane %v1372_v49, 4  ;;  %v2070_v51 = vpop.f32.mrb[13].mxu0 }
0x10e5   :  { %1378 = vrot.lane.b32.xlu1 %v1377_v50, %s2286_s30 }
0x1157   :  { %v1379_v52 = vpop.permute.xlu1 %1378 }
0x1158   :  { %v1381_v53 = vadd.f32 %v1379_v52, %v2371_v14 }
0x115a   :  { %2235 = vtanh.f32 %v1381_v53  ;;  %v1922_v3 = vmul.f32 -1.442695, %v1381_v53 }
0x1164   :  { %v2236_v54 = vpop.eup %2235 }
0x1165   :  { %1421 = vrot.lane.b32.xlu0 %v2236_v54, %s2287_s4 }
0x1166   :  { %v1293_v55 = vpop.f32.mrb[10].mxu1 }
0x1167   :  { %v1298_v56 = vrot.slane %v1293_v55, 6  ;;  %v2063_v57 = vpop.f32.mrb[11].mxu1 }
0x1169   :  { %v1300_v58 = vadd.f32 %v1298_v56, %v2374_v20 }
0x116b   :  { %2237 = vtanh.f32 %v1300_v58  ;;  %v1921_v0 = vmul.f32 -1.442695, %v1300_v58 }
0x116c   :  { %2239 = vpow2.f32 %v1922_v3 }
0x1175   :  { %v2238_v60 = vpop.eup %2237 }
0x1176   :  { %1394 = vrot.lane.b32.xlu0 %v2238_v60, %s2287_s4  ;;  %v2240_v61 = vpop.eup %2239 }
0x1177   :  { %v1412_v62 = vadd.f32 1.0, %v2240_v61 }
0x1179   :  { %2241 = vrcp.f32 %v1412_v62 }
0x117a   :  { %2243 = vpow2.f32 %v1921_v0 }
0x1183   :  { %v2242_v1 = vpop.eup %2241 }
0x1184   :  { %v2244_v2 = vpop.eup %2243  ;;  %v1419_v15 = vmul.f32 %v2242_v1, %v1417_v13 }
0x1185   :  { %v1385_v6 = vadd.f32 1.0, %v2244_v2 }
0x1187   :  { %2245 = vrcp.f32 %v1385_v6 }
0x1191   :  { %v2246_v8 = vpop.eup %2245 }
0x1192   :  { %v1392_v23 = vmul.f32 %v2246_v8, %v1390_v22 }
0x11d7   :  { %v1422_v4 = vpop.permute.xlu0 %1421 }
0x11d8   :  { %v1424_v5 = vmul.f32 %v2242_v1, %v1422_v4 }
0x11da   :  { %1426 = vrot.lane.b32.xlu1 %v1424_v5, %s2288_s6 }
0x11e8   :  { %v1395_v11 = vpop.permute.xlu0 %1394 }
0x11e9   :  { %v1397_v12 = vmul.f32 %v2246_v8, %v1395_v11 }
0x11eb   :  { %1399 = vrot.lane.b32.xlu0 %v1397_v12, %s2288_s6 }
0x124c   :  { %v1427_v17 = vpop.permute.xlu1 %1426 }
0x124d   :  { %v2546_v18 = vadd.f32 %v1427_v17, %v1419_v15 }
0x124f   :  { %2247 = vtanh.f32 %v2546_v18  ;;  %v1641_v2 = vrot.slane %v2546_v18, 2 }
0x1259   :  { %v2248_v19 = vpop.eup %2247 }
0x125a   :  { %1432 = vrot.lane.b32.xlu1 %v2248_v19, %s2289_s7 }
0x125d   :  { %v1400_v24 = vpop.permute.xlu0 %1399 }
0x125e   :  { %v1402_v25 = vadd.f32 %v1400_v24, %v1392_v23 }
0x1260   :  { %2249 = vtanh.f32 %v1402_v25  ;;  %v1614_v3 = vrot.slane %v1402_v25, 6 }
0x126a   :  { %v2250_v26 = vpop.eup %2249 }
0x126b   :  { %1405 = vrot.lane.b32.xlu0 %v2250_v26, %s2289_s7 }
0x12cc   :  { %v1433_v27 = vpop.permute.xlu1 %1432 }
0x12cd   :  { %v2551_v29 = vmul.f32 %v2242_v1, %v1433_v27 }
0x12cf   :  { %v1525_v28 = vrot.slane %v2551_v29, 4 }
0x12d1   :  { %1526 = vrot.lane.b32.xlu1 %v1525_v28, %s2288_s6 }
0x12dd   :  { %v1406_v30 = vpop.permute.xlu0 %1405 }
0x12de   :  { %v2555_v31 = vmul.f32 %v2246_v8, %v1406_v30 }
0x12e0   :  { %v1446_v32 = vrot.slane %v2555_v31, 2 }
0x12e2   :  { %1447 = vrot.lane.b32.xlu1 %v1446_v32, %s2290_s8 }
0x1343   :  { %v1527_v34 = vpop.permute.xlu1 %1526 }
0x1344   :  { %2083 = vmatmul.mubr.msk.f32.vlgmr.msra.gmra.mrb[14].mxu0 %vm120_vm3, %v1527_v34 }
0x1345   :  { %2146 = vmatpush3.bf16.msra.mxu0 %v2350_v10  ;;  %2096 = vmatprep.mubr.msk.f32.mxu0 %vm2284_vm2, %v2285_v9 }
0x1354   :  { %v1448_v35 = vpop.permute.xlu1 %1447 }
0x1355   :  { %2076 = vmatmul.mubr.msk.f32.vlgmr.msra.gmra.mrb[12].mxu1 %vm120_vm3, %v1448_v35 }
0x1356   :  { %2143 = vmatpush3.bf16.msra.mxu1 %v2341_v7  ;;  %2089 = vmatprep.mubr.msk.f32.mxu1 %vm2284_vm2, %v2285_v9 }
0x1417   :  { %v1596_v37 = vpop.f32.mrb[14].mxu0 }
0x1418   :  { %v1601_v38 = vrot.slane %v1596_v37, 6  ;;  %v2084_v39 = vpop.f32.mrb[15].mxu0 }
0x141a   :  { %1602 = vrot.lane.b32.xlu0 %v1601_v38, %s2286_s30 }
0x1428   :  { %v1517_v41 = vpop.f32.mrb[12].mxu1 }
0x1429   :  { %v1522_v42 = vrot.slane %v1517_v41, 4  ;;  %v2077_v43 = vpop.f32.mrb[13].mxu1 }
0x142b   :  { %v1524_v10 = vadd.f32 %v1522_v42, %v2374_v20 }
0x142d   :  { %2251 = vtanh.f32 %v1524_v10  ;;  %v1925_v45 = vmul.f32 -1.442695, %v1524_v10 }
0x142f   :  { %2253 = vpow2.f32 %v1925_v45 }
0x1437   :  { %v2252_v44 = vpop.eup %2251 }
0x1438   :  { %1618 = vrot.lane.b32.xlu0 %v2252_v44, %s2287_s4 }
0x1439   :  { %v2254_v9 = vpop.eup %2253 }
0x143a   :  { %v1609_v50 = vadd.f32 1.0, %v2254_v9 }
0x148c   :  { %v1603_v46 = vpop.permute.xlu0 %1602 }
0x148d   :  { %v1605_v7 = vadd.f32 %v1603_v46, %v2371_v14 }
0x148f   :  { %2255 = vtanh.f32 %v1605_v7  ;;  %v1926_v54 = vmul.f32 -1.442695, %v1605_v7 }
0x1490   :  { %2257 = vrcp.f32 %v1609_v50 }
0x1491   :  { %2259 = vpow2.f32 %v1926_v54 }
0x1499   :  { %v2256_v49 = vpop.eup %2255 }
0x149a   :  { %1645 = vrot.lane.b32.xlu1 %v2256_v49, %s2287_s4  ;;  %v2258_v51 = vpop.eup %2257 }
0x149b   :  { %v2260_v55 = vpop.eup %2259  ;;  %v1616_v61 = vmul.f32 %v2258_v51, %v1614_v3 }
0x149c   :  { %v1636_v56 = vadd.f32 1.0, %v2260_v55 }
0x149e   :  { %2261 = vrcp.f32 %v1636_v56 }
0x14a8   :  { %v2262_v57 = vpop.eup %2261 }
0x14a9   :  { %v1643_v4 = vmul.f32 %v2262_v57, %v1641_v2 }
0x14aa   :  { %v1619_v52 = vpop.permute.xlu0 %1618 }
0x14ab   :  { %v1621_v53 = vmul.f32 %v2258_v51, %v1619_v52 }
0x14ad   :  { %1623 = vrot.lane.b32.xlu0 %v1621_v53, %s2288_s6 }
0x150c   :  { %v1646_v58 = vpop.permute.xlu1 %1645 }
0x150d   :  { %v1648_v60 = vmul.f32 %v2262_v57, %v1646_v58 }
0x150f   :  { %1650 = vrot.lane.b32.xlu1 %v1648_v60, %s2288_s6 }
0x151f   :  { %v1624_v62 = vpop.permute.xlu0 %1623 }
0x1520   :  { %v1626_v0 = vadd.f32 %v1624_v62, %v1616_v61 }
0x1522   :  { %2263 = vtanh.f32 %v1626_v0  ;;  %v1837_v43 = vrot.slane %v1626_v0, 6 }
0x152c   :  { %v2264_v1 = vpop.eup %2263 }
0x152d   :  { %1629 = vrot.lane.b32.xlu0 %v2264_v1, %s2289_s7 }
0x1581   :  { %v1651_v5 = vpop.permute.xlu1 %1650 }
0x1582   :  { %v2576_v6 = vadd.f32 %v1651_v5, %v1643_v4 }
0x1584   :  { %2265 = vtanh.f32 %v2576_v6  ;;  %v1864_v55 = vrot.slane %v2576_v6, 2 }
0x158e   :  { %v2266_v8 = vpop.eup %2265 }
0x158f   :  { %1656 = vrot.lane.b32.xlu1 %v2266_v8, %s2289_s7 }
0x159f   :  { %v1630_v11 = vpop.permute.xlu0 %1629 }
0x15a0   :  { %v1632_v12 = vmul.f32 %v2258_v51, %v1630_v11 }
0x15a2   :  { %v1670_v13 = vrot.slane %v1632_v12, 4 }
0x15a4   :  { %1671 = vrot.lane.b32.xlu0 %v1670_v13, %s2290_s8 }
0x1601   :  { %v1657_v15 = vpop.permute.xlu1 %1656 }
0x1602   :  { %v2581_v17 = vmul.f32 %v2262_v57, %v1657_v15 }
0x1604   :  { %v1749_v19 = vrot.slane %v2581_v17, 2 }
0x1606   :  { %1750 = vrot.lane.b32.xlu1 %v1749_v19, %s2288_s6 }
0x1616   :  { %v1672_v18 = vpop.permute.xlu0 %1671 }
0x1617   :  { %2090 = vmatmul.mubr.msk.f32.vlgmr.msra.gmra.mrb[14].mxu1 %vm120_vm3, %v1672_v18 }
0x1678   :  { %v1751_v22 = vpop.permute.xlu1 %1750 }
0x1679   :  { %2097 = vmatmul.mubr.msk.f32.vlgmr.msra.gmra.mrb[16].mxu0 %vm120_vm3, %v1751_v22 }
0x16ea   :  { %v1741_v23 = vpop.f32.mrb[14].mxu1 }
0x16eb   :  { %v1746_v24 = vrot.slane %v1741_v23, 2  ;;  %v2091_v25 = vpop.f32.mrb[15].mxu1 }
0x16ed   :  { %v1748_v26 = vadd.f32 %v1746_v24, %v2374_v20 }
0x16ef   :  { %2267 = vtanh.f32 %v1748_v26  ;;  %v1929_v30 = vmul.f32 -1.442695, %v1748_v26 }
0x16f1   :  { %2269 = vpow2.f32 %v1929_v30 }
0x16f9   :  { %v2268_v27 = vpop.eup %2267 }
0x16fa   :  { %1841 = vrot.lane.b32.xlu0 %v2268_v27, %s2287_s4 }
0x16fb   :  { %v2270_v34 = vpop.eup %2269 }
0x16fc   :  { %v1832_v35 = vadd.f32 1.0, %v2270_v34 }
0x16fe   :  { %2271 = vrcp.f32 %v1832_v35 }
0x1708   :  { %v2272_v37 = vpop.eup %2271 }
0x1709   :  { %v1839_v10 = vmul.f32 %v2272_v37, %v1837_v43 }
0x174c   :  { %v1820_v28 = vpop.f32.mrb[16].mxu0 }
0x174d   :  { %1825 = vrot.lane.b32.xlu1 %v1820_v28, %s2286_s30  ;;  %v2098_v32 = vpop.f32.mrb[17].mxu0 }
0x176c   :  { %v1842_v38 = vpop.permute.xlu0 %1841 }
0x176d   :  { %v1844_v39 = vmul.f32 %v2272_v37, %v1842_v38 }
0x176f   :  { %1846 = vrot.lane.b32.xlu0 %v1844_v39, %s2288_s6 }
0x17bf   :  { %v1826_v41 = vpop.permute.xlu1 %1825 }
0x17c0   :  { %v1828_v20 = vadd.f32 %v1826_v41, %v2371_v14 }
0x17c2   :  { %2273 = vtanh.f32 %v1828_v20  ;;  %v1930_v14 = vmul.f32 -1.442695, %v1828_v20 }
0x17cc   :  { %v2274_v42 = vpop.eup %2273 }
0x17cd   :  { %1868 = vrot.lane.b32.xlu1 %v2274_v42, %s2287_s4 }
0x17e1   :  { %v1847_v44 = vpop.permute.xlu0 %1846 }
0x17e2   :  { %v1849_v45 = vadd.f32 %v1847_v44, %v1839_v10 }
0x17e4   :  { %2275 = vtanh.f32 %v1849_v45 }
0x17e5   :  { %2277 = vpow2.f32 %v1930_v14 }
0x17ee   :  { %v2276_v46 = vpop.eup %2275 }
0x17ef   :  { %1852 = vrot.lane.b32.xlu0 %v2276_v46, %s2289_s7  ;;  %v2278_v7 = vpop.eup %2277 }
0x17f0   :  { %v1859_v9 = vadd.f32 1.0, %v2278_v7 }
0x17f2   :  { %2279 = vrcp.f32 %v1859_v9 }
0x17f3   :  { %326 = vrot.lane.b32.xlu0 %v2385_v40, %s2289_s7 }
0x17f7   :  { %549 = vrot.lane.b32.xlu0 %v2420_v21, %s2289_s7 }
0x17fb   :  { %775 = vrot.lane.b32.xlu0 %v2455_v63, %s2289_s7 }
0x17fc   :  { %v2280_v40 = vpop.eup %2279 }
0x17fd   :  { %v1866_v56 = vmul.f32 %v2280_v40, %v1864_v55 }
0x17ff   :  { %1000 = vrot.lane.b32.xlu0 %v2487_v48, %s2289_s7 }
0x1803   :  { %1437 = vrot.lane.b32.xlu0 %v2555_v31, %s2290_s8 }
0x1807   :  { %1661 = vrot.lane.b32.xlu0 %v1632_v12, %s2290_s8 }
0x183f   :  { %v1869_v49 = vpop.permute.xlu1 %1868 }
0x1840   :  { %v1871_v50 = vmul.f32 %v2280_v40, %v1869_v49 }
0x1842   :  { %1873 = vrot.lane.b32.xlu1 %v1871_v50, %s2288_s6 }
0x1861   :  { %v1853_v21 = vpop.permute.xlu0 %1852 }
0x1862   :  { %v1855_v63 = vmul.f32 %v2272_v37, %v1853_v21 }
0x1864   :  { %1884 = vrot.lane.b32.xlu0 %v1855_v63, %s2290_s8 }
0x1865   :  { %v327_v48 = vpop.permute.xlu0 %326 }
0x1866   :  { %330 = vst.msk [vmem:[%s2686_s5 + $0x8] sm:$0xc0] %vm329_vm5, %v327_v48 }
0x1869   :  { %v550_v31 = vpop.permute.xlu0 %549 }
0x186a   :  { %553 = vst.msk [vmem:[%s2686_s5 + $0x8] sm:$0x30] %vm552_vm6, %v550_v31 }
0x186d   :  { %v776_v51 = vpop.permute.xlu0 %775 }
0x186e   :  { %779 = vst.msk [vmem:[%s2686_s5 + $0x8] sm:$0xc] %vm778_vm7, %v776_v51 }
0x1871   :  { %v1001_v52 = vpop.permute.xlu0 %1000 }
0x1872   :  { %1004 = vst.msk [vmem:[%s2686_s5 + $0x8] sm:$0x3] %vm1003_vm8, %v1001_v52 }
0x1873   :  { %1219 = vst.msk [vmem:[%s2686_s5 + $0x8] sm:$0x3] %vm323_vm4, %v2530_v47 }
0x1875   :  { %v1438_v53 = vpop.permute.xlu0 %1437 }
0x1876   :  { %1440 = vst.msk [vmem:[%s2686_s5 + $0x8] sm:$0xc] %vm546_vm9, %v1438_v53 }
0x1879   :  { %v1662_v54 = vpop.permute.xlu0 %1661 }
0x187a   :  { %1664 = vst.msk [vmem:[%s2686_s5 + $0x8] sm:$0x30] %vm772_vm10, %v1662_v54 }
0x18b4   :  { %v1874_v57 = vpop.permute.xlu1 %1873 }
0x18b5   :  { %v1876_v58 = vadd.f32 %v1874_v57, %v1866_v56 }
0x18b7   :  { %2281 = vtanh.f32 %v1876_v58 }
0x18c1   :  { %v2282_v47 = vpop.eup %2281 }
0x18c2   :  { %1879 = vrot.lane.b32.xlu1 %v2282_v47, %s2289_s7 }
0x18c6   :  { %543 = vrot.lane.b32.xlu1 %v2435_v33, %s2290_s8 }
0x18ca   :  { %769 = vrot.lane.b32.xlu1 %v2467_v16, %s2290_s8 }
0x18ce   :  { %994 = vrot.lane.b32.xlu1 %v2498_v59, %s2290_s8 }
0x18d2   :  { %1221 = vrot.lane.b32.xlu1 %v2519_v36, %s2289_s7 }
0x18d6   :  { %v1885_v60 = vpop.permute.xlu0 %1884  ;;  %1442 = vrot.lane.b32.xlu1 %v2551_v29, %s2289_s7 }
0x18d7   :  { %1887 = vst.msk [vmem:[%s2686_s5 + $0x8] sm:$0xc0] %vm997_vm11, %v1885_v60 }
0x18da   :  { %1666 = vrot.lane.b32.xlu1 %v2581_v17, %s2289_s7 }
0x1934   :  { %v1880_v33 = vpop.permute.xlu1 %1879 }
0x1935   :  { %v1882_v16 = vmul.f32 %v2280_v40, %v1880_v33 }
0x1937   :  { %1889 = vrot.lane.b32.xlu1 %v1882_v16, %s2289_s7 }
0x1938   :  { %v544_v59 = vpop.permute.xlu1 %543 }
0x1939   :  { %547 = vst.msk [vmem:[%s2686_s5] sm:$0xc] %vm546_vm9, %v544_v59 }
0x193c   :  { %v770_v36 = vpop.permute.xlu1 %769 }
0x193d   :  { %773 = vst.msk [vmem:[%s2686_s5] sm:$0x30] %vm772_vm10, %v770_v36 }
0x1940   :  { %v995_v29 = vpop.permute.xlu1 %994 }
0x1941   :  { %998 = vst.msk [vmem:[%s2686_s5] sm:$0xc0] %vm997_vm11, %v995_v29 }
0x1944   :  { %v1222_v3 = vpop.permute.xlu1 %1221 }
0x1945   :  { %1224 = vst.msk [vmem:[%s2686_s5] sm:$0xc0] %vm329_vm5, %v1222_v3 }
0x1948   :  { %v1443_v61 = vpop.permute.xlu1 %1442 }
0x1949   :  { %1445 = vst.msk [vmem:[%s2686_s5] sm:$0x30] %vm552_vm6, %v1443_v61 }
0x194c   :  { %v1667_v62 = vpop.permute.xlu1 %1666 }
0x194d   :  { %1669 = vst.msk [vmem:[%s2686_s5] sm:$0xc] %vm778_vm7, %v1667_v62 }
0x19a9   :  { %v1890_v0 = vpop.permute.xlu1 %1889 }
0x19aa   :  { %1892 = vst.msk [vmem:[%s2686_s5] sm:$0x3] %vm1003_vm8, %v1890_v0 }

// kernel: mlp_mixer_forward.3
= control target key start
LH: loop header
LB: loop body
LE: loop exit
PB: predicated region body
PF: predicated region fallthrough
CT: control target
= control target key end

     0   :  { %vm66_vm0 = vcmask 261120   ;;  %v2779_v4 = vmov 0   ;;  %vm168_vm1 = vcmask 64512   ;;  %v2780_v55 = vmov 0.0|0.0   ;;  %s3625_s0 = inlined_call_operand.vmem [shape: f32[16,32], index: 0, kind: input, shape index: {}]   ;;  %s3626_s4 = inlined_call_operand.vmem [shape: f32[2,64,1], index: 4, kind: input, shape index: {}]   ;;  %s3627_s3 = inlined_call_operand.vmem [shape: f32[2,64,8], index: 3, kind: input, shape index: {}]   ;;  %s3628_s6 = inlined_call_operand.vmem [shape: f32[2,8,1], index: 6, kind: input, shape index: {}]   ;;  %s3629_s1 = inlined_call_operand.vmem [shape: f32[2,1,32], index: 1, kind: input, shape index: {}]   ;;  %s3630_s2 = inlined_call_operand.vmem [shape: f32[2,1,32], index: 2, kind: input, shape index: {}]   ;;  %s3631_s5 = inlined_call_operand.vmem [shape: f32[2,8,64], index: 5, kind: input, shape index: {}]   ;;  %s3632_s7 = inlined_call_operand.vmem [shape: f32[2,1,32], index: 7, kind: input, shape index: {}]   ;;  %s3633_s8 = inlined_call_operand.vmem [shape: f32[2,1,32], index: 8, kind: input, shape index: {}]   ;;  %s3634_s9 = inlined_call_operand.vmem [shape: f32[2,32,64], index: 9, kind: input, shape index: {}]   ;;  %s3635_s11 = inlined_call_operand.vmem [shape: f32[2,64,32], index: 11, kind: input, shape index: {}]   ;;  %s3636_s10 = inlined_call_operand.vmem [shape: f32[2,1,64], index: 10, kind: input, shape index: {}]   ;;  %s3637_s12 = inlined_call_operand.vmem [shape: f32[2,1,32], index: 12, kind: input, shape index: {}]   ;;  %s3638_s15 = inlined_call_operand.vmem [shape: f32[32,128], index: 15, kind: input, shape index: {}]   ;;  %s3639_s13 = inlined_call_operand.vmem [shape: f32[1,32], index: 13, kind: input, shape index: {}]   ;;  %s3640_s14 = inlined_call_operand.vmem [shape: f32[1,32], index: 14, kind: input, shape index: {}]   ;;  %s3641_s17 = inlined_call_operand.vmem [shape: f32[128,128], index: 17, kind: input, shape index: {}]   ;;  %s3642_s16 = inlined_call_operand.vmem [shape: f32[1,128], index: 16, kind: input, shape index: {}]   ;;  %s3643_s18 = inlined_call_operand.vmem [shape: f32[1,128], index: 18, kind: input, shape index: {}]   ;;  %s3644_s19 = inlined_call_operand.vmem [shape: f32[2,128], index: 19, kind: output, shape index: {}]  }
   0x1   :  { %3649 = sst [smem:[#allocation2_spill]] %s3625_s0  ;;  %2685 = vset.pattern.permute.xlu1 %v2779_v4  ;;  %2686 = vset.pattern.permute.xlu0 %v2779_v4  ;;  %v2094_v39 = vld [vmem:[%s3629_s1] ss:$0 sm:$0xff]  ;;  %vm2781_vm2 = vmmov 0   ;;  %v2782_v56 = vmov 0.0   ;;  %vm375_vm3 = vcmask 523264  }
   0x2   :  { %3650 = sst [smem:[#allocation3_spill]] %s3626_s4  ;;  %s3653_s20 = sld [smem:[#allocation2_spill]]  ;;  %v2095_v42 = vld [vmem:[%s3630_s2] ss:$0 sm:$0xff]  ;;  %vm1909_vm4 = vcmask 1040384  }
   0x3   :  { %3651 = sst [smem:[#allocation4_spill]] %s3627_s3  ;;  %s3654_s23 = sld [smem:[#allocation3_spill]] }
   0x4   :  { %3652 = sst [smem:[#allocation5_spill]] %s3628_s6  ;;  %s3655_s24 = sld [smem:[#allocation4_spill]] }
   0x5   :  { %s3656_s28 = sld [smem:[#allocation5_spill]] }
   0x8   :  { %v2886_v0 = vld [vmem:[%s3653_s20] sm:$0xff]  ;;  %v2891_v1 = vld [vmem:[%s3653_s20 + $0x8] sm:$0xff] }
   0x9   :  { %v67_v2 = vsel %vm66_vm0, %v2886_v0, 0.0  ;;  %v70_v3 = vsel %vm66_vm0, %v2891_v1, 0.0  ;;  %v118_v5 = vld [vmem:[%s3654_s23] sm:$0xff]  ;;  %v120_v6 = vld [vmem:[%s3654_s23 + $0x10] sm:$0xff]  ;;  %v121_v7 = vld [vmem:[%s3654_s23 + $0x18] sm:$0xff] }
   0xa   :  { %68 = vadd.xlane.f32.xlu0 %v67_v2  ;;  %71 = vadd.xlane.f32.xlu1 %v70_v3  ;;  %v122_v8 = vld [vmem:[%s3654_s23 + $0x20] sm:$0xff]  ;;  %v123_v9 = vld [vmem:[%s3654_s23 + $0x28] sm:$0xff]  ;;  %v124_v10 = vld [vmem:[%s3654_s23 + $0x30] sm:$0xff] }
   0xb   :  { %v125_v11 = vld [vmem:[%s3654_s23 + $0x38] sm:$0xff]  ;;  %v2925_v22 = vld [vmem:[%s3655_s24] sm:$0xff]  ;;  %v119_v23 = vld [vmem:[%s3654_s23 + $0x8] sm:$0xff] }
   0xc   :  { %2319 = vmatprep.mubr.msk.f32.mxu0 %vm168_vm1, %v2925_v22  ;;  %v127_v24 = vld [vmem:[%s3656_s28] sm:$0xff]  ;;  %v2958_v47 = vld [vmem:[%s3655_s24 + $0x8] sm:$0xff]  ;;  %v2965_v49 = vld [vmem:[%s3655_s24 + $0x10] sm:$0xff] }
   0xd   :  { %v2974_v50 = vld [vmem:[%s3655_s24 + $0x18] sm:$0xff]  ;;  %v2979_v51 = vld [vmem:[%s3655_s24 + $0x20] sm:$0xff]  ;;  %v2988_v52 = vld [vmem:[%s3655_s24 + $0x28] sm:$0xff] }
   0xe   :  { %v2993_v53 = vld [vmem:[%s3655_s24 + $0x30] sm:$0xff]  ;;  %v3002_v54 = vld [vmem:[%s3655_s24 + $0x38] sm:$0xff] }
  0x1b   :  { %130 = vperm.xlu1 %2685, %v118_v5  }
  0x1f   :  { %140 = vperm.xlu1 %2685, %v120_v6  }
  0x23   :  { %145 = vperm.xlu1 %2685, %v121_v7  }
  0x27   :  { %150 = vperm.xlu1 %2685, %v122_v8  }
  0x2b   :  { %155 = vperm.xlu1 %2685, %v123_v9  }
  0x2f   :  { %160 = vperm.xlu1 %2685, %v124_v10  }
  0x33   :  { %165 = vperm.xlu1 %2685, %v125_v11  }
  0x97   :  { %v69_v12 = vpop.xlane.xlu0 %68  ;;  %v72_v13 = vpop.xlane.xlu1 %71 }
  0x98   :  { %v74_v14 = vmul.f32 0.03125, %v69_v12  ;;  %v75_v15 = vmul.f32 0.03125, %v72_v13 }
  0x9a   :  { %v76_v16 = vsub.f32 %v2886_v0, %v74_v14  ;;  %v77_v17 = vsub.f32 %v2891_v1, %v75_v15 }
  0x9b   :  { %v2935_v25 = vpop.permute.xlu1 %130 }
  0x9c   :  { %v78_v18 = vmul.f32 %v76_v16, %v76_v16  ;;  %v79_v19 = vmul.f32 %v77_v17, %v77_v17 }
  0x9e   :  { %v80_v20 = vsel %vm66_vm0, %v78_v18, 0.0  ;;  %v83_v21 = vsel %vm66_vm0, %v79_v19, 0.0 }
  0x9f   :  { %81 = vadd.xlane.f32.xlu0 %v80_v20  ;;  %84 = vadd.xlane.f32.xlu1 %v83_v21  ;;  %v2937_v26 = vpop.permute.xlu1 %140 }
  0xa3   :  { %v2939_v27 = vpop.permute.xlu1 %145 }
  0xa7   :  { %v2941_v28 = vpop.permute.xlu1 %150 }
  0xab   :  { %v2943_v29 = vpop.permute.xlu1 %155 }
  0xaf   :  { %v2945_v30 = vpop.permute.xlu1 %160 }
  0xb3   :  { %v2947_v31 = vpop.permute.xlu1 %165 }
  0xb5   :  { %135 = vperm.xlu0 %2686, %v119_v23  }
  0xb9   :  { %372 = vperm.xlu0 %2686, %v127_v24  }
 0x12c   :  { %v82_v32 = vpop.xlane.xlu0 %81  ;;  %v85_v33 = vpop.xlane.xlu1 %84 }
 0x12d   :  { %v86_v34 = vmul.f32 0.03125, %v82_v32  ;;  %v87_v35 = vmul.f32 0.03125, %v85_v33 }
 0x12f   :  { %v88_v36 = vadd.f32 1e-05, %v86_v34  ;;  %v89_v37 = vadd.f32 1e-05, %v87_v35 }
 0x131   :  { %2687 = vrsqrt.f32 %v88_v36 }
 0x132   :  { %2689 = vrsqrt.f32 %v89_v37 }
 0x134   :  { %v3009_v57 = vpop.permute.xlu0 %135 }
 0x13b   :  { %v2688_v38 = vpop.eup %2687 }
 0x13c   :  { %v2690_v40 = vpop.eup %2689  ;;  %v92_v41 = vmul.f32 %v2688_v38, %v76_v16 }
 0x13d   :  { %v93_v43 = vmul.f32 %v2690_v40, %v77_v17 }
 0x13e   :  { %v100_v44 = vmul.f32 %v2094_v39, %v92_v41 }
 0x13f   :  { %v101_v45 = vmul.f32 %v2094_v39, %v93_v43 }
 0x140   :  { %v108_v46 = vadd.f32 %v2095_v42, %v100_v44 }
 0x141   :  { %v2960_v48 = vadd.f32 %v2095_v42, %v101_v45 }
 0x142   :  { %2317 = vmatprep.subr.mxu0 %v108_v46 }
 0x143   :  { %2318 = vmatpush3.msra.mxu0 %v108_v46 }
 0x144   :  { %2320 = vmatmul.mubr.msk.f32.vlgmr.msra.gmra.mrb[0].mxu0 %vm168_vm1, %v2958_v47  ;;  %2555 = vmatprep.subr.bf16.mxu0 %v2780_v55 }
 0x145   :  { %2322 = vmatprep.mubr.msk.f32.mxu0 %vm168_vm1, %v2965_v49 }
 0x148   :  { %2323 = vmatmul.mubr.msk.f32.gmra.mrb[2].mxu0 %vm168_vm1, %v2974_v50 }
 0x149   :  { %2325 = vmatprep.mubr.msk.f32.mxu0 %vm168_vm1, %v2979_v51 }
 0x14c   :  { %2326 = vmatmul.mubr.msk.f32.gmra.mrb[4].mxu0 %vm168_vm1, %v2988_v52 }
 0x14d   :  { %2328 = vmatprep.mubr.msk.f32.mxu0 %vm168_vm1, %v2993_v53 }
 0x150   :  { %2329 = vmatmul.mubr.msk.f32.gmra.mrb[6].mxu0 %vm168_vm1, %v3002_v54 }
 0x151   :  { %2347 = vmatprep.mubr.msk.f32.mxu0 %vm2781_vm2, %v2782_v56 }
 0x217   :  { %v2321_v58 = vpop.f32.mrb[0].mxu0 }
 0x218   :  { %v3012_v59 = vadd.f32 %v2321_v58, %v3009_v57  ;;  %v259_v60 = vpop.f32.mrb[1].mxu0 }
 0x219   :  { %v3015_v61 = vadd.f32 %v259_v60, %v2935_v25 }
 0x21a   :  { %v299_v62 = vmul.f32 %v3012_v59, %v3012_v59 }
 0x21b   :  { %v298_v63 = vmul.f32 %v3015_v61, %v3015_v61  ;;  %v2324_v2 = vpop.f32.mrb[2].mxu0 }
 0x21c   :  { %v307_v3 = vmul.f32 %v299_v62, %v3012_v59  ;;  %v3023_v4 = vadd.f32 %v2324_v2, %v2939_v27  ;;  %v269_v5 = vpop.f32.mrb[3].mxu0 }
 0x21d   :  { %v306_v6 = vmul.f32 %v298_v63, %v3015_v61  ;;  %v3027_v7 = vadd.f32 %v269_v5, %v2937_v26 }
 0x21e   :  { %v315_v8 = vmul.f32 0.044715, %v307_v3  ;;  %v301_v9 = vmul.f32 %v3023_v4, %v3023_v4 }
 0x21f   :  { %v314_v10 = vmul.f32 0.044715, %v306_v6  ;;  %v300_v11 = vmul.f32 %v3027_v7, %v3027_v7  ;;  %v2327_v12 = vpop.f32.mrb[4].mxu0 }
 0x220   :  { %v323_v13 = vadd.f32 %v315_v8, %v3012_v59  ;;  %v309_v14 = vmul.f32 %v301_v9, %v3023_v4  ;;  %v3036_v15 = vadd.f32 %v2327_v12, %v2943_v29  ;;  %v279_v16 = vpop.f32.mrb[5].mxu0 }
 0x221   :  { %v322_v17 = vadd.f32 %v314_v10, %v3015_v61  ;;  %v308_v18 = vmul.f32 %v300_v11, %v3027_v7  ;;  %v3041_v19 = vadd.f32 %v279_v16, %v2941_v28 }
 0x222   :  { %v331_v20 = vmul.f32 0.7978846, %v323_v13  ;;  %v317_v21 = vmul.f32 0.044715, %v309_v14  ;;  %v303_v23 = vmul.f32 %v3036_v15, %v3036_v15 }
 0x223   :  { %v330_v24 = vmul.f32 0.7978846, %v322_v17  ;;  %v316_v32 = vmul.f32 0.044715, %v308_v18  ;;  %v302_v33 = vmul.f32 %v3041_v19, %v3041_v19  ;;  %v2330_v34 = vpop.f32.mrb[6].mxu0 }
 0x224   :  { %2691 = vtanh.f32 %v331_v20  ;;  %v325_v35 = vadd.f32 %v317_v21, %v3023_v4  ;;  %v311_v36 = vmul.f32 %v303_v23, %v3036_v15  ;;  %v3050_v37 = vadd.f32 %v2330_v34, %v2947_v31  ;;  %v289_v38 = vpop.f32.mrb[7].mxu0 }
 0x225   :  { %2693 = vtanh.f32 %v330_v24  ;;  %v324_v39 = vadd.f32 %v316_v32, %v3027_v7  ;;  %v310_v40 = vmul.f32 %v302_v33, %v3041_v19  ;;  %v3055_v41 = vadd.f32 %v289_v38, %v2945_v30 }
 0x226   :  { %v333_v42 = vmul.f32 0.7978846, %v325_v35  ;;  %v319_v43 = vmul.f32 0.044715, %v311_v36  ;;  %v305_v44 = vmul.f32 %v3050_v37, %v3050_v37 }
 0x227   :  { %v332_v45 = vmul.f32 0.7978846, %v324_v39  ;;  %v318_v46 = vmul.f32 0.044715, %v310_v40  ;;  %v304_v58 = vmul.f32 %v3055_v41, %v3055_v41 }
 0x228   :  { %2695 = vtanh.f32 %v333_v42  ;;  %v327_v60 = vadd.f32 %v319_v43, %v3036_v15  ;;  %v313_v62 = vmul.f32 %v305_v44, %v3050_v37 }
 0x229   :  { %2697 = vtanh.f32 %v332_v45  ;;  %v326_v63 = vadd.f32 %v318_v46, %v3041_v19  ;;  %v312_v2 = vmul.f32 %v304_v58, %v3055_v41 }
 0x22a   :  { %v335_v3 = vmul.f32 0.7978846, %v327_v60  ;;  %v321_v5 = vmul.f32 0.044715, %v313_v62 }
 0x22b   :  { %v334_v6 = vmul.f32 0.7978846, %v326_v63  ;;  %v320_v8 = vmul.f32 0.044715, %v312_v2 }
 0x22c   :  { %2699 = vtanh.f32 %v335_v3  ;;  %v329_v9 = vadd.f32 %v321_v5, %v3050_v37 }
 0x22d   :  { %2701 = vtanh.f32 %v334_v6  ;;  %v328_v10 = vadd.f32 %v320_v8, %v3055_v41 }
 0x22e   :  { %v2692_v11 = vpop.eup %2691  ;;  %v337_v12 = vmul.f32 0.7978846, %v329_v9 }
 0x22f   :  { %v2694_v13 = vpop.eup %2693  ;;  %v347_v14 = vadd.f32 1.0, %v2692_v11  ;;  %v336_v16 = vmul.f32 0.7978846, %v328_v10 }
 0x230   :  { %v346_v17 = vadd.f32 1.0, %v2694_v13  ;;  %2703 = vtanh.f32 %v337_v12 }
 0x231   :  { %v355_v18 = vmul.f32 0.5, %v347_v14  ;;  %2705 = vtanh.f32 %v336_v16 }
 0x232   :  { %v2696_v20 = vpop.eup %2695  ;;  %v354_v21 = vmul.f32 0.5, %v346_v17 }
 0x233   :  { %v2698_v23 = vpop.eup %2697  ;;  %v363_v24 = vmul.f32 %v355_v18, %v3012_v59  ;;  %v349_v32 = vadd.f32 1.0, %v2696_v20 }
 0x234   :  { %v362_v33 = vmul.f32 %v354_v21, %v3015_v61  ;;  %v348_v34 = vadd.f32 1.0, %v2698_v23 }
 0x235   :  { %v357_v35 = vmul.f32 0.5, %v349_v32 }
 0x236   :  { %v2700_v36 = vpop.eup %2699  ;;  %v356_v38 = vmul.f32 0.5, %v348_v34  ;;  %v2556_v39 = vpack.c.bf16 %v363_v24, %v362_v33 }
 0x237   :  { %v2702_v40 = vpop.eup %2701  ;;  %v365_v42 = vmul.f32 %v357_v35, %v3023_v4  ;;  %v351_v43 = vadd.f32 1.0, %v2700_v36 }
 0x238   :  { %v364_v44 = vmul.f32 %v356_v38, %v3027_v7  ;;  %v350_v45 = vadd.f32 1.0, %v2702_v40  ;;  %2557 = vmatpush3.bf16.msra.mxu0 %v2556_v39 }
 0x239   :  { %v359_v46 = vmul.f32 0.5, %v351_v43  ;;  %2558 = vmatprep.subr.bf16.mxu0 %v2780_v55 }
 0x23a   :  { %v2704_v59 = vpop.eup %2703  ;;  %v358_v58 = vmul.f32 0.5, %v350_v45  ;;  %v2559_v60 = vpack.c.bf16 %v365_v42, %v364_v44 }
 0x23b   :  { %v2706_v61 = vpop.eup %2705  ;;  %v367_v62 = vmul.f32 %v359_v46, %v3036_v15  ;;  %v353_v63 = vadd.f32 1.0, %v2704_v59  ;;  %v3081_v15 = vld [vmem:[%s3631_s5] sm:$0xff] }
 0x23c   :  { %v366_v2 = vmul.f32 %v358_v58, %v3041_v19  ;;  %v352_v3 = vadd.f32 1.0, %v2706_v61  ;;  %2560 = vmatpush3.bf16.msra.mxu0 %v2559_v60 }
 0x23d   :  { %v361_v4 = vmul.f32 0.5, %v353_v63  ;;  %2561 = vmatprep.subr.bf16.mxu0 %v2780_v55 }
 0x23e   :  { %v360_v7 = vmul.f32 0.5, %v352_v3  ;;  %v2562_v5 = vpack.c.bf16 %v367_v62, %v366_v2 }
 0x23f   :  { %v369_v6 = vmul.f32 %v361_v4, %v3050_v37 }
 0x240   :  { %v368_v8 = vmul.f32 %v360_v7, %v3055_v41  ;;  %2563 = vmatpush3.bf16.msra.mxu0 %v2562_v5 }
 0x241   :  { %2564 = vmatprep.subr.bf16.mxu0 %v2780_v55 }
 0x242   :  { %v2565_v9 = vpack.c.bf16 %v369_v6, %v368_v8 }
 0x244   :  { %2566 = vmatpush3.bf16.msra.mxu0 %v2565_v9 }
 0x245   :  { %2350 = vmatprep.subr.mxu0 %v2960_v48 }
 0x247   :  { %2348 = vmatmul.mubr.msk.f32.vlgmr.msra.gmra.mrb[8].mxu0 %vm375_vm3, %v3081_v15 }
 0x248   :  { %2351 = vmatpush3.msra.mxu0 %v2960_v48  ;;  %2352 = vmatprep.mubr.msk.f32.mxu0 %vm168_vm1, %v2925_v22  ;;  %v3106_v22 = vpop.permute.xlu0 %372 }
 0x249   :  { %2567 = vmatprep.subr.bf16.mxu0 %v2780_v55 }
 0x24b   :  { %2353 = vmatmul.mubr.msk.f32.vlgmr.msra.gmra.mrb[10].mxu0 %vm168_vm1, %v2958_v47 }
 0x24c   :  { %2355 = vmatprep.mubr.msk.f32.mxu0 %vm168_vm1, %v2965_v49 }
 0x24f   :  { %2356 = vmatmul.mubr.msk.f32.gmra.mrb[12].mxu0 %vm168_vm1, %v2974_v50 }
 0x250   :  { %2358 = vmatprep.mubr.msk.f32.mxu0 %vm168_vm1, %v2979_v51 }
 0x253   :  { %2359 = vmatmul.mubr.msk.f32.gmra.mrb[14].mxu0 %vm168_vm1, %v2988_v52 }
 0x254   :  { %2361 = vmatprep.mubr.msk.f32.mxu0 %vm168_vm1, %v2993_v53 }
 0x257   :  { %2362 = vmatmul.mubr.msk.f32.gmra.mrb[16].mxu0 %vm168_vm1, %v3002_v54 }
 0x258   :  { %2380 = vmatprep.mubr.msk.f32.mxu0 %vm2781_vm2, %v2782_v56 }
 0x31a   :  { %v445_v47 = vpop.f32.mrb[8].mxu0 }
 0x31b   :  { %v446_v48 = vadd.f32 %v445_v47, %v3106_v22  ;;  %v2349_v49 = vpop.f32.mrb[9].mxu0 }
 0x31d   :  { %v3110_v50 = vadd.f32 %v446_v48, %v2886_v0 }
 0x31e   :  { %v2354_v51 = vpop.f32.mrb[10].mxu0 }
 0x31f   :  { %v3113_v52 = vadd.f32 %v2354_v51, %v3009_v57  ;;  %v516_v53 = vpop.f32.mrb[11].mxu0  ;;  %v700_v54 = vsel %vm66_vm0, %v3110_v50, 0.0 }
 0x320   :  { %v3118_v19 = vadd.f32 %v516_v53, %v2935_v25  ;;  %701 = vadd.xlane.f32.xlu0 %v700_v54 }
 0x321   :  { %v556_v37 = vmul.f32 %v3113_v52, %v3113_v52 }
 0x322   :  { %v555_v41 = vmul.f32 %v3118_v19, %v3118_v19  ;;  %v2357_v0 = vpop.f32.mrb[12].mxu0 }
 0x323   :  { %v564_v10 = vmul.f32 %v556_v37, %v3113_v52  ;;  %v3126_v57 = vadd.f32 %v2357_v0, %v2939_v27  ;;  %v526_v11 = vpop.f32.mrb[13].mxu0 }
 0x324   :  { %v563_v12 = vmul.f32 %v555_v41, %v3118_v19  ;;  %v3130_v13 = vadd.f32 %v526_v11, %v2937_v26 }
 0x325   :  { %v572_v25 = vmul.f32 0.044715, %v564_v10  ;;  %v558_v14 = vmul.f32 %v3126_v57, %v3126_v57 }
 0x326   :  { %v571_v16 = vmul.f32 0.044715, %v563_v12  ;;  %v557_v17 = vmul.f32 %v3130_v13, %v3130_v13  ;;  %v2360_v18 = vpop.f32.mrb[14].mxu0 }
 0x327   :  { %v580_v20 = vadd.f32 %v572_v25, %v3113_v52  ;;  %v566_v27 = vmul.f32 %v558_v14, %v3126_v57  ;;  %v3139_v21 = vadd.f32 %v2360_v18, %v2943_v29  ;;  %v536_v23 = vpop.f32.mrb[15].mxu0 }
 0x328   :  { %v579_v26 = vadd.f32 %v571_v16, %v3118_v19  ;;  %v565_v24 = vmul.f32 %v557_v17, %v3130_v13  ;;  %v3144_v32 = vadd.f32 %v536_v23, %v2941_v28 }
 0x329   :  { %v588_v33 = vmul.f32 0.7978846, %v580_v20  ;;  %v574_v34 = vmul.f32 0.044715, %v566_v27  ;;  %v560_v35 = vmul.f32 %v3139_v21, %v3139_v21 }
 0x32a   :  { %v587_v36 = vmul.f32 0.7978846, %v579_v26  ;;  %v573_v38 = vmul.f32 0.044715, %v565_v24  ;;  %v559_v39 = vmul.f32 %v3144_v32, %v3144_v32  ;;  %v2363_v29 = vpop.f32.mrb[16].mxu0 }
 0x32b   :  { %2707 = vtanh.f32 %v588_v33  ;;  %v582_v40 = vadd.f32 %v574_v34, %v3126_v57  ;;  %v568_v42 = vmul.f32 %v560_v35, %v3139_v21  ;;  %v3153_v43 = vadd.f32 %v2363_v29, %v2947_v31  ;;  %v546_v28 = vpop.f32.mrb[17].mxu0 }
 0x32c   :  { %2709 = vtanh.f32 %v587_v36  ;;  %v581_v44 = vadd.f32 %v573_v38, %v3130_v13  ;;  %v567_v45 = vmul.f32 %v559_v39, %v3144_v32  ;;  %v3158_v46 = vadd.f32 %v546_v28, %v2945_v30 }
 0x32d   :  { %v590_v59 = vmul.f32 0.7978846, %v582_v40  ;;  %v576_v58 = vmul.f32 0.044715, %v568_v42  ;;  %v562_v60 = vmul.f32 %v3153_v43, %v3153_v43 }
 0x32e   :  { %v589_v61 = vmul.f32 0.7978846, %v581_v44  ;;  %v575_v62 = vmul.f32 0.044715, %v567_v45  ;;  %v561_v31 = vmul.f32 %v3158_v46, %v3158_v46 }
 0x32f   :  { %2711 = vtanh.f32 %v590_v59  ;;  %v584_v63 = vadd.f32 %v576_v58, %v3139_v21  ;;  %v570_v2 = vmul.f32 %v562_v60, %v3153_v43 }
 0x330   :  { %2713 = vtanh.f32 %v589_v61  ;;  %v583_v3 = vadd.f32 %v575_v62, %v3144_v32  ;;  %v569_v30 = vmul.f32 %v561_v31, %v3158_v46 }
 0x331   :  { %v592_v4 = vmul.f32 0.7978846, %v584_v63  ;;  %v578_v7 = vmul.f32 0.044715, %v570_v2 }
 0x332   :  { %v591_v5 = vmul.f32 0.7978846, %v583_v3  ;;  %v577_v6 = vmul.f32 0.044715, %v569_v30 }
 0x333   :  { %2715 = vtanh.f32 %v592_v4  ;;  %v586_v8 = vadd.f32 %v578_v7, %v3153_v43 }
 0x334   :  { %2717 = vtanh.f32 %v591_v5  ;;  %v585_v9 = vadd.f32 %v577_v6, %v3158_v46  ;;  %v2114_v5 = vld [vmem:[%s3632_s7] ss:$0 sm:$0xff] }
 0x335   :  { %v2708_v47 = vpop.eup %2707  ;;  %v594_v48 = vmul.f32 0.7978846, %v586_v8  ;;  %v2115_v8 = vld [vmem:[%s3633_s8] ss:$0 sm:$0xff] }
 0x336   :  { %v2710_v49 = vpop.eup %2709  ;;  %v604_v51 = vadd.f32 1.0, %v2708_v47  ;;  %v593_v53 = vmul.f32 0.7978846, %v585_v9 }
 0x337   :  { %v603_v54 = vadd.f32 1.0, %v2710_v49  ;;  %2719 = vtanh.f32 %v594_v48  ;;  %v742_v48 = vld [vmem:[%s3634_s9] sm:$0xff]  ;;  %v743_v49 = vld [vmem:[%s3634_s9 + $0x8] sm:$0xff] }
 0x338   :  { %v612_v37 = vmul.f32 0.5, %v604_v51  ;;  %2721 = vtanh.f32 %v593_v53  ;;  %v744_v51 = vld [vmem:[%s3634_s9 + $0x10] sm:$0xff]  ;;  %v2579_v53 = vpack.c.bf16 %v743_v49, %v742_v48 }
 0x339   :  { %v2712_v41 = vpop.eup %2711  ;;  %v611_v0 = vmul.f32 0.5, %v603_v54  ;;  %v745_v54 = vld [vmem:[%s3634_s9 + $0x18] sm:$0xff] }
 0x33a   :  { %v2714_v10 = vpop.eup %2713  ;;  %v620_v11 = vmul.f32 %v612_v37, %v3113_v52  ;;  %v606_v12 = vadd.f32 1.0, %v2712_v41  ;;  %v2583_v37 = vpack.c.bf16 %v745_v54, %v744_v51  ;;  %2580 = vmatprep.subr.bf16.mxu1 %v2579_v53 }
 0x33b   :  { %v619_v25 = vmul.f32 %v611_v0, %v3118_v19  ;;  %v605_v14 = vadd.f32 1.0, %v2714_v10  ;;  %2582 = vmatpush3.bf16.msra.mxu1 %v2579_v53 }
 0x33c   :  { %v614_v16 = vmul.f32 0.5, %v606_v12  ;;  %2584 = vmatprep.subr.bf16.mxu1 %v2583_v37 }
 0x33d   :  { %v2716_v17 = vpop.eup %2715  ;;  %v613_v18 = vmul.f32 0.5, %v605_v14  ;;  %v2568_v20 = vpack.c.bf16 %v620_v11, %v619_v25 }
 0x33e   :  { %v2718_v27 = vpop.eup %2717  ;;  %v622_v23 = vmul.f32 %v614_v16, %v3126_v57  ;;  %v608_v26 = vadd.f32 1.0, %v2716_v17  ;;  %v852_v16 = vld [vmem:[%s3635_s11] sm:$0xff]  ;;  %v853_v17 = vld [vmem:[%s3635_s11 + $0x8] sm:$0xff] }
 0x33f   :  { %v621_v24 = vmul.f32 %v613_v18, %v3130_v13  ;;  %v607_v33 = vadd.f32 1.0, %v2718_v27  ;;  %2569 = vmatpush3.bf16.msra.mxu0 %v2568_v20  ;;  %2586 = vmatpush3.bf16.msra.mxu1 %v2583_v37  ;;  %v2587_v18 = vpack.c.bf16 %v853_v17, %v852_v16  ;;  %v854_v20 = vld [vmem:[%s3635_s11 + $0x10] sm:$0xff]  ;;  %v855_v27 = vld [vmem:[%s3635_s11 + $0x18] sm:$0xff]  ;;  %v2134_v37 = vld [vmem:[%s3654_s23 + $0x40] sm:$0xff] }
 0x340   :  { %v616_v34 = vmul.f32 0.5, %v608_v26  ;;  %2570 = vmatprep.subr.bf16.mxu0 %v2780_v55  ;;  %v856_v26 = vld [vmem:[%s3635_s11 + $0x20] sm:$0xff]  ;;  %v2141_v16 = vld [vmem:[%s3654_s23 + $0x78] sm:$0xff] }
 0x341   :  { %v2720_v52 = vpop.eup %2719  ;;  %v615_v35 = vmul.f32 0.5, %v607_v33  ;;  %v2571_v36 = vpack.c.bf16 %v622_v23, %v621_v24  ;;  %2588 = vmatprep.subr.bf16.mxu1 %v2587_v18  ;;  %v2591_v23 = vpack.c.bf16 %v855_v27, %v854_v20  ;;  %v857_v24 = vld [vmem:[%s3635_s11 + $0x28] sm:$0xff]  ;;  %v2126_v17 = vld [vmem:[%s3655_s24 + $0x40] sm:$0xff] }
 0x342   :  { %v2722_v19 = vpop.eup %2721  ;;  %v624_v38 = vmul.f32 %v616_v34, %v3139_v21  ;;  %v610_v39 = vadd.f32 1.0, %v2720_v52  ;;  %v2595_v33 = vpack.c.bf16 %v857_v24, %v856_v26  ;;  %v858_v34 = vld [vmem:[%s3635_s11 + $0x30] sm:$0xff]  ;;  %v859_v52 = vld [vmem:[%s3635_s11 + $0x38] sm:$0xff] }
 0x343   :  { %v623_v29 = vmul.f32 %v615_v35, %v3144_v32  ;;  %v609_v40 = vadd.f32 1.0, %v2722_v19  ;;  %2572 = vmatpush3.bf16.msra.mxu0 %v2571_v36  ;;  %v2599_v35 = vpack.c.bf16 %v859_v52, %v858_v34  ;;  %v2116_v36 = vld [vmem:[%s3636_s10] ss:$0 sm:$0xff]  ;;  %v2124_v34 = vld [vmem:[%s3629_s1 + $0x1] ss:$0 sm:$0xff] }
 0x344   :  { %v618_v57 = vmul.f32 0.5, %v610_v39  ;;  %2573 = vmatprep.subr.bf16.mxu0 %v2780_v55 }
 0x345   :  { %v617_v13 = vmul.f32 0.5, %v609_v40  ;;  %v2574_v42 = vpack.c.bf16 %v624_v38, %v623_v29 }
 0x346   :  { %v626_v28 = vmul.f32 %v618_v57, %v3153_v43 }
 0x347   :  { %v625_v44 = vmul.f32 %v617_v13, %v3158_v46  ;;  %2575 = vmatpush3.bf16.msra.mxu0 %v2574_v42 }
 0x348   :  { %2576 = vmatprep.subr.bf16.mxu0 %v2780_v55 }
 0x349   :  { %v2577_v45 = vpack.c.bf16 %v626_v28, %v625_v44 }
 0x34b   :  { %2578 = vmatpush3.bf16.msra.mxu0 %v2577_v45 }
 0x34e   :  { %2381 = vmatmul.mubr.msk.f32.vlgmr.msra.gmra.mrb[18].mxu0 %vm375_vm3, %v3081_v15 }
 0x34f   :  { %2415 = vmatprep.mubr.msk.f32.mxu0 %vm168_vm1, %v2126_v17 }
 0x3ad   :  { %v702_v21 = vpop.xlane.xlu0 %701 }
 0x3ae   :  { %v706_v32 = vmul.f32 0.03125, %v702_v21 }
 0x3b0   :  { %v708_v58 = vsub.f32 %v3110_v50, %v706_v32 }
 0x3b2   :  { %v710_v62 = vmul.f32 %v708_v58, %v708_v58 }
 0x3b4   :  { %v712_v31 = vsel %vm66_vm0, %v710_v62, 0.0 }
 0x421   :  { %v693_v59 = vpop.f32.mrb[18].mxu0 }
 0x422   :  { %v694_v60 = vadd.f32 %v693_v59, %v3106_v22  ;;  %v2382_v61 = vpop.f32.mrb[19].mxu0 }
 0x424   :  { %v3186_v43 = vadd.f32 %v694_v60, %v2891_v1 }
 0x426   :  { %v703_v46 = vsel %vm66_vm0, %v3186_v43, 0.0 }
 0x427   :  { %704 = vadd.xlane.f32.xlu1 %v703_v46 }
 0x42b   :  { %713 = vadd.xlane.f32.xlu1 %v712_v31 }
 0x4b4   :  { %v705_v15 = vpop.xlane.xlu1 %704 }
 0x4b5   :  { %v707_v63 = vmul.f32 0.03125, %v705_v15 }
 0x4b7   :  { %v709_v2 = vsub.f32 %v3186_v43, %v707_v63 }
 0x4b8   :  { %v714_v3 = vpop.xlane.xlu1 %713 }
 0x4b9   :  { %v718_v30 = vmul.f32 0.03125, %v714_v3  ;;  %v711_v4 = vmul.f32 %v709_v2, %v709_v2  ;;  %v2121_v3 = vld [vmem:[%s3637_s12] ss:$0 sm:$0xff] }
 0x4bb   :  { %v720_v22 = vadd.f32 1e-05, %v718_v30  ;;  %v715_v7 = vsel %vm66_vm0, %v711_v4, 0.0 }
 0x4bc   :  { %716 = vadd.xlane.f32.xlu0 %v715_v7 }
 0x4bd   :  { %2723 = vrsqrt.f32 %v720_v22 }
 0x4c7   :  { %v2724_v1 = vpop.eup %2723 }
 0x4c8   :  { %v724_v6 = vmul.f32 %v2724_v1, %v708_v58 }
 0x4ca   :  { %v732_v9 = vmul.f32 %v2114_v5, %v724_v6 }
 0x4cc   :  { %v740_v47 = vadd.f32 %v2115_v8, %v732_v9 }
 0x4ce   :  { %2391 = vmatprep.mubr.msk.f32.mxu1 %vm66_vm0, %v740_v47 }
 0x549   :  { %v717_v41 = vpop.xlane.xlu0 %716 }
 0x54a   :  { %v719_v0 = vmul.f32 0.03125, %v717_v41  ;;  %v2135_v41 = vld [vmem:[%s3654_s23 + $0x48] sm:$0xff] }
 0x54c   :  { %v721_v10 = vadd.f32 1e-05, %v719_v0  ;;  %v2136_v0 = vld [vmem:[%s3654_s23 + $0x50] sm:$0xff] }
 0x54e   :  { %2725 = vrsqrt.f32 %v721_v10  ;;  %v2138_v10 = vld [vmem:[%s3654_s23 + $0x60] sm:$0xff] }
 0x558   :  { %v2726_v11 = vpop.eup %2725 }
 0x559   :  { %v725_v12 = vmul.f32 %v2726_v11, %v709_v2  ;;  %v2137_v11 = vld [vmem:[%s3654_s23 + $0x58] sm:$0xff] }
 0x55b   :  { %v733_v25 = vmul.f32 %v2114_v5, %v725_v12  ;;  %v2140_v12 = vld [vmem:[%s3654_s23 + $0x70] sm:$0xff] }
 0x55d   :  { %v741_v14 = vadd.f32 %v2115_v8, %v733_v25  ;;  %v2139_v25 = vld [vmem:[%s3654_s23 + $0x68] sm:$0xff] }
 0x55f   :  { %2392 = vmatmul.mubr.msk.f32.vlgmr.msra.gmra.mrb[0].mxu1 %vm66_vm0, %v741_v14  ;;  %v2143_v14 = vld [vmem:[%s3656_s28 + $0x8] sm:$0xff] }
 0x560   :  { %2590 = vmatpush3.bf16.msra.mxu1 %v2587_v18 }
 0x561   :  { %2592 = vmatprep.subr.bf16.mxu1 %v2591_v23 }
 0x564   :  { %2594 = vmatpush3.bf16.msra.mxu1 %v2591_v23 }
 0x565   :  { %2596 = vmatprep.subr.bf16.mxu1 %v2595_v33 }
 0x568   :  { %2598 = vmatpush3.bf16.msra.mxu1 %v2595_v33 }
 0x569   :  { %2600 = vmatprep.subr.bf16.mxu1 %v2599_v35 }
 0x56c   :  { %2602 = vmatpush3.bf16.msra.mxu1 %v2599_v35 }
 0x632   :  { %v2393_v19 = vpop.f32.mrb[0].mxu1 }
 0x633   :  { %v831_v38 = vadd.f32 %v2393_v19, %v2116_v36  ;;  %v825_v39 = vpop.f32.mrb[1].mxu1 }
 0x634   :  { %v826_v29 = vadd.f32 %v2116_v36, %v825_v39  ;;  %v2125_v36 = vld [vmem:[%s3630_s2 + $0x1] ss:$0 sm:$0xff] }
 0x635   :  { %v835_v40 = vmul.f32 %v831_v38, %v831_v38 }
 0x636   :  { %v834_v57 = vmul.f32 %v826_v29, %v826_v29 }
 0x637   :  { %v837_v13 = vmul.f32 %v835_v40, %v831_v38 }
 0x638   :  { %v836_v42 = vmul.f32 %v834_v57, %v826_v29  ;;  %v2127_v57 = vld [vmem:[%s3655_s24 + $0x48] sm:$0xff] }
 0x639   :  { %v839_v28 = vmul.f32 0.044715, %v837_v13  ;;  %v2128_v13 = vld [vmem:[%s3655_s24 + $0x50] sm:$0xff] }
 0x63a   :  { %v838_v44 = vmul.f32 0.044715, %v836_v42  ;;  %v2129_v42 = vld [vmem:[%s3655_s24 + $0x58] sm:$0xff] }
 0x63b   :  { %v841_v45 = vadd.f32 %v839_v28, %v831_v38  ;;  %v2130_v28 = vld [vmem:[%s3655_s24 + $0x60] sm:$0xff] }
 0x63c   :  { %v840_v21 = vadd.f32 %v838_v44, %v826_v29  ;;  %v2131_v44 = vld [vmem:[%s3655_s24 + $0x68] sm:$0xff] }
 0x63d   :  { %v843_v32 = vmul.f32 0.7978846, %v841_v45  ;;  %v2132_v45 = vld [vmem:[%s3655_s24 + $0x70] sm:$0xff] }
 0x63e   :  { %v842_v59 = vmul.f32 0.7978846, %v840_v21  ;;  %v2133_v21 = vld [vmem:[%s3655_s24 + $0x78] sm:$0xff] }
 0x63f   :  { %2727 = vtanh.f32 %v843_v32 }
 0x640   :  { %2729 = vtanh.f32 %v842_v59 }
 0x649   :  { %v2728_v58 = vpop.eup %2727 }
 0x64a   :  { %v2730_v60 = vpop.eup %2729  ;;  %v847_v61 = vadd.f32 1.0, %v2728_v58 }
 0x64b   :  { %v846_v46 = vadd.f32 1.0, %v2730_v60 }
 0x64c   :  { %v849_v62 = vmul.f32 0.5, %v847_v61 }
 0x64d   :  { %v848_v31 = vmul.f32 0.5, %v846_v46 }
 0x64e   :  { %v851_v63 = vmul.f32 %v849_v62, %v831_v38 }
 0x64f   :  { %v850_v15 = vmul.f32 %v848_v31, %v826_v29 }
 0x651   :  { %2410 = vmatprep.mubr.msk.f32.mxu1 %vm375_vm3, %v850_v15 }
 0x652   :  { %2411 = vmatmul.mubr.msk.f32.vlgmr.msra.gmra.mrb[2].mxu1 %vm375_vm3, %v851_v63 }
 0x653   :  { %2448 = vmatprep.mubr.msk.f32.mxu1 %vm168_vm1, %v2126_v17 }
 0x725   :  { %v2412_v2 = vpop.f32.mrb[2].mxu1 }
 0x726   :  { %v942_v30 = vadd.f32 %v2412_v2, %v3186_v43  ;;  %v932_v4 = vpop.f32.mrb[3].mxu1 }
 0x727   :  { %v941_v22 = vadd.f32 %v932_v4, %v3110_v50 }
 0x728   :  { %v3247_v7 = vadd.f32 %v2121_v3, %v942_v30 }
 0x729   :  { %v3249_v1 = vadd.f32 %v2121_v3, %v941_v22 }
 0x72a   :  { %v959_v5 = vsel %vm66_vm0, %v3247_v7, 0.0 }
 0x72b   :  { %960 = vadd.xlane.f32.xlu0 %v959_v5  ;;  %v956_v6 = vsel %vm66_vm0, %v3249_v1, 0.0 }
 0x72c   :  { %957 = vadd.xlane.f32.xlu1 %v956_v6 }
 0x7b8   :  { %v961_v8 = vpop.xlane.xlu0 %960 }
 0x7b9   :  { %v963_v9 = vmul.f32 0.03125, %v961_v8  ;;  %v958_v47 = vpop.xlane.xlu1 %957 }
 0x7ba   :  { %v962_v48 = vmul.f32 0.03125, %v958_v47 }
 0x7bb   :  { %v965_v43 = vsub.f32 %v3247_v7, %v963_v9 }
 0x7bc   :  { %v964_v50 = vsub.f32 %v3249_v1, %v962_v48 }
 0x7bd   :  { %v967_v49 = vmul.f32 %v965_v43, %v965_v43 }
 0x7be   :  { %v966_v51 = vmul.f32 %v964_v50, %v964_v50 }
 0x7bf   :  { %v971_v53 = vsel %vm66_vm0, %v967_v49, 0.0 }
 0x7c0   :  { %972 = vadd.xlane.f32.xlu0 %v971_v53  ;;  %v968_v54 = vsel %vm66_vm0, %v966_v51, 0.0 }
 0x7c1   :  { %969 = vadd.xlane.f32.xlu1 %v968_v54 }
 0x7d2   :  { %1022 = vperm.xlu1 %2685, %v2134_v37  }
 0x7d6   :  { %1027 = vperm.xlu0 %2686, %v2135_v41   ;;  %1032 = vperm.xlu1 %2685, %v2136_v0  }
 0x7da   :  { %1042 = vperm.xlu0 %2686, %v2138_v10   ;;  %1037 = vperm.xlu1 %2685, %v2137_v11  }
 0x7de   :  { %1052 = vperm.xlu0 %2686, %v2140_v12   ;;  %1047 = vperm.xlu1 %2685, %v2139_v25  }
 0x7e2   :  { %1263 = vperm.xlu0 %2686, %v2143_v14   ;;  %1057 = vperm.xlu1 %2685, %v2141_v16  }
 0x84d   :  { %v973_v18 = vpop.xlane.xlu0 %972 }
 0x84e   :  { %v975_v20 = vmul.f32 0.03125, %v973_v18  ;;  %v970_v27 = vpop.xlane.xlu1 %969 }
 0x84f   :  { %v974_v23 = vmul.f32 0.03125, %v970_v27 }
 0x850   :  { %v977_v26 = vadd.f32 1e-05, %v975_v20 }
 0x851   :  { %v976_v24 = vadd.f32 1e-05, %v974_v23 }
 0x852   :  { %2731 = vrsqrt.f32 %v977_v26  ;;  %v1023_v32 = vpop.permute.xlu1 %1022 }
 0x853   :  { %2733 = vrsqrt.f32 %v976_v24 }
 0x855   :  { %v1028_v58 = vpop.permute.xlu0 %1027 }
 0x856   :  { %v1033_v59 = vpop.permute.xlu1 %1032 }
 0x85a   :  { %v1038_v30 = vpop.permute.xlu1 %1037 }
 0x85c   :  { %v2732_v33 = vpop.eup %2731 }
 0x85d   :  { %v2734_v52 = vpop.eup %2733  ;;  %v981_v35 = vmul.f32 %v2732_v33, %v965_v43 }
 0x85e   :  { %v980_v19 = vmul.f32 %v2734_v52, %v964_v50 }
 0x85f   :  { %v989_v38 = vmul.f32 %v2124_v34, %v981_v35  ;;  %v1048_v35 = vpop.permute.xlu1 %1047 }
 0x860   :  { %v988_v39 = vmul.f32 %v2124_v34, %v980_v19 }
 0x861   :  { %v997_v29 = vadd.f32 %v2125_v36, %v989_v38 }
 0x862   :  { %v996_v40 = vadd.f32 %v2125_v36, %v988_v39 }
 0x863   :  { %2446 = vmatprep.subr.mxu1 %v997_v29 }
 0x864   :  { %2413 = vmatprep.subr.mxu0 %v996_v40  ;;  %2447 = vmatpush3.msra.mxu1 %v997_v29  ;;  %v1043_v29 = vpop.permute.xlu0 %1042 }
 0x865   :  { %2414 = vmatpush3.msra.mxu0 %v996_v40  ;;  %2449 = vmatmul.mubr.msk.f32.vlgmr.msra.gmra.mrb[4].mxu1 %vm168_vm1, %v2127_v57 }
 0x866   :  { %2416 = vmatmul.mubr.msk.f32.vlgmr.msra.gmra.mrb[20].mxu0 %vm168_vm1, %v2127_v57  ;;  %2451 = vmatprep.mubr.msk.f32.mxu1 %vm168_vm1, %v2128_v13 }
 0x867   :  { %2418 = vmatprep.mubr.msk.f32.mxu0 %vm168_vm1, %v2128_v13  ;;  %2615 = vmatprep.subr.bf16.mxu1 %v2780_v55 }
 0x868   :  { %2603 = vmatprep.subr.bf16.mxu0 %v2780_v55 }
 0x869   :  { %2452 = vmatmul.mubr.msk.f32.gmra.mrb[6].mxu1 %vm168_vm1, %v2129_v42 }
 0x86a   :  { %2419 = vmatmul.mubr.msk.f32.gmra.mrb[22].mxu0 %vm168_vm1, %v2129_v42  ;;  %2454 = vmatprep.mubr.msk.f32.mxu1 %vm168_vm1, %v2130_v28 }
 0x86b   :  { %2421 = vmatprep.mubr.msk.f32.mxu0 %vm168_vm1, %v2130_v28 }
 0x86d   :  { %2455 = vmatmul.mubr.msk.f32.gmra.mrb[8].mxu1 %vm168_vm1, %v2131_v44 }
 0x86e   :  { %2422 = vmatmul.mubr.msk.f32.gmra.mrb[24].mxu0 %vm168_vm1, %v2131_v44  ;;  %2457 = vmatprep.mubr.msk.f32.mxu1 %vm168_vm1, %v2132_v45 }
 0x86f   :  { %2424 = vmatprep.mubr.msk.f32.mxu0 %vm168_vm1, %v2132_v45 }
 0x871   :  { %2458 = vmatmul.mubr.msk.f32.gmra.mrb[10].mxu1 %vm168_vm1, %v2133_v21 }
 0x872   :  { %2425 = vmatmul.mubr.msk.f32.gmra.mrb[26].mxu0 %vm168_vm1, %v2133_v21  ;;  %2476 = vmatprep.mubr.msk.f32.mxu1 %vm2781_vm2, %v2782_v56 }
 0x873   :  { %2443 = vmatprep.mubr.msk.f32.mxu0 %vm2781_vm2, %v2782_v56 }
 0x938   :  { %v2450_v60 = vpop.f32.mrb[4].mxu1 }
 0x939   :  { %v3338_v61 = vadd.f32 %v2450_v60, %v1028_v58  ;;  %v2417_v46 = vpop.f32.mrb[20].mxu0  ;;  %v1406_v62 = vpop.f32.mrb[5].mxu1 }
 0x93a   :  { %v3340_v31 = vadd.f32 %v2417_v46, %v1028_v58  ;;  %v3342_v15 = vadd.f32 %v1406_v62, %v1023_v32  ;;  %v1150_v63 = vpop.f32.mrb[21].mxu0 }
 0x93b   :  { %v1446_v2 = vmul.f32 %v3338_v61, %v3338_v61  ;;  %v3346_v3 = vadd.f32 %v1150_v63, %v1023_v32 }
 0x93c   :  { %v1190_v4 = vmul.f32 %v3340_v31, %v3340_v31  ;;  %v1445_v22 = vmul.f32 %v3342_v15, %v3342_v15  ;;  %v2453_v5 = vpop.f32.mrb[6].mxu1 }
 0x93d   :  { %v1454_v6 = vmul.f32 %v1446_v2, %v3338_v61  ;;  %v1189_v8 = vmul.f32 %v3346_v3, %v3346_v3  ;;  %v3355_v9 = vadd.f32 %v2453_v5, %v1038_v30  ;;  %v2420_v47 = vpop.f32.mrb[22].mxu0  ;;  %v1416_v48 = vpop.f32.mrb[7].mxu1 }
 0x93e   :  { %v1198_v43 = vmul.f32 %v1190_v4, %v3340_v31  ;;  %v1453_v50 = vmul.f32 %v1445_v22, %v3342_v15  ;;  %v3359_v49 = vadd.f32 %v2420_v47, %v1038_v30  ;;  %v3361_v51 = vadd.f32 %v1416_v48, %v1033_v59  ;;  %v1160_v53 = vpop.f32.mrb[23].mxu0  ;;  %v1058_v48 = vpop.permute.xlu1 %1057 }
 0x93f   :  { %v1462_v54 = vmul.f32 0.044715, %v1454_v6  ;;  %v1197_v37 = vmul.f32 %v1189_v8, %v3346_v3  ;;  %v1448_v41 = vmul.f32 %v3355_v9, %v3355_v9  ;;  %v3366_v0 = vadd.f32 %v1160_v53, %v1033_v59 }
 0x940   :  { %v1206_v10 = vmul.f32 0.044715, %v1198_v43  ;;  %v1461_v11 = vmul.f32 0.044715, %v1453_v50  ;;  %v1192_v12 = vmul.f32 %v3359_v49, %v3359_v49  ;;  %v1447_v25 = vmul.f32 %v3361_v51, %v3361_v51  ;;  %v2456_v14 = vpop.f32.mrb[8].mxu1 }
 0x941   :  { %v1470_v16 = vadd.f32 %v1462_v54, %v3338_v61  ;;  %v1205_v17 = vmul.f32 0.044715, %v1197_v37  ;;  %v1456_v18 = vmul.f32 %v1448_v41, %v3355_v9  ;;  %v1191_v20 = vmul.f32 %v3366_v0, %v3366_v0  ;;  %v2423_v27 = vpop.f32.mrb[24].mxu0  ;;  %v1426_v23 = vpop.f32.mrb[9].mxu1 }
 0x942   :  { %v1214_v26 = vadd.f32 %v1206_v10, %v3340_v31  ;;  %v1469_v24 = vadd.f32 %v1461_v11, %v3342_v15  ;;  %v1200_v33 = vmul.f32 %v1192_v12, %v3359_v49  ;;  %v1455_v34 = vmul.f32 %v1447_v25, %v3361_v51  ;;  %v1170_v52 = vpop.f32.mrb[25].mxu0  ;;  %v1053_v10 = vpop.permute.xlu0 %1052 }
 0x943   :  { %v1478_v36 = vmul.f32 0.7978846, %v1470_v16  ;;  %v1213_v19 = vadd.f32 %v1205_v17, %v3346_v3  ;;  %v1464_v38 = vmul.f32 0.044715, %v1456_v18  ;;  %v1199_v39 = vmul.f32 %v1191_v20, %v3366_v0 }
 0x944   :  { %v1222_v40 = vmul.f32 0.7978846, %v1214_v26  ;;  %v1477_v57 = vmul.f32 0.7978846, %v1469_v24  ;;  %v1208_v13 = vmul.f32 0.044715, %v1200_v33  ;;  %v3382_v42 = vadd.f32 %v2456_v14, %v1048_v35 }
 0x945   :  { %2735 = vtanh.f32 %v1478_v36  ;;  %v1221_v28 = vmul.f32 0.7978846, %v1213_v19  ;;  %v1472_v44 = vadd.f32 %v1464_v38, %v3355_v9  ;;  %v1463_v45 = vmul.f32 0.044715, %v1455_v34  ;;  %v2459_v21 = vpop.f32.mrb[10].mxu1  ;;  %v2426_v32 = vpop.f32.mrb[26].mxu0 }
 0x946   :  { %2737 = vtanh.f32 %v1222_v40  ;;  %v1216_v59 = vadd.f32 %v1208_v13, %v3359_v49  ;;  %v1207_v58 = vmul.f32 0.044715, %v1199_v39  ;;  %v1450_v60 = vmul.f32 %v3382_v42, %v3382_v42  ;;  %v1436_v46 = vpop.f32.mrb[11].mxu1  ;;  %v1180_v62 = vpop.f32.mrb[27].mxu0 }
 0x947   :  { %2739 = vtanh.f32 %v1477_v57  ;;  %v1480_v63 = vmul.f32 0.7978846, %v1472_v44  ;;  %v1471_v2 = vadd.f32 %v1463_v45, %v3361_v51  ;;  %v3389_v30 = vadd.f32 %v2423_v27, %v1048_v35 }
 0x948   :  { %2741 = vtanh.f32 %v1221_v28  ;;  %v1224_v4 = vmul.f32 0.7978846, %v1216_v59  ;;  %v1215_v22 = vadd.f32 %v1207_v58, %v3366_v0  ;;  %v1458_v5 = vmul.f32 %v1450_v60, %v3382_v42 }
 0x949   :  { %2743 = vtanh.f32 %v1480_v63  ;;  %v1479_v6 = vmul.f32 0.7978846, %v1471_v2  ;;  %v1194_v8 = vmul.f32 %v3389_v30, %v3389_v30  ;;  %v3395_v47 = vadd.f32 %v1426_v23, %v1043_v29 }
 0x94a   :  { %2745 = vtanh.f32 %v1224_v4  ;;  %v1223_v43 = vmul.f32 0.7978846, %v1215_v22  ;;  %v1466_v50 = vmul.f32 0.044715, %v1458_v5  ;;  %v3397_v53 = vadd.f32 %v1170_v52, %v1043_v29 }
 0x94b   :  { %2747 = vtanh.f32 %v1479_v6  ;;  %v1202_v54 = vmul.f32 %v1194_v8, %v3389_v30  ;;  %v1449_v37 = vmul.f32 %v3395_v47, %v3395_v47  ;;  %v3402_v41 = vadd.f32 %v2459_v21, %v1058_v48 }
 0x94c   :  { %2749 = vtanh.f32 %v1223_v43  ;;  %v1474_v11 = vadd.f32 %v1466_v50, %v3382_v42  ;;  %v1193_v12 = vmul.f32 %v3397_v53, %v3397_v53  ;;  %v3407_v25 = vadd.f32 %v2426_v32, %v1058_v48 }
 0x94d   :  { %v1210_v14 = vmul.f32 0.044715, %v1202_v54  ;;  %v1457_v16 = vmul.f32 %v1449_v37, %v3395_v47  ;;  %v1452_v17 = vmul.f32 %v3402_v41, %v3402_v41  ;;  %v3412_v18 = vadd.f32 %v1436_v46, %v1053_v10 }
 0x94e   :  { %v1482_v20 = vmul.f32 0.7978846, %v1474_v11  ;;  %v1201_v27 = vmul.f32 %v1193_v12, %v3397_v53  ;;  %v1196_v23 = vmul.f32 %v3407_v25, %v3407_v25  ;;  %v3417_v26 = vadd.f32 %v1180_v62, %v1053_v10 }
 0x94f   :  { %v2736_v24 = vpop.eup %2735  ;;  %v1218_v33 = vadd.f32 %v1210_v14, %v3389_v30  ;;  %v1465_v34 = vmul.f32 0.044715, %v1457_v16  ;;  %v1460_v52 = vmul.f32 %v1452_v17, %v3402_v41  ;;  %v1451_v35 = vmul.f32 %v3412_v18, %v3412_v18 }
 0x950   :  { %v2738_v36 = vpop.eup %2737  ;;  %v1494_v19 = vadd.f32 1.0, %v2736_v24  ;;  %2751 = vtanh.f32 %v1482_v20  ;;  %v1209_v38 = vmul.f32 0.044715, %v1201_v27  ;;  %v1204_v39 = vmul.f32 %v1196_v23, %v3407_v25 }
 0x951   :  { %v2740_v29 = vpop.eup %2739  ;;  %v1238_v40 = vadd.f32 1.0, %v2738_v36  ;;  %v1226_v57 = vmul.f32 0.7978846, %v1218_v33  ;;  %v1473_v13 = vadd.f32 %v1465_v34, %v3395_v47  ;;  %v1468_v28 = vmul.f32 0.044715, %v1460_v52 }
 0x952   :  { %v2742_v44 = vpop.eup %2741  ;;  %v1502_v45 = vmul.f32 0.5, %v1494_v19  ;;  %v1493_v21 = vadd.f32 1.0, %v2740_v29  ;;  %v1217_v32 = vadd.f32 %v1209_v38, %v3397_v53  ;;  %v1212_v59 = vmul.f32 0.044715, %v1204_v39 }
 0x953   :  { %v2744_v58 = vpop.eup %2743  ;;  %v1246_v60 = vmul.f32 0.5, %v1238_v40  ;;  %v1237_v46 = vadd.f32 1.0, %v2742_v44  ;;  %2753 = vtanh.f32 %v1226_v57  ;;  %v1481_v62 = vmul.f32 0.7978846, %v1473_v13 }
 0x954   :  { %v2746_v63 = vpop.eup %2745  ;;  %v1510_v2 = vmul.f32 %v1502_v45, %v3338_v61  ;;  %v1501_v4 = vmul.f32 0.5, %v1493_v21  ;;  %v1496_v22 = vadd.f32 1.0, %v2744_v58  ;;  %v1225_v5 = vmul.f32 0.7978846, %v1217_v32 }
 0x955   :  { %v2748_v6 = vpop.eup %2747  ;;  %v1254_v8 = vmul.f32 %v1246_v60, %v3340_v31  ;;  %v1245_v48 = vmul.f32 0.5, %v1237_v46  ;;  %v1240_v43 = vadd.f32 1.0, %v2746_v63  ;;  %2755 = vtanh.f32 %v1481_v62 }
 0x956   :  { %v2750_v50 = vpop.eup %2749  ;;  %v1509_v54 = vmul.f32 %v1501_v4, %v3342_v15  ;;  %v1504_v37 = vmul.f32 0.5, %v1496_v22  ;;  %v1495_v10 = vadd.f32 1.0, %v2748_v6  ;;  %2757 = vtanh.f32 %v1225_v5 }
 0x957   :  { %v1253_v11 = vmul.f32 %v1245_v48, %v3346_v3  ;;  %v1248_v12 = vmul.f32 0.5, %v1240_v43  ;;  %v1239_v14 = vadd.f32 1.0, %v2750_v50  ;;  %v1476_v61 = vadd.f32 %v1468_v28, %v3402_v41 }
 0x958   :  { %v1512_v16 = vmul.f32 %v1504_v37, %v3355_v9  ;;  %v1503_v17 = vmul.f32 0.5, %v1495_v10  ;;  %v1220_v31 = vadd.f32 %v1212_v59, %v3407_v25  ;;  %v1459_v20 = vmul.f32 %v1451_v35, %v3412_v18 }
 0x959   :  { %v1256_v27 = vmul.f32 %v1248_v12, %v3359_v49  ;;  %v1247_v23 = vmul.f32 0.5, %v1239_v14  ;;  %v1484_v15 = vmul.f32 0.7978846, %v1476_v61  ;;  %v1195_v24 = vmul.f32 %v3417_v26, %v3417_v26 }
 0x95a   :  { %v2752_v33 = vpop.eup %2751  ;;  %v1511_v3 = vmul.f32 %v1503_v17, %v3361_v51  ;;  %v1228_v34 = vmul.f32 0.7978846, %v1220_v31  ;;  %v1467_v52 = vmul.f32 0.044715, %v1459_v20  ;;  %v2616_v36 = vpack.c.bf16 %v1510_v2, %v1509_v54  ;;  %v2142_v17 = vld [vmem:[%s3631_s5 + $0x8] sm:$0xff] }
 0x95b   :  { %v1255_v9 = vmul.f32 %v1247_v23, %v3366_v0  ;;  %v1498_v19 = vadd.f32 1.0, %v2752_v33  ;;  %2759 = vtanh.f32 %v1484_v15  ;;  %v1203_v38 = vmul.f32 %v1195_v24, %v3417_v26 }
 0x95c   :  { %2761 = vtanh.f32 %v1228_v34  ;;  %v1475_v49 = vadd.f32 %v1467_v52, %v3412_v18  ;;  %2617 = vmatpush3.bf16.msra.mxu1 %v2616_v36  ;;  %v2604_v35 = vpack.c.bf16 %v1254_v8, %v1253_v11  ;;  %v2619_v39 = vpack.c.bf16 %v1512_v16, %v1511_v3 }
 0x95d   :  { %v2754_v29 = vpop.eup %2753  ;;  %v1211_v40 = vmul.f32 0.044715, %v1203_v38  ;;  %2618 = vmatprep.subr.bf16.mxu1 %v2780_v55  ;;  %v2607_v51 = vpack.c.bf16 %v1256_v27, %v1255_v9  ;;  %v1506_v57 = vmul.f32 0.5, %v1498_v19 }
 0x95e   :  { %v1242_v13 = vadd.f32 1.0, %v2754_v29  ;;  %v1483_v28 = vmul.f32 0.7978846, %v1475_v49  ;;  %2605 = vmatpush3.bf16.msra.mxu0 %v2604_v35  ;;  %v2167_v29 = vld [vmem:[%s3634_s9 + $0x28] sm:$0xff] }
 0x95f   :  { %v2756_v0 = vpop.eup %2755  ;;  %v1219_v44 = vadd.f32 %v1211_v40, %v3417_v26  ;;  %2606 = vmatprep.subr.bf16.mxu0 %v2780_v55  ;;  %v1514_v60 = vmul.f32 %v1506_v57, %v3382_v42  ;;  %v2169_v57 = vld [vmem:[%s3634_s9 + $0x38] sm:$0xff] }
 0x960   :  { %v2758_v45 = vpop.eup %2757  ;;  %v1250_v21 = vmul.f32 0.5, %v1242_v13  ;;  %v1497_v32 = vadd.f32 1.0, %v2756_v0  ;;  %2763 = vtanh.f32 %v1483_v28  ;;  %2620 = vmatpush3.bf16.msra.mxu1 %v2619_v39  ;;  %v2166_v39 = vld [vmem:[%s3634_s9 + $0x20] sm:$0xff] }
 0x961   :  { %v1241_v59 = vadd.f32 1.0, %v2758_v45  ;;  %v1227_v58 = vmul.f32 0.7978846, %v1219_v44  ;;  %2621 = vmatprep.subr.bf16.mxu1 %v2780_v55  ;;  %v2627_v40 = vpack.c.bf16 %v2167_v29, %v2166_v39 }
 0x962   :  { %v1505_v46 = vmul.f32 0.5, %v1497_v32  ;;  %2608 = vmatpush3.bf16.msra.mxu0 %v2607_v51  ;;  %v1258_v62 = vmul.f32 %v1250_v21, %v3389_v30  ;;  %v2168_v51 = vld [vmem:[%s3634_s9 + $0x30] sm:$0xff] }
 0x963   :  { %v1249_v63 = vmul.f32 0.5, %v1241_v59  ;;  %2765 = vtanh.f32 %v1227_v58  ;;  %2609 = vmatprep.subr.bf16.mxu0 %v2780_v55  ;;  %v2631_v13 = vpack.c.bf16 %v2169_v57, %v2168_v51  ;;  %v2164_v58 = vld [vmem:[%s3632_s7 + $0x1] ss:$0 sm:$0xff] }
 0x964   :  { %v1513_v2 = vmul.f32 %v1505_v46, %v3395_v47  ;;  %v2165_v46 = vld [vmem:[%s3633_s8 + $0x1] ss:$0 sm:$0xff] }
 0x965   :  { %v2760_v4 = vpop.eup %2759  ;;  %v1257_v22 = vmul.f32 %v1249_v63, %v3397_v53 }
 0x966   :  { %v2762_v5 = vpop.eup %2761  ;;  %v1500_v6 = vadd.f32 1.0, %v2760_v4  ;;  %v2622_v8 = vpack.c.bf16 %v1514_v60, %v1513_v2 }
 0x967   :  { %v2610_v48 = vpack.c.bf16 %v1258_v62, %v1257_v22  ;;  %v1244_v43 = vadd.f32 1.0, %v2762_v5 }
 0x968   :  { %2623 = vmatpush3.bf16.msra.mxu1 %v2622_v8  ;;  %v1508_v42 = vmul.f32 0.5, %v1500_v6  ;;  %v2174_v6 = vld [vmem:[%s3635_s11 + $0x40] sm:$0xff]  ;;  %v2175_v8 = vld [vmem:[%s3635_s11 + $0x48] sm:$0xff] }
 0x969   :  { %2611 = vmatpush3.bf16.msra.mxu0 %v2610_v48  ;;  %2624 = vmatprep.subr.bf16.mxu1 %v2780_v55  ;;  %v1252_v54 = vmul.f32 0.5, %v1244_v43  ;;  %v2635_v48 = vpack.c.bf16 %v2175_v8, %v2174_v6  ;;  %v2176_v43 = vld [vmem:[%s3635_s11 + $0x50] sm:$0xff] }
 0x96a   :  { %v2764_v30 = vpop.eup %2763  ;;  %2612 = vmatprep.subr.bf16.mxu0 %v2780_v55  ;;  %v1516_v47 = vmul.f32 %v1508_v42, %v3402_v41  ;;  %v1264_v41 = vpop.permute.xlu0 %1263  ;;  %v2177_v42 = vld [vmem:[%s3635_s11 + $0x58] sm:$0xff] }
 0x96b   :  { %v1499_v50 = vadd.f32 1.0, %v2764_v30  ;;  %v1260_v12 = vmul.f32 %v1252_v54, %v3407_v25  ;;  %v2639_v30 = vpack.c.bf16 %v2177_v42, %v2176_v43  ;;  %v2179_v54 = vld [vmem:[%s3635_s11 + $0x68] sm:$0xff] }
 0x96d   :  { %v2766_v37 = vpop.eup %2765  ;;  %v1507_v10 = vmul.f32 0.5, %v1499_v50  ;;  %v2178_v50 = vld [vmem:[%s3635_s11 + $0x60] sm:$0xff] }
 0x96e   :  { %v1243_v53 = vadd.f32 1.0, %v2766_v37  ;;  %v2643_v37 = vpack.c.bf16 %v2179_v54, %v2178_v50 }
 0x96f   :  { %v1515_v11 = vmul.f32 %v1507_v10, %v3412_v18  ;;  %v2181_v10 = vld [vmem:[%s3635_s11 + $0x78] sm:$0xff] }
 0x970   :  { %v1251_v14 = vmul.f32 0.5, %v1243_v53 }
 0x971   :  { %v2625_v61 = vpack.c.bf16 %v1516_v47, %v1515_v11  ;;  %v2180_v47 = vld [vmem:[%s3635_s11 + $0x70] sm:$0xff]  ;;  %v2171_v11 = vld [vmem:[%s3636_s10 + $0x1] ss:$0 sm:$0xff] }
 0x972   :  { %v1259_v16 = vmul.f32 %v1251_v14, %v3417_v26  ;;  %v2647_v53 = vpack.c.bf16 %v2181_v10, %v2180_v47 }
 0x973   :  { %2626 = vmatpush3.bf16.msra.mxu1 %v2625_v61 }
 0x974   :  { %v2613_v31 = vpack.c.bf16 %v1260_v12, %v1259_v16  ;;  %2651 = vmatprep.subr.bf16.mxu1 %v2780_v55 }
 0x976   :  { %2614 = vmatpush3.bf16.msra.mxu0 %v2613_v31  ;;  %2477 = vmatmul.mubr.msk.f32.vlgmr.msra.gmra.mrb[12].mxu1 %vm375_vm3, %v2142_v17 }
 0x977   :  { %2517 = vmatprep.mubr.msk.f32.mxu1 %vm2781_vm2, %v2782_v56  ;;  %2628 = vmatprep.subr.bf16.mxu0 %v2627_v40 }
 0x979   :  { %2444 = vmatmul.mubr.msk.f32.vlgmr.msra.gmra.mrb[28].mxu0 %vm375_vm3, %v2142_v17 }
 0x97a   :  { %2630 = vmatpush3.bf16.msra.mxu0 %v2627_v40 }
 0x97b   :  { %2632 = vmatprep.subr.bf16.mxu0 %v2631_v13 }
 0x97e   :  { %2634 = vmatpush3.bf16.msra.mxu0 %v2631_v13 }
 0x97f   :  { %2636 = vmatprep.subr.bf16.mxu0 %v2635_v48 }
 0xa49   :  { %v1583_v25 = vpop.f32.mrb[12].mxu1 }
 0xa4a   :  { %v1584_v18 = vadd.f32 %v1583_v25, %v1264_v41  ;;  %v2478_v26 = vpop.f32.mrb[13].mxu1 }
 0xa4c   :  { %v3465_v20 = vadd.f32 %v1584_v18, %v3247_v7  ;;  %v1335_v27 = vpop.f32.mrb[28].mxu0 }
 0xa4d   :  { %v1336_v23 = vadd.f32 %v1335_v27, %v1264_v41  ;;  %v2445_v15 = vpop.f32.mrb[29].mxu0 }
 0xa4e   :  { %v1595_v24 = vsel %vm66_vm0, %v3465_v20, 0.0 }
 0xa4f   :  { %v3470_v33 = vadd.f32 %v1336_v23, %v3249_v1  ;;  %1596 = vadd.xlane.f32.xlu0 %v1595_v24 }
 0xa51   :  { %v1592_v3 = vsel %vm66_vm0, %v3470_v33, 0.0 }
 0xa52   :  { %1593 = vadd.xlane.f32.xlu1 %v1592_v3 }
 0xadc   :  { %v1597_v34 = vpop.xlane.xlu0 %1596 }
 0xadd   :  { %v1599_v52 = vmul.f32 0.03125, %v1597_v34 }
 0xadf   :  { %v1601_v36 = vsub.f32 %v3465_v20, %v1599_v52  ;;  %v1594_v7 = vpop.xlane.xlu1 %1593 }
 0xae0   :  { %v1598_v9 = vmul.f32 0.03125, %v1594_v7 }
 0xae1   :  { %v1603_v19 = vmul.f32 %v1601_v36, %v1601_v36 }
 0xae2   :  { %v1600_v38 = vsub.f32 %v3470_v33, %v1598_v9 }
 0xae3   :  { %v1607_v49 = vsel %vm66_vm0, %v1603_v19, 0.0 }
 0xae4   :  { %1608 = vadd.xlane.f32.xlu1 %v1607_v49  ;;  %v1602_v35 = vmul.f32 %v1600_v38, %v1600_v38 }
 0xae6   :  { %v1604_v1 = vsel %vm66_vm0, %v1602_v35, 0.0  ;;  %v2185_v35 = vld [vmem:[%s3637_s12 + $0x1] ss:$0 sm:$0xff] }
 0xae7   :  { %1605 = vadd.xlane.f32.xlu0 %v1604_v1 }
 0xb71   :  { %v1609_v28 = vpop.xlane.xlu1 %1608 }
 0xb72   :  { %v1611_v0 = vmul.f32 0.03125, %v1609_v28 }
 0xb74   :  { %v1613_v44 = vadd.f32 1e-05, %v1611_v0  ;;  %v1606_v45 = vpop.xlane.xlu0 %1605 }
 0xb75   :  { %v1610_v21 = vmul.f32 0.03125, %v1606_v45 }
 0xb76   :  { %2767 = vrsqrt.f32 %v1613_v44 }
 0xb77   :  { %v1612_v32 = vadd.f32 1e-05, %v1610_v21 }
 0xb79   :  { %2769 = vrsqrt.f32 %v1612_v32 }
 0xb80   :  { %v2768_v59 = vpop.eup %2767 }
 0xb81   :  { %v1617_v60 = vmul.f32 %v2768_v59, %v1601_v36 }
 0xb83   :  { %v2770_v62 = vpop.eup %2769  ;;  %v1625_v63 = vmul.f32 %v2164_v58, %v1617_v60  ;;  %v1911_v60 = vld [vmem:[%s3638_s15] sm:$0xff] }
 0xb84   :  { %v1616_v2 = vmul.f32 %v2770_v62, %v1600_v38  ;;  %v1913_v62 = vld [vmem:[%s3638_s15 + $0x10] sm:$0xff] }
 0xb85   :  { %v1633_v4 = vadd.f32 %v2165_v46, %v1625_v63 }
 0xb86   :  { %v1624_v22 = vmul.f32 %v2164_v58, %v1616_v2  ;;  %v1914_v2 = vld [vmem:[%s3638_s15 + $0x18] sm:$0xff] }
 0xb88   :  { %v1632_v5 = vadd.f32 %v2165_v46, %v1624_v22  ;;  %v1912_v46 = vld [vmem:[%s3638_s15 + $0x8] sm:$0xff] }
 0xb89   :  { %v2652_v63 = vpack.c.bf16 %v1912_v46, %v1911_v60  ;;  %v2188_v60 = vld [vmem:[%s3642_s16] ss:$0 sm:$0xff] }
 0xb8a   :  { %2487 = vmatprep.mubr.msk.f32.mxu0 %vm66_vm0, %v1632_v5 }
 0xb8b   :  { %2488 = vmatmul.mubr.msk.f32.vlgmr.msra.gmra.mrb[30].mxu0 %vm66_vm0, %v1633_v4  ;;  %2653 = vmatpush3.bf16.msra.mxu1 %v2652_v63  ;;  %v2655_v4 = vpack.c.bf16 %v1914_v2, %v1913_v62 }
 0xb8c   :  { %2638 = vmatpush3.bf16.msra.mxu0 %v2635_v48  ;;  %2654 = vmatprep.subr.bf16.mxu1 %v2780_v55 }
 0xb8d   :  { %2640 = vmatprep.subr.bf16.mxu0 %v2639_v30 }
 0xb8f   :  { %2656 = vmatpush3.bf16.msra.mxu1 %v2655_v4 }
 0xb90   :  { %2642 = vmatpush3.bf16.msra.mxu0 %v2639_v30  ;;  %2657 = vmatprep.subr.bf16.mxu1 %v2780_v55  ;;  %v2186_v30 = vld [vmem:[%s3639_s13] ss:$0 sm:$0xff] }
 0xb91   :  { %2644 = vmatprep.subr.bf16.mxu0 %v2643_v37 }
 0xb94   :  { %2646 = vmatpush3.bf16.msra.mxu0 %v2643_v37  ;;  %v2187_v37 = vld [vmem:[%s3640_s14] ss:$0 sm:$0xff] }
 0xb95   :  { %2648 = vmatprep.subr.bf16.mxu0 %v2647_v53 }
 0xb98   :  { %2650 = vmatpush3.bf16.msra.mxu0 %v2647_v53 }
 0xc5e   :  { %v2489_v12 = vpop.f32.mrb[30].mxu0 }
 0xc5f   :  { %v1725_v14 = vadd.f32 %v2489_v12, %v2171_v11  ;;  %v1719_v61 = vpop.f32.mrb[31].mxu0 }
 0xc60   :  { %v1720_v16 = vadd.f32 %v2171_v11, %v1719_v61 }
 0xc61   :  { %v1729_v17 = vmul.f32 %v1725_v14, %v1725_v14 }
 0xc62   :  { %v1728_v31 = vmul.f32 %v1720_v16, %v1720_v16 }
 0xc63   :  { %v1731_v41 = vmul.f32 %v1729_v17, %v1725_v14 }
 0xc64   :  { %v1730_v25 = vmul.f32 %v1728_v31, %v1720_v16 }
 0xc65   :  { %v1733_v18 = vmul.f32 0.044715, %v1731_v41 }
 0xc66   :  { %v1732_v26 = vmul.f32 0.044715, %v1730_v25 }
 0xc67   :  { %v1735_v27 = vadd.f32 %v1733_v18, %v1725_v14 }
 0xc68   :  { %v1734_v23 = vadd.f32 %v1732_v26, %v1720_v16 }
 0xc69   :  { %v1737_v15 = vmul.f32 0.7978846, %v1735_v27 }
 0xc6a   :  { %v1736_v24 = vmul.f32 0.7978846, %v1734_v23 }
 0xc6b   :  { %2771 = vtanh.f32 %v1737_v15 }
 0xc6c   :  { %2773 = vtanh.f32 %v1736_v24 }
 0xc75   :  { %v2772_v3 = vpop.eup %2771 }
 0xc76   :  { %v2774_v34 = vpop.eup %2773  ;;  %v1741_v52 = vadd.f32 1.0, %v2772_v3  ;;  %v1996_v3 = vld [vmem:[%s3641_s17] sm:$0xff] }
 0xc77   :  { %v1740_v36 = vadd.f32 1.0, %v2774_v34  ;;  %v1997_v34 = vld [vmem:[%s3641_s17 + $0x8] sm:$0xff] }
 0xc78   :  { %v1743_v7 = vmul.f32 0.5, %v1741_v52 }
 0xc79   :  { %v1742_v9 = vmul.f32 0.5, %v1740_v36 }
 0xc7a   :  { %v1745_v38 = vmul.f32 %v1743_v7, %v1725_v14 }
 0xc7b   :  { %v1744_v19 = vmul.f32 %v1742_v9, %v1720_v16  ;;  %v2658_v9 = vpack.c.bf16 %v1997_v34, %v1996_v3 }
 0xc7d   :  { %2506 = vmatprep.mubr.msk.f32.mxu0 %vm375_vm3, %v1744_v19  ;;  %v1998_v19 = vld [vmem:[%s3641_s17 + $0x10] sm:$0xff] }
 0xc7e   :  { %2507 = vmatmul.mubr.msk.f32.vlgmr.msra.gmra.mrb[32].mxu0 %vm375_vm3, %v1745_v38  ;;  %v1999_v38 = vld [vmem:[%s3641_s17 + $0x18] sm:$0xff] }
 0xd51   :  { %v2508_v49 = vpop.f32.mrb[32].mxu0 }
 0xd52   :  { %v1837_v1 = vadd.f32 %v2508_v49, %v3465_v20  ;;  %v1827_v39 = vpop.f32.mrb[33].mxu0 }
 0xd53   :  { %v1836_v29 = vadd.f32 %v1827_v39, %v3470_v33  ;;  %v2001_v39 = vld [vmem:[%s3641_s17 + $0x28] sm:$0xff] }
 0xd54   :  { %v1847_v40 = vadd.f32 %v2185_v35, %v1837_v1  ;;  %v2000_v1 = vld [vmem:[%s3641_s17 + $0x20] sm:$0xff] }
 0xd55   :  { %v1846_v51 = vadd.f32 %v2185_v35, %v1836_v29  ;;  %v2661_v35 = vpack.c.bf16 %v1999_v38, %v1998_v19  ;;  %v2664_v29 = vpack.c.bf16 %v2001_v39, %v2000_v1 }
 0xd56   :  { %v1853_v57 = vsel %vm66_vm0, %v1847_v40, 0.0 }
 0xd57   :  { %1854 = vadd.xlane.f32.xlu1 %v1853_v57  ;;  %v1850_v13 = vsel %vm66_vm0, %v1846_v51, 0.0  ;;  %v2004_v57 = vld [vmem:[%s3641_s17 + $0x40] sm:$0xff] }
 0xd58   :  { %1851 = vadd.xlane.f32.xlu0 %v1850_v13  ;;  %v2005_v13 = vld [vmem:[%s3641_s17 + $0x48] sm:$0xff] }
 0xde4   :  { %v1855_v28 = vpop.xlane.xlu1 %1854 }
 0xde5   :  { %v1857_v0 = vmul.f32 0.03125, %v1855_v28  ;;  %v1852_v44 = vpop.xlane.xlu0 %1851  ;;  %v2670_v28 = vpack.c.bf16 %v2005_v13, %v2004_v57 }
 0xde6   :  { %v1856_v45 = vmul.f32 0.03125, %v1852_v44  ;;  %v2007_v44 = vld [vmem:[%s3641_s17 + $0x58] sm:$0xff] }
 0xde7   :  { %v1859_v21 = vsub.f32 %v1847_v40, %v1857_v0  ;;  %v2002_v40 = vld [vmem:[%s3641_s17 + $0x30] sm:$0xff] }
 0xde8   :  { %v1858_v32 = vsub.f32 %v1846_v51, %v1856_v45  ;;  %v2006_v0 = vld [vmem:[%s3641_s17 + $0x50] sm:$0xff] }
 0xde9   :  { %v1861_v59 = vmul.f32 %v1859_v21, %v1859_v21  ;;  %v2673_v45 = vpack.c.bf16 %v2007_v44, %v2006_v0 }
 0xdea   :  { %v1860_v58 = vmul.f32 %v1858_v32, %v1858_v32 }
 0xdeb   :  { %v1865_v20 = vsel %vm66_vm0, %v1861_v59, 0.0 }
 0xdec   :  { %1866 = vadd.xlane.f32.xlu1 %v1865_v20  ;;  %v1862_v33 = vsel %vm66_vm0, %v1860_v58, 0.0  ;;  %v2010_v58 = vld [vmem:[%s3641_s17 + $0x70] sm:$0xff]  ;;  %v2011_v20 = vld [vmem:[%s3641_s17 + $0x78] sm:$0xff] }
 0xded   :  { %1863 = vadd.xlane.f32.xlu0 %v1862_v33  ;;  %v2679_v33 = vpack.c.bf16 %v2011_v20, %v2010_v58 }
 0xe79   :  { %v1867_v22 = vpop.xlane.xlu1 %1866 }
 0xe7a   :  { %v1869_v5 = vmul.f32 0.03125, %v1867_v22  ;;  %v1864_v6 = vpop.xlane.xlu0 %1863 }
 0xe7b   :  { %v1868_v8 = vmul.f32 0.03125, %v1864_v6 }
 0xe7c   :  { %v1871_v48 = vadd.f32 1e-05, %v1869_v5 }
 0xe7d   :  { %v1870_v43 = vadd.f32 1e-05, %v1868_v8 }
 0xe7e   :  { %2775 = vrsqrt.f32 %v1871_v48 }
 0xe7f   :  { %2777 = vrsqrt.f32 %v1870_v43 }
 0xe88   :  { %v2776_v42 = vpop.eup %2775 }
 0xe89   :  { %v2778_v50 = vpop.eup %2777  ;;  %v1875_v54 = vmul.f32 %v2776_v42, %v1859_v21  ;;  %v2008_v21 = vld [vmem:[%s3641_s17 + $0x60] sm:$0xff] }
 0xe8a   :  { %v1874_v47 = vmul.f32 %v2778_v50, %v1858_v32  ;;  %v2009_v32 = vld [vmem:[%s3641_s17 + $0x68] sm:$0xff] }
 0xe8b   :  { %v1883_v10 = vmul.f32 %v2186_v30, %v1875_v54  ;;  %v2676_v59 = vpack.c.bf16 %v2009_v32, %v2008_v21 }
 0xe8c   :  { %v1882_v53 = vmul.f32 %v2186_v30, %v1874_v47 }
 0xe8d   :  { %v1891_v11 = vadd.f32 %v2187_v37, %v1883_v10 }
 0xe8e   :  { %v1890_v12 = vadd.f32 %v2187_v37, %v1882_v53 }
 0xe8f   :  { %v1901_v14 = vsel %vm66_vm0, %v1891_v11, 0.0 }
 0xe90   :  { %v1892_v61 = vsel %vm66_vm0, %v1890_v12, 0.0  ;;  %v1902_v16 = vrot.slane %v1901_v14, 4 }
 0xe91   :  { %v1893_v17 = vrot.slane %v1892_v61, 4 }
 0xe92   :  { %v1903_v31 = vadd.f32 %v1902_v16, %v1901_v14 }
 0xe93   :  { %v1894_v41 = vadd.f32 %v1893_v17, %v1892_v61 }
 0xe94   :  { %v1904_v25 = vrot.slane %v1903_v31, 2 }
 0xe95   :  { %v1895_v18 = vrot.slane %v1894_v41, 2 }
 0xe96   :  { %v1905_v26 = vadd.f32 %v1904_v25, %v1903_v31 }
 0xe97   :  { %v1896_v27 = vadd.f32 %v1895_v18, %v1894_v41 }
 0xe98   :  { %v1906_v23 = vrot.slane %v1905_v26, 1 }
 0xe99   :  { %v1897_v15 = vrot.slane %v1896_v27, 1 }
 0xe9a   :  { %v1907_v24 = vadd.f32 %v1906_v23, %v1905_v26 }
 0xe9b   :  { %v1898_v52 = vadd.f32 %v1897_v15, %v1896_v27 }
 0xe9c   :  { %v1908_v36 = vmul.f32 0.125, %v1907_v24 }
 0xe9d   :  { %v1900_v7 = vmul.f32 0.125, %v1898_v52 }
 0xe9f   :  { %v1910_v49 = vsel %vm1909_vm4, %v1900_v7, %v1908_v36 }
 0xea0   :  { %2518 = vmatmul.mubr.msk.f32.vlgmr.msra.gmra.mrb[14].mxu1 %vm66_vm0, %v1910_v49 }
 0xea1   :  { %2659 = vmatpush3.bf16.msra.mxu1 %v2658_v9  ;;  %2552 = vmatprep.mubr.msk.f32.mxu1 %vm2781_vm2, %v2782_v56  ;;  %v2003_v56 = vld [vmem:[%s3641_s17 + $0x38] sm:$0xff] }
 0xea2   :  { %2660 = vmatprep.subr.bf16.mxu1 %v2780_v55  ;;  %v2667_v51 = vpack.c.bf16 %v2003_v56, %v2002_v40 }
 0xea5   :  { %2662 = vmatpush3.bf16.msra.mxu1 %v2661_v35 }
 0xea6   :  { %2663 = vmatprep.subr.bf16.mxu1 %v2780_v55 }
 0xea9   :  { %2665 = vmatpush3.bf16.msra.mxu1 %v2664_v29 }
 0xeaa   :  { %2666 = vmatprep.subr.bf16.mxu1 %v2780_v55 }
 0xead   :  { %2668 = vmatpush3.bf16.msra.mxu1 %v2667_v51 }
 0xeae   :  { %2669 = vmatprep.subr.bf16.mxu1 %v2780_v55 }
 0xeb1   :  { %2671 = vmatpush3.bf16.msra.mxu1 %v2670_v28 }
 0xeb2   :  { %2672 = vmatprep.subr.bf16.mxu1 %v2780_v55 }
 0xeb5   :  { %2674 = vmatpush3.bf16.msra.mxu1 %v2673_v45 }
 0xeb6   :  { %2675 = vmatprep.subr.bf16.mxu1 %v2780_v55 }
 0xeb9   :  { %2677 = vmatpush3.bf16.msra.mxu1 %v2676_v59 }
 0xeba   :  { %2678 = vmatprep.subr.bf16.mxu1 %v2780_v55  ;;  %v2190_v55 = vld [vmem:[%s3643_s18] ss:$0 sm:$0xff] }
 0xebd   :  { %2680 = vmatpush3.bf16.msra.mxu1 %v2679_v33 }
 0xf73   :  { %v1991_v46 = vpop.f32.mrb[14].mxu1 }
 0xf74   :  { %v1992_v62 = vadd.f32 %v2188_v60, %v1991_v46  ;;  %v2519_v63 = vpop.f32.mrb[15].mxu1 }
 0xf76   :  { %v1995_v2 = vmax.f32 %v1992_v62, 0.0 }
 0xf78   :  { %2553 = vmatmul.mubr.f32.vlgmr.msra.gmra.mrb[16].mxu1 %v1995_v2 }
0x104b   :  { %v2085_v4 = vpop.f32.mrb[16].mxu1 }
0x104c   :  { %v2086_v22 = vadd.f32 %v2190_v55, %v2085_v4  ;;  %v2554_v5 = vpop.f32.mrb[17].mxu1 }
0x104e   :  { %2089 = vst [vmem:[%s3644_s19] sm:$0x3] %v2086_v22 }

</bundles_post_ra>
